<compile_context>
chip_gen: v6e
topology: v6e:2x2x1
jax: 0.10.0
libtpu: 0.0.40
codegen_flags: <defaults>
</compile_context>

<pallas_src>
import numpy as np
import jax
import jax.numpy as jnp
from jax.experimental import pallas as pl
from jax.experimental.pallas import tpu as pltpu

D = 300     # hidden / embedding dim fixed by projection_head Linear(300, 300)
DP = 384    # D padded to a multiple of 128 (lane-aligned)
DE = 4      # synthetic edge-attribute feature dim
TN = 256    # node-tile size (fills 256x256 MXU on v6e/v7x)


def _round_up(v, m):
    return (v + m - 1) // m * m


def _pad2(a, shape):
    return jnp.zeros(shape, a.dtype).at[:a.shape[0], :a.shape[1]].set(a)


def gsimclr_kernel(cblk_ref,                                   # scalar prefetch (SMEM)
                   adj_ref, x_ref, ep_ref, pool_ref, inv_ref,  # streamed / resident inputs
                   w1_ref, b1_ref, w2_ref, b2_ref,
                   wp1_ref, bp1_ref, wp2_ref, bp2_ref,
                   out_ref, agg_ref):
    f32 = jnp.float32
    bf16 = jnp.bfloat16
    i = pl.program_id(0)              # node (row) tile
    k = pl.program_id(1)              # column block inside this tile's window
    last_i = pl.num_programs(0) - 1
    last_k = pl.num_programs(1) - 1

    @pl.when((i == 0) & (k == 0))
    def _():
        out_ref[...] = jnp.zeros_like(out_ref)

    @pl.when(k == 0)
    def _():
        agg_ref[...] = jnp.zeros_like(agg_ref)

    # (A + I) @ x restricted to this tile's non-zero (block-diagonal) window.
    agg_ref[...] += jnp.dot(adj_ref[...], x_ref[...], preferred_element_type=f32)

    @pl.when(k == last_k)
    def _():
        # + precomputed edge-feature projection (f32 VPU add), then GIN MLP.
        agg = agg_ref[...] + ep_ref[...]
        h = jnp.dot(agg.astype(bf16), w1_ref[...], preferred_element_type=f32) + b1_ref[...]
        h = jnp.maximum(h, 0.0)
        h = jnp.dot(h.astype(bf16), w2_ref[...], preferred_element_type=f32) + b2_ref[...]
        # Pooled-sum contribution of this node tile (exact 0/1 bf16 indicator).
        out_ref[...] += jnp.dot(pool_ref[...], h.astype(bf16), preferred_element_type=f32)

    @pl.when((i == last_i) & (k == last_k))
    def _():
        # mean = sum / count (f32), then projection head Linear-ReLU-Linear, in place.
        g = out_ref[...] * inv_ref[...]
        p = jnp.dot(g.astype(bf16), wp1_ref[...], preferred_element_type=f32) + bp1_ref[...]
        p = jnp.maximum(p, 0.0)
        out_ref[...] = jnp.dot(p.astype(bf16), wp2_ref[...],
                               preferred_element_type=f32) + bp2_ref[...]


def gsimclr_forward(x, edge_index, edge_attr, batch, num_graphs, params):
    """x: (N, 300) f32, edge_index: (2, E) i32, edge_attr: (E, 4) f32,
    batch: (N,) i32 graph assignment.  Returns (num_graphs, 300) f32."""
    n = x.shape[0]
    b = num_graphs
    n_pad = _round_up(n, TN)
    n_tiles = n_pad // TN
    n_blocks = n_pad // TN

    src, dst = edge_index[0], edge_index[1]

    # ---- host-side block-structure analysis (batch is concrete here) -------
    batch_np = np.asarray(batch)
    gfirst = np.zeros((b,), np.int64)
    glast = np.zeros((b,), np.int64)
    for g in range(b):
        idx = np.nonzero(batch_np == g)[0]
        gfirst[g], glast[g] = idx[0], idx[-1]
    cstart_blk = np.zeros((n_tiles,), np.int32)
    span = np.ones((n_tiles,), np.int32)
    for t in range(n_tiles):
        r0 = t * TN
        if r0 >= n:
            continue                      # fully padded tile: window irrelevant
        r1 = min((t + 1) * TN, n) - 1
        b0 = int(gfirst[int(batch_np[r0])]) // TN
        b1 = int(glast[int(batch_np[r1])]) // TN
        cstart_blk[t] = b0
        span[t] = b1 - b0 + 1
    KC = int(span.max())                  # static column-window depth (blocks)
    cstart_blk = np.minimum(cstart_blk, n_blocks - KC).astype(np.int32)
    cstart = jnp.asarray(cstart_blk)      # scalar-prefetch array (block units)

    # ---- compacted (A + I): only each tile's KC*TN column window is stored --
    # TODO(synk): multiplicities + identity stored in bf16 are exact only up to
    #   256 parallel edges per (dst, src) pair.
    rows = jnp.arange(n, dtype=jnp.int32)
    coloff = cstart[rows // TN] * TN                       # per-row column offset
    adj_c = jnp.zeros((n_pad, KC * TN), jnp.float32)
    adj_c = adj_c.at[dst, src - coloff[dst]].add(1.0)      # A
    adj_c = adj_c.at[rows, rows - coloff].add(1.0)         # + I (GIN eps = 0)

    # ---- edge features pre-reduced + projected in the wrapper (real K = 4) --
    en = jnp.zeros((n, DE), jnp.float32).at[dst].add(edge_attr)
    eproj = _pad2(en @ params["we"], (n_pad, DP))          # (n_pad, DP) f32

    # ---- exact 0/1 pool indicator + f32 inverse counts ----------------------
    onehot = (batch[None, :] == jnp.arange(b)[:, None]).astype(jnp.float32)
    counts = jnp.maximum(onehot.sum(axis=1, keepdims=True), 1.0)
    pool = jnp.zeros((b, n_pad), jnp.float32).at[:, :n].set(onehot)
    inv = jnp.broadcast_to(1.0 / counts, (b, DP)).astype(jnp.float32)

    # ---- lane-aligned padding + bf16 MXU operands (biases / adds stay f32) --
    bf16 = jnp.bfloat16
    xp = _pad2(x, (n_pad, DP)).astype(bf16)
    adj_c = adj_c.astype(bf16)
    pool = pool.astype(bf16)                                # exact 0/1
    w1 = _pad2(params["w1"], (DP, DP)).astype(bf16)
    w2 = _pad2(params["w2"], (DP, DP)).astype(bf16)
    wp1 = _pad2(params["wp1"], (DP, DP)).astype(bf16)
    wp2 = _pad2(params["wp2"], (DP, DP)).astype(bf16)
    b1 = _pad2(params["b1"], (1, DP))
    b2 = _pad2(params["b2"], (1, DP))
    bp1 = _pad2(params["bp1"], (1, DP))
    bp2 = _pad2(params["bp2"], (1, DP))

    res = lambda i, k, cblk: (0, 0)      # resident blocks (constant block index)
    in_specs = [
        pl.BlockSpec((TN, TN), lambda i, k, cblk: (i, k)),           # compacted adj tile
        pl.BlockSpec((TN, DP), lambda i, k, cblk: (cblk[i] + k, 0)), # x block (data-dep)
        pl.BlockSpec((TN, DP), lambda i, k, cblk: (i, 0)),           # e_proj tile (f32)
        pl.BlockSpec((b, TN), lambda i, k, cblk: (0, i)),            # pool indicator tile
        pl.BlockSpec((b, DP), res),                                  # 1/counts (f32)
        pl.BlockSpec((DP, DP), res), pl.BlockSpec((1, DP), res),     # w1, b1
        pl.BlockSpec((DP, DP), res), pl.BlockSpec((1, DP), res),     # w2, b2
        pl.BlockSpec((DP, DP), res), pl.BlockSpec((1, DP), res),     # wp1, bp1
        pl.BlockSpec((DP, DP), res), pl.BlockSpec((1, DP), res),     # wp2, bp2
    ]
    out_spec = pl.BlockSpec((b, DP), res)                            # resident accumulator

    out = pl.pallas_call(
        gsimclr_kernel,
        out_shape=jax.ShapeDtypeStruct((b, DP), jnp.float32),
        grid_spec=pltpu.PrefetchScalarGridSpec(
            num_scalar_prefetch=1,
            grid=(n_tiles, KC),
            in_specs=in_specs,
            out_specs=out_spec,
            scratch_shapes=[pltpu.VMEM((TN, DP), jnp.float32)]),     # agg accumulator
        compiler_params=pltpu.CompilerParams(
            # node axis carries the pooled sum, K axis carries agg -> both reductions
            dimension_semantics=("arbitrary", "arbitrary")),
    )(cstart, adj_c, xp, eproj, pool, inv,
      w1, b1, w2, b2, wp1, bp1, wp2, bp2)

    return out[:, :D]


def init_params(key):
    ks = jax.random.split(key, 10)
    s = 0.1
    return {
        "we":  s * jax.random.normal(ks[0], (DE, D), jnp.float32),
        "w1":  s * jax.random.normal(ks[1], (D, D), jnp.float32),
        "b1":  s * jax.random.normal(ks[2], (1, D), jnp.float32),
        "w2":  s * jax.random.normal(ks[3], (D, D), jnp.float32),
        "b2":  s * jax.random.normal(ks[4], (1, D), jnp.float32),
        "wp1": s * jax.random.normal(ks[5], (D, D), jnp.float32),
        "bp1": s * jax.random.normal(ks[6], (1, D), jnp.float32),
        "wp2": s * jax.random.normal(ks[7], (D, D), jnp.float32),
        "bp2": s * jax.random.normal(ks[8], (1, D), jnp.float32),
    }


def _reference(x, edge_index, edge_attr, batch, num_graphs, params):
    # pure-JAX f32 reference of the same forward pass
    n = x.shape[0]
    src, dst = edge_index[0], edge_index[1]
    adj = jnp.zeros((n, n), jnp.float32).at[dst, src].add(1.0)
    en = jnp.zeros((n, DE), jnp.float32).at[dst].add(edge_attr)
    agg = x + adj @ x + en @ params["we"]
    h = jnp.maximum(agg @ params["w1"] + params["b1"], 0.0) @ params["w2"] + params["b2"]
    onehot = (batch[None, :] == jnp.arange(num_graphs)[:, None]).astype(jnp.float32)
    g = (onehot / jnp.maximum(onehot.sum(1, keepdims=True), 1.0)) @ h
    p = jnp.maximum(g @ params["wp1"] + params["bp1"], 0.0)
    return p @ params["wp2"] + params["bp2"]


if __name__ == "__main__":
    key = jax.random.PRNGKey(0)
    k_x, k_ea, k_p = jax.random.split(key, 3)

    num_graphs = 4
    nodes_per_graph = 128
    N = num_graphs * nodes_per_graph            # 512 nodes -> 2 node tiles of 256
    # ring edges (both directions) within each graph -> E = 2 * N
    src_list, dst_list = [], []
    for g in range(num_graphs):
        base = g * nodes_per_graph
        for i in range(nodes_per_graph):
            a = base + i
            c = base + (i + 1) % nodes_per_graph
            src_list += [a, c]
            dst_list += [c, a]
    edge_index = jnp.array([src_list, dst_list], dtype=jnp.int32)
    E = edge_index.shape[1]

    x = jax.random.normal(k_x, (N, D), jnp.float32)
    edge_attr = jax.random.normal(k_ea, (E, DE), jnp.float32)
    batch = jnp.repeat(jnp.arange(num_graphs, dtype=jnp.int32), nodes_per_graph)

    params = init_params(k_p)

    out = gsimclr_forward(x, edge_index, edge_attr, batch, num_graphs, params)
    out = jax.block_until_ready(out)

    ref = _reference(x, edge_index, edge_attr, batch, num_graphs, params)
    assert out.shape == (num_graphs, D)
    rel_err = float(jnp.max(jnp.abs(out - ref)) /
                    jnp.maximum(jnp.max(jnp.abs(ref)), 1e-6))
    assert rel_err < 5e-2, f"rel_err={rel_err}"

    print("KERNEL_OK")
</pallas_src>

<mosaic_0001>
module attributes {stable_mosaic.version = 11 : i64} {
  func.func @gsimclr_kernel(%arg0: i32, %arg1: i32, %arg2: memref<2xi32, #tpu.memory_space<smem>>, %arg3: memref<256x256xbf16, #tpu.memory_space<vmem>>, %arg4: memref<256x384xbf16, #tpu.memory_space<vmem>>, %arg5: memref<256x384xf32, #tpu.memory_space<vmem>>, %arg6: memref<4x256xbf16, #tpu.memory_space<vmem>>, %arg7: memref<4x384xf32, #tpu.memory_space<vmem>>, %arg8: memref<384x384xbf16, #tpu.memory_space<vmem>>, %arg9: memref<1x384xf32, #tpu.memory_space<vmem>>, %arg10: memref<384x384xbf16, #tpu.memory_space<vmem>>, %arg11: memref<1x384xf32, #tpu.memory_space<vmem>>, %arg12: memref<384x384xbf16, #tpu.memory_space<vmem>>, %arg13: memref<1x384xf32, #tpu.memory_space<vmem>>, %arg14: memref<384x384xbf16, #tpu.memory_space<vmem>>, %arg15: memref<1x384xf32, #tpu.memory_space<vmem>>, %arg16: memref<4x384xf32, #tpu.memory_space<vmem>>, %arg17: memref<256x384xf32, #tpu.memory_space<vmem>>) attributes {dimension_semantics = [#tpu.dimension_semantics<arbitrary>, #tpu.dimension_semantics<arbitrary>], iteration_bounds = array<i64: 2, 1>, scalar_prefetch = 1 : i64, scratch_operands = 1 : i64, tpu.core_type = #tpu.core_type<tc>, window_params = [{transform_indices = @transform_0, window_bounds = array<i64: 256, 256>}, {transform_indices = @transform_1, window_bounds = array<i64: 256, 384>}, {transform_indices = @transform_2, window_bounds = array<i64: 256, 384>}, {transform_indices = @transform_3, window_bounds = array<i64: 4, 256>}, {pipeline_mode = #tpu.pipeline_mode<synchronous>, transform_indices = @transform_4, window_bounds = array<i64: 4, 384>}, {pipeline_mode = #tpu.pipeline_mode<synchronous>, transform_indices = @transform_5, window_bounds = array<i64: 384, 384>}, {pipeline_mode = #tpu.pipeline_mode<synchronous>, transform_indices = @transform_6, window_bounds = array<i64: 1, 384>}, {pipeline_mode = #tpu.pipeline_mode<synchronous>, transform_indices = @transform_7, window_bounds = array<i64: 384, 384>}, {pipeline_mode = #tpu.pipeline_mode<synchronous>, transform_indices = @transform_8, window_bounds = array<i64: 1, 384>}, {pipeline_mode = #tpu.pipeline_mode<synchronous>, transform_indices = @transform_9, window_bounds = array<i64: 384, 384>}, {pipeline_mode = #tpu.pipeline_mode<synchronous>, transform_indices = @transform_10, window_bounds = array<i64: 1, 384>}, {pipeline_mode = #tpu.pipeline_mode<synchronous>, transform_indices = @transform_11, window_bounds = array<i64: 384, 384>}, {pipeline_mode = #tpu.pipeline_mode<synchronous>, transform_indices = @transform_12, window_bounds = array<i64: 1, 384>}, {pipeline_mode = #tpu.pipeline_mode<synchronous>, transform_indices = @transform_13, window_bounds = array<i64: 4, 384>}]} {
    %c0_i32 = arith.constant 0 : i32
    %0 = arith.cmpi eq, %arg0, %c0_i32 : i32
    %c0_i32_0 = arith.constant 0 : i32
    %1 = arith.cmpi eq, %arg1, %c0_i32_0 : i32
    %2 = arith.andi %0, %1 : i1
    %3 = arith.extui %2 : i1 to i32
    %c0_i32_1 = arith.constant 0 : i32
    %4 = arith.cmpi ne, %3, %c0_i32_1 : i32
    scf.if %4 {
      %cst_15 = arith.constant 0.000000e+00 : f32
      %22 = vector.broadcast %cst_15 : f32 to vector<4x384xf32>
      %c0_16 = arith.constant 0 : index
      %c0_17 = arith.constant 0 : index
      %23 = vector.load %arg16[%c0_16, %c0_17] : memref<4x384xf32, #tpu.memory_space<vmem>>, vector<4x384xf32>
      tpu.vector_store %arg16[%c0_16, %c0_17], %22 {strides = array<i32>} : memref<4x384xf32, #tpu.memory_space<vmem>>, vector<4x384xf32>,
    } else {
    }
    %c0_i32_2 = arith.constant 0 : i32
    %5 = arith.cmpi eq, %arg1, %c0_i32_2 : i32
    %6 = arith.extui %5 : i1 to i32
    %c0_i32_3 = arith.constant 0 : i32
    %7 = arith.cmpi ne, %6, %c0_i32_3 : i32
    scf.if %7 {
      %cst_15 = arith.constant 0.000000e+00 : f32
      %22 = vector.broadcast %cst_15 : f32 to vector<256x384xf32>
      %c0_16 = arith.constant 0 : index
      %c0_17 = arith.constant 0 : index
      %23 = vector.load %arg17[%c0_16, %c0_17] : memref<256x384xf32, #tpu.memory_space<vmem>>, vector<256x384xf32>
      tpu.vector_store %arg17[%c0_16, %c0_17], %22 {strides = array<i32>} : memref<256x384xf32, #tpu.memory_space<vmem>>, vector<256x384xf32>,
    } else {
    }
    %c0 = arith.constant 0 : index
    %c0_4 = arith.constant 0 : index
    %8 = vector.load %arg17[%c0, %c0_4] : memref<256x384xf32, #tpu.memory_space<vmem>>, vector<256x384xf32>
    %c0_5 = arith.constant 0 : index
    %c0_6 = arith.constant 0 : index
    %9 = vector.load %arg3[%c0_5, %c0_6] : memref<256x256xbf16, #tpu.memory_space<vmem>>, vector<256x256xbf16>
    %c0_7 = arith.constant 0 : index
    %c0_8 = arith.constant 0 : index
    %10 = vector.load %arg4[%c0_7, %c0_8] : memref<256x384xbf16, #tpu.memory_space<vmem>>, vector<256x384xbf16>
    %cst = arith.constant dense<0.000000e+00> : vector<256x384xf32>
    %11 = tpu.matmul %9, %10, %cst {dimension_numbers = #tpu.dot_dimension_numbers<[1], [0], [0], [1], [0, 0, 1, 1], [], []>} : vector<256x256xbf16>, vector<256x384xbf16>, vector<256x384xf32> -> vector<256x384xf32>
    %12 = arith.addf %8, %11 : vector<256x384xf32>
    %c0_9 = arith.constant 0 : index
    %c0_10 = arith.constant 0 : index
    %13 = vector.load %arg17[%c0_9, %c0_10] : memref<256x384xf32, #tpu.memory_space<vmem>>, vector<256x384xf32>
    tpu.vector_store %arg17[%c0_9, %c0_10], %12 {strides = array<i32>} : memref<256x384xf32, #tpu.memory_space<vmem>>, vector<256x384xf32>,
    %c0_i32_11 = arith.constant 0 : i32
    %14 = arith.cmpi eq, %arg1, %c0_i32_11 : i32
    %15 = arith.extui %14 : i1 to i32
    %c0_i32_12 = arith.constant 0 : i32
    %16 = arith.cmpi ne, %15, %c0_i32_12 : i32
    scf.if %16 {
      %c0_15 = arith.constant 0 : index
      %c0_16 = arith.constant 0 : index
      %22 = vector.load %arg17[%c0_15, %c0_16] : memref<256x384xf32, #tpu.memory_space<vmem>>, vector<256x384xf32>
      %c0_17 = arith.constant 0 : index
      %c0_18 = arith.constant 0 : index
      %23 = vector.load %arg5[%c0_17, %c0_18] : memref<256x384xf32, #tpu.memory_space<vmem>>, vector<256x384xf32>
      %24 = arith.addf %22, %23 : vector<256x384xf32>
      %25 = arith.truncf %24 : vector<256x384xf32> to vector<256x384xbf16>
      %c0_19 = arith.constant 0 : index
      %c0_20 = arith.constant 0 : index
      %26 = vector.load %arg8[%c0_19, %c0_20] : memref<384x384xbf16, #tpu.memory_space<vmem>>, vector<384x384xbf16>
      %cst_21 = arith.constant dense<0.000000e+00> : vector<256x384xf32>
      %27 = tpu.matmul %25, %26, %cst_21 {dimension_numbers = #tpu.dot_dimension_numbers<[1], [0], [0], [1], [0, 0, 1, 1], [], []>} : vector<256x384xbf16>, vector<384x384xbf16>, vector<256x384xf32> -> vector<256x384xf32>
      %c0_22 = arith.constant 0 : index
      %c0_23 = arith.constant 0 : index
      %28 = vector.load %arg9[%c0_22, %c0_23] : memref<1x384xf32, #tpu.memory_space<vmem>>, vector<1x384xf32>
      %29 = vector.broadcast %28 : vector<1x384xf32> to vector<256x384xf32>
      %30 = arith.addf %27, %29 : vector<256x384xf32>
      %cst_24 = arith.constant 0.000000e+00 : f32
      %31 = vector.broadcast %cst_24 : f32 to vector<256x384xf32>
      %32 = arith.maximumf %30, %31 : vector<256x384xf32>
      %33 = arith.truncf %32 : vector<256x384xf32> to vector<256x384xbf16>
      %c0_25 = arith.constant 0 : index
      %c0_26 = arith.constant 0 : index
      %34 = vector.load %arg10[%c0_25, %c0_26] : memref<384x384xbf16, #tpu.memory_space<vmem>>, vector<384x384xbf16>
      %cst_27 = arith.constant dense<0.000000e+00> : vector<256x384xf32>
      %35 = tpu.matmul %33, %34, %cst_27 {dimension_numbers = #tpu.dot_dimension_numbers<[1], [0], [0], [1], [0, 0, 1, 1], [], []>} : vector<256x384xbf16>, vector<384x384xbf16>, vector<256x384xf32> -> vector<256x384xf32>
      %c0_28 = arith.constant 0 : index
      %c0_29 = arith.constant 0 : index
      %36 = vector.load %arg11[%c0_28, %c0_29] : memref<1x384xf32, #tpu.memory_space<vmem>>, vector<1x384xf32>
      %37 = vector.broadcast %36 : vector<1x384xf32> to vector<256x384xf32>
      %38 = arith.addf %35, %37 : vector<256x384xf32>
      %c0_30 = arith.constant 0 : index
      %c0_31 = arith.constant 0 : index
      %39 = vector.load %arg16[%c0_30, %c0_31] : memref<4x384xf32, #tpu.memory_space<vmem>>, vector<4x384xf32>
      %c0_32 = arith.constant 0 : index
      %c0_33 = arith.constant 0 : index
      %40 = vector.load %arg6[%c0_32, %c0_33] : memref<4x256xbf16, #tpu.memory_space<vmem>>, vector<4x256xbf16>
      %41 = arith.truncf %38 : vector<256x384xf32> to vector<256x384xbf16>
      %cst_34 = arith.constant dense<0.000000e+00> : vector<4x384xf32>
      %42 = tpu.matmul %40, %41, %cst_34 {dimension_numbers = #tpu.dot_dimension_numbers<[1], [0], [0], [1], [0, 0, 1, 1], [], []>} : vector<4x256xbf16>, vector<256x384xbf16>, vector<4x384xf32> -> vector<4x384xf32>
      %43 = arith.addf %39, %42 : vector<4x384xf32>
      %c0_35 = arith.constant 0 : index
      %c0_36 = arith.constant 0 : index
      %44 = vector.load %arg16[%c0_35, %c0_36] : memref<4x384xf32, #tpu.memory_space<vmem>>, vector<4x384xf32>
      tpu.vector_store %arg16[%c0_35, %c0_36], %43 {strides = array<i32>} : memref<4x384xf32, #tpu.memory_space<vmem>>, vector<4x384xf32>,
    } else {
    }
    %c1_i32 = arith.constant 1 : i32
    %17 = arith.cmpi eq, %arg0, %c1_i32 : i32
    %c0_i32_13 = arith.constant 0 : i32
    %18 = arith.cmpi eq, %arg1, %c0_i32_13 : i32
    %19 = arith.andi %17, %18 : i1
    %20 = arith.extui %19 : i1 to i32
    %c0_i32_14 = arith.constant 0 : i32
    %21 = arith.cmpi ne, %20, %c0_i32_14 : i32
    scf.if %21 {
      %c0_15 = arith.constant 0 : index
      %c0_16 = arith.constant 0 : index
      %22 = vector.load %arg16[%c0_15, %c0_16] : memref<4x384xf32, #tpu.memory_space<vmem>>, vector<4x384xf32>
      %c0_17 = arith.constant 0 : index
      %c0_18 = arith.constant 0 : index
      %23 = vector.load %arg7[%c0_17, %c0_18] : memref<4x384xf32, #tpu.memory_space<vmem>>, vector<4x384xf32>
      %24 = arith.mulf %22, %23 : vector<4x384xf32>
      %25 = arith.truncf %24 : vector<4x384xf32> to vector<4x384xbf16>
      %c0_19 = arith.constant 0 : index
      %c0_20 = arith.constant 0 : index
      %26 = vector.load %arg12[%c0_19, %c0_20] : memref<384x384xbf16, #tpu.memory_space<vmem>>, vector<384x384xbf16>
      %cst_21 = arith.constant dense<0.000000e+00> : vector<4x384xf32>
      %27 = tpu.matmul %25, %26, %cst_21 {dimension_numbers = #tpu.dot_dimension_numbers<[1], [0], [0], [1], [0, 0, 1, 1], [], []>} : vector<4x384xbf16>, vector<384x384xbf16>, vector<4x384xf32> -> vector<4x384xf32>
      %c0_22 = arith.constant 0 : index
      %c0_23 = arith.constant 0 : index
      %28 = vector.load %arg13[%c0_22, %c0_23] : memref<1x384xf32, #tpu.memory_space<vmem>>, vector<1x384xf32>
      %29 = vector.broadcast %28 : vector<1x384xf32> to vector<4x384xf32>
      %30 = arith.addf %27, %29 : vector<4x384xf32>
      %cst_24 = arith.constant 0.000000e+00 : f32
      %31 = vector.broadcast %cst_24 : f32 to vector<4x384xf32>
      %32 = arith.maximumf %30, %31 : vector<4x384xf32>
      %33 = arith.truncf %32 : vector<4x384xf32> to vector<4x384xbf16>
      %c0_25 = arith.constant 0 : index
      %c0_26 = arith.constant 0 : index
      %34 = vector.load %arg14[%c0_25, %c0_26] : memref<384x384xbf16, #tpu.memory_space<vmem>>, vector<384x384xbf16>
      %cst_27 = arith.constant dense<0.000000e+00> : vector<4x384xf32>
      %35 = tpu.matmul %33, %34, %cst_27 {dimension_numbers = #tpu.dot_dimension_numbers<[1], [0], [0], [1], [0, 0, 1, 1], [], []>} : vector<4x384xbf16>, vector<384x384xbf16>, vector<4x384xf32> -> vector<4x384xf32>
      %c0_28 = arith.constant 0 : index
      %c0_29 = arith.constant 0 : index
      %36 = vector.load %arg15[%c0_28, %c0_29] : memref<1x384xf32, #tpu.memory_space<vmem>>, vector<1x384xf32>
      %37 = vector.broadcast %36 : vector<1x384xf32> to vector<4x384xf32>
      %38 = arith.addf %35, %37 : vector<4x384xf32>
      %c0_30 = arith.constant 0 : index
      %c0_31 = arith.constant 0 : index
      %39 = vector.load %arg16[%c0_30, %c0_31] : memref<4x384xf32, #tpu.memory_space<vmem>>, vector<4x384xf32>
      tpu.vector_store %arg16[%c0_30, %c0_31], %38 {strides = array<i32>} : memref<4x384xf32, #tpu.memory_space<vmem>>, vector<4x384xf32>,
    } else {
    }
    return
  }
  func.func @transform_0(%arg0: i32, %arg1: i32, %arg2: memref<2xi32, #tpu.memory_space<smem>>) -> (i32, i32) {
    %c0_i32 = arith.constant 0 : i32
    return %arg0, %arg1 : i32, i32
  }
  func.func @transform_1(%arg0: i32, %arg1: i32, %arg2: memref<2xi32, #tpu.memory_space<smem>>) -> (i32, i32) {
    %0 = arith.index_cast %arg0 : i32 to index
    %1 = memref.load %arg2[%0] : memref<2xi32, #tpu.memory_space<smem>>
    %2 = arith.addi %1, %arg1 : i32
    %c0_i32 = arith.constant 0 : i32
    %c0_i32_0 = arith.constant 0 : i32
    return %2, %c0_i32 : i32, i32
  }
  func.func @transform_2(%arg0: i32, %arg1: i32, %arg2: memref<2xi32, #tpu.memory_space<smem>>) -> (i32, i32) {
    %c0_i32 = arith.constant 0 : i32
    %c0_i32_0 = arith.constant 0 : i32
    return %arg0, %c0_i32 : i32, i32
  }
  func.func @transform_3(%arg0: i32, %arg1: i32, %arg2: memref<2xi32, #tpu.memory_space<smem>>) -> (i32, i32) {
    %c0_i32 = arith.constant 0 : i32
    %c0_i32_0 = arith.constant 0 : i32
    return %c0_i32, %arg0 : i32, i32
  }
  func.func @transform_4(%arg0: i32, %arg1: i32, %arg2: memref<2xi32, #tpu.memory_space<smem>>) -> (i32, i32) {
    %c0_i32 = arith.constant 0 : i32
    %c0_i32_0 = arith.constant 0 : i32
    %c0_i32_1 = arith.constant 0 : i32
    return %c0_i32, %c0_i32_0 : i32, i32
  }
  func.func @transform_5(%arg0: i32, %arg1: i32, %arg2: memref<2xi32, #tpu.memory_space<smem>>) -> (i32, i32) {
    %c0_i32 = arith.constant 0 : i32
    %c0_i32_0 = arith.constant 0 : i32
    %c0_i32_1 = arith.constant 0 : i32
    return %c0_i32, %c0_i32_0 : i32, i32
  }
  func.func @transform_6(%arg0: i32, %arg1: i32, %arg2: memref<2xi32, #tpu.memory_space<smem>>) -> (i32, i32) {
    %c0_i32 = arith.constant 0 : i32
    %c0_i32_0 = arith.constant 0 : i32
    %c0_i32_1 = arith.constant 0 : i32
    return %c0_i32, %c0_i32_0 : i32, i32
  }
  func.func @transform_7(%arg0: i32, %arg1: i32, %arg2: memref<2xi32, #tpu.memory_space<smem>>) -> (i32, i32) {
    %c0_i32 = arith.constant 0 : i32
    %c0_i32_0 = arith.constant 0 : i32
    %c0_i32_1 = arith.constant 0 : i32
    return %c0_i32, %c0_i32_0 : i32, i32
  }
  func.func @transform_8(%arg0: i32, %arg1: i32, %arg2: memref<2xi32, #tpu.memory_space<smem>>) -> (i32, i32) {
    %c0_i32 = arith.constant 0 : i32
    %c0_i32_0 = arith.constant 0 : i32
    %c0_i32_1 = arith.constant 0 : i32
    return %c0_i32, %c0_i32_0 : i32, i32
  }
  func.func @transform_9(%arg0: i32, %arg1: i32, %arg2: memref<2xi32, #tpu.memory_space<smem>>) -> (i32, i32) {
    %c0_i32 = arith.constant 0 : i32
    %c0_i32_0 = arith.constant 0 : i32
    %c0_i32_1 = arith.constant 0 : i32
    return %c0_i32, %c0_i32_0 : i32, i32
  }
  func.func @transform_10(%arg0: i32, %arg1: i32, %arg2: memref<2xi32, #tpu.memory_space<smem>>) -> (i32, i32) {
    %c0_i32 = arith.constant 0 : i32
    %c0_i32_0 = arith.constant 0 : i32
    %c0_i32_1 = arith.constant 0 : i32
    return %c0_i32, %c0_i32_0 : i32, i32
  }
  func.func @transform_11(%arg0: i32, %arg1: i32, %arg2: memref<2xi32, #tpu.memory_space<smem>>) -> (i32, i32) {
    %c0_i32 = arith.constant 0 : i32
    %c0_i32_0 = arith.constant 0 : i32
    %c0_i32_1 = arith.constant 0 : i32
    return %c0_i32, %c0_i32_0 : i32, i32
  }
  func.func @transform_12(%arg0: i32, %arg1: i32, %arg2: memref<2xi32, #tpu.memory_space<smem>>) -> (i32, i32) {
    %c0_i32 = arith.constant 0 : i32
    %c0_i32_0 = arith.constant 0 : i32
    %c0_i32_1 = arith.constant 0 : i32
    return %c0_i32, %c0_i32_0 : i32, i32
  }
  func.func @transform_13(%arg0: i32, %arg1: i32, %arg2: memref<2xi32, #tpu.memory_space<smem>>) -> (i32, i32) {
    %c0_i32 = arith.constant 0 : i32
    %c0_i32_0 = arith.constant 0 : i32
    %c0_i32_1 = arith.constant 0 : i32
    return %c0_i32, %c0_i32_0 : i32, i32
  }
}

</mosaic_0001>

<bundles_post_ra>
// kernel: tpu_custom_call.1
= control target key start
LH: loop header
LB: loop body
LE: loop exit
PB: predicated region body
PF: predicated region fallthrough
CT: control target
= control target key end

     0   :  { %s8568_s29 = smov [#allocation4]   ;;  %s10822_s0 = inlined_call_operand.hbm [shape: s32[2], index: 0, kind: input, shape index: {}]   ;;  %s10823_s1 = inlined_call_operand.hbm [shape: bf16[512,256], index: 1, kind: input, shape index: {}]   ;;  %s10824_s2 = inlined_call_operand.hbm [shape: bf16[512,384], index: 2, kind: input, shape index: {}]   ;;  %s10825_s3 = inlined_call_operand.hbm [shape: f32[512,384], index: 3, kind: input, shape index: {}]   ;;  %s10826_s4 = inlined_call_operand.hbm [shape: bf16[4,512], index: 4, kind: input, shape index: {}]   ;;  %s10827_s5 = inlined_call_operand.hbm [shape: f32[4,384], index: 5, kind: input, shape index: {}]   ;;  %s10828_s6 = inlined_call_operand.hbm [shape: bf16[384,384], index: 6, kind: input, shape index: {}]   ;;  %s10829_s7 = inlined_call_operand.vmem [shape: f32[1,384], index: 7, kind: input, shape index: {}]   ;;  %s10830_s8 = inlined_call_operand.hbm [shape: bf16[384,384], index: 8, kind: input, shape index: {}]   ;;  %s10831_s9 = inlined_call_operand.vmem [shape: f32[1,384], index: 9, kind: input, shape index: {}]   ;;  %s10832_s10 = inlined_call_operand.hbm [shape: bf16[384,384], index: 10, kind: input, shape index: {}]   ;;  %s10833_s11 = inlined_call_operand.vmem [shape: f32[1,384], index: 11, kind: input, shape index: {}]   ;;  %s10834_s12 = inlined_call_operand.hbm [shape: bf16[384,384], index: 12, kind: input, shape index: {}]   ;;  %s10835_s13 = inlined_call_operand.vmem [shape: f32[1,384], index: 13, kind: input, shape index: {}]   ;;  %s10836_s14 = inlined_call_operand.hbm [shape: f32[4,384], index: 14, kind: output, shape index: {}]  }
   0x1   :  { %10868 = sst [smem:[#allocation79_spill]] %s10823_s1 }
   0x2   :  { %10869 = sst [smem:[#allocation80_spill]] %s10824_s2 }
   0x3   :  { %10870 = sst [smem:[#allocation81_spill]] %s10825_s3 }
   0x4   :  { %10871 = sst [smem:[#allocation82_spill]] %s10826_s4 }
   0x5   :  { %10872 = sst [smem:[#allocation83_spill]] %s10827_s5 }
   0x6   :  { %10873 = sst [smem:[#allocation84_spill]] %s10828_s6 }
   0x7   :  { %10874 = sst [smem:[#allocation85_spill]] %s10829_s7 }
   0x8   :  { %10875 = sst [smem:[#allocation86_spill]] %s10830_s8 }
   0x9   :  { %10876 = sst [smem:[#allocation87_spill]] %s10831_s9 }
   0xa   :  { %10877 = sst [smem:[#allocation88_spill]] %s10832_s10 }
   0xb   :  { %10878 = sst [smem:[#allocation89_spill]] %s10833_s11 }
   0xc   :  { %10879 = sst [smem:[#allocation90_spill]] %s10835_s13 }
   0xd   :  { %10880 = sst [smem:[#allocation91_spill]] %s10836_s14 }
   0xe   :  { %20 = dma.hbm_to_smem %s10822_s0, 16, %s8568_s29, [#allocation3] }
   0xf   :  { %8498 = dma.done.wait [#allocation3], 16 }
  0x10   :  { %8499 = vsyncadd [#allocation3], 4294967280 }
  0x11   :  { %22 = sfence }
  0x12   :  { %23 = vsyncpa [#allocation6], 0 }
  0x13   :  { %25 = vsyncpa [#allocation6 + $0x1], 0 }
  0x14   :  { %26 = vsyncpa [#allocation9], 0 }
  0x15   :  { %28 = vsyncpa [#allocation9 + $0x1], 0 }
  0x16   :  { %29 = vsyncpa [#allocation12], 0 }
  0x17   :  { %31 = vsyncpa [#allocation12 + $0x1], 0 }
  0x18   :  { %32 = vsyncpa [#allocation15], 0 }
  0x19   :  { %33 = vsyncpa [#allocation18], 0 }
  0x1a   :  { %34 = vsyncpa [#allocation7], 0  ;;  %s8668_s16 = smov 0   ;;  %s8670_s17 = smov 0  }
  0x1b   :  { %s8672_s18 = smov 0   ;;  %s8674_s19 = smov 0  }
  0x1c   :  { %s8676_s0 = smov 0   ;;  %s8678_s20 = smov 0  }
  0x1d   :  { %s8680_s21 = smov 0   ;;  %s8682_s22 = smov 0  }
  0x1e   :  { %s8684_s23 = smov 0  }
  0x1f LB: > { %10881 = sst [smem:[#allocation32_spill]] %s8538_s17  ;;  %s8714_s24 = sadd.s32 4294967295, %s8566_s23   ;;  %s8566_s23 = sphi %s8684_s23, %s40_s23   ;;  %s8562_s22 = sphi %s8682_s22, %s11062_s22   ;;  %s8558_s21 = sphi %s8680_s21, %s11061_s21   ;;  %s8554_s20 = sphi %s8678_s20, %s11060_s20   ;;  %s8550_s0 = sphi %s8676_s0, %s11059_s0   ;;  %s8546_s19 = sphi %s8674_s19, %s11058_s19   ;;  %s8542_s18 = sphi %s8672_s18, %s11057_s18   ;;  %s8538_s17 = sphi %s8670_s17, %s11056_s17   ;;  %s8534_s16 = sphi %s8668_s16, %s11054_s16  }
  0x20   : > { %10882 = sst [smem:[#allocation33_spill]] %s8558_s21  ;;  %p6506_p0 = scmp.ge.s32.totalorder %s8566_s23, 1 }
  0x21   : > { %p10837_p1 = scmp.eq.s32.totalorder %s8714_s24, 0  ;;  %p377_p2 = scmp.lt.s32.totalorder %s8566_s23, 3 }
  0x22   : > { %s8569_s26 = smov [#allocation13]   ;;  %s8570_s28 = smov [#allocation14]  }
  0x23   : > { %p8719_p3 = pnand %p6506_p0, %p377_p2  ;;  %s390_s27 = sshll.u32 %s8569_s26, 4  ;;  %s391_s27 = int_to_ptr.vmem [resolvable:$true] %s390_s27 }
  0x24   : > { %s400_s29 = sshll.u32 %s8570_s28, 4  ;;  %s8571_s15 = smov [#allocation17]   ;;  %s401_s29 = int_to_ptr.vmem [resolvable:$true] %s400_s29 }
  0x25   : > { %s10883_s25 = scalar_select %p8719_p3, 1, 0 }
  0x26   : > { %p7558_p4 = pneg %p8719_p3  ;;  %s432_s14 = sshll.u32 %s8571_s15, 4  ;;  %s433_s14 = int_to_ptr.vmem [resolvable:$true] %s432_s14 }
  0x27   : > { %10884 = sst [smem:[#allocation34_spill]] %s10883_s25  ;;  %s8207_s26 = scalar_lea.vmem %s391_s27, 192 }
  0x28   : > { %p8727_p5 = pnand %p7558_p4, %p10837_p1  ;;  %p8208_p7 = scmp.ne.s32.totalorder %s391_s27, %s8207_s26 }
  0x29   : > { %p8215_p10 = scmp.lt.s32.totalorder %s391_s27, %s391_s27  ;;  %p8216_p11 = scmp.lt.s32.totalorder %s8207_s26, %s8207_s26 }
  0x2a   : > { %p8733_p6 = pneg %p8727_p5 }
  0x2b   : > { %p8217_p12 = por %p8216_p11, %p8215_p10 }
  0x2c   : > { %p8210_p8 = pnand %p8208_p7, %p8733_p6 }
  0x2e   : > { %p8211_p9 = pneg %p8210_p8 }
  0x30   : > { %p8218_p13 = pnand %p8217_p12, %p8211_p9 }
  0x32   : > { %8221 = shalt.err (!%p8218_p13)
}
  0x33   : > { %s10887_s5 = sld [smem:[#allocation83_spill]]  ;;  %s8233_s11 = scalar_lea.vmem %s401_s29, 9216 }
  0x34   : > { %p8234_p0 = scmp.ne.s32.totalorder %s401_s29, %s8233_s11  ;;  %p8241_p1 = scmp.lt.s32.totalorder %s401_s29, %s401_s29 }
  0x35   : > { %p8242_p7 = scmp.lt.s32.totalorder %s8233_s11, %s8233_s11 }
  0x36   : > { %p8236_p2 = pnand %p8234_p0, %p8733_p6 }
  0x37   : > { %p8243_p8 = por %p8242_p7, %p8241_p1 }
  0x38   : > { %p8237_p4 = pneg %p8236_p2 }
  0x39   : > { %7561 = dma.hbm_to_vmem [thread:$0]  (!%p8727_p5), %s10887_s5, 192, %s391_s27, [#allocation12]  }
  0x3a   : > { %p8244_p3 = pnand %p8243_p8, %p8237_p4 }
  0x3c   : > { %8247 = shalt.err (!%p8244_p3)
}
  0x3d   : > { %s10839_s26 = smov 192   ;;  %s10841_s9 = smov 12  }
  0x3e   : > { %s10888_s6 = sld [smem:[#allocation84_spill]]  ;;  %s8259_s15 = scalar_lea.vmem %s433_s14, 9216 }
  0x3f   : > { %p8260_p9 = scmp.ne.s32.totalorder %s433_s14, %s8259_s15  ;;  %p8267_p11 = scmp.lt.s32.totalorder %s433_s14, %s433_s14 }
  0x40   : > { %p8268_p3 = scmp.lt.s32.totalorder %s8259_s15, %s8259_s15 }
  0x41   : > { %p8262_p10 = pnand %p8260_p9, %p8733_p6 }
  0x42   : > { %p8269_p12 = por %p8268_p3, %p8267_p11 }
  0x43   : > { %p8263_p1 = pneg %p8262_p10 }
  0x44   : > { %7564 = dma.hbm_to_vmem [thread:$0]  (!%p8727_p5), %s10888_s6, 9216, %s401_s29, [#allocation15], %s10839_s26, %s10839_s26, %s10841_s9  }
  0x45   : > { %p8270_p13 = pnand %p8269_p12, %p8263_p1 }
  0x47   : > { %8273 = shalt.err (!%p8270_p13)
}
  0x48   : > { %s10889_s10 = sld [smem:[#allocation88_spill]]  ;;  %s52_s29 = sadd.s32 1, %s8562_s22 }
  0x49   : > { %p54_p0 = scmp.ge.s32.totalorder %s52_s29, 2  ;;  %p10849_p2 = scmp.eq.s32.totalorder %s8566_s23, 0 }
  0x4a   : > { %s84_s28 = sld [smem:[#allocation4 + %s8562_s22]]  ;;  %s91_s5 = sadd.s32 1, %s8542_s18 }
  0x4b   : > { %s11064_s29 = smov (%p54_p0, %s52_s29), 0  ;;  %p98_p4 = scmp.ne.s32.totalorder %s8542_s18, %s8538_s17 }
  0x4c   : > { %p104_p7 = scmp.ne.s32.totalorder %s8538_s17, %s8534_s16  ;;  %s86_s27 = sld [smem:[#allocation4 + %s11064_s29]] }
  0x4d   : > { %p10848_p8 = scmp.lt.s32.totalorder %s8566_s23, 2  ;;  %p8778_p9 = por %p98_p4, %p10849_p2 }
  0x4e   : > { %7570 = dma.hbm_to_vmem [thread:$0]  (!%p8727_p5), %s10889_s10, 9216, %s433_s14, [#allocation18], %s10839_s26, %s10839_s26, %s10841_s9  }
  0x4f   : > { %p10891_p10 = scmp.eq.s32.totalorder %s8714_s24, 0  ;;  %s491_s16 = sand.u32 1, %s8542_s18  }
  0x50   : > { %s7518_s26 = smul.u32 384, %s491_s16  ;;  %p8796_p11 = pnand %p10848_p8, %p8778_p9 }
  0x51   : > { %p8784_p1 = por %p104_p7, %p10891_p10  ;;  %s8574_s17 = smov [#allocation16]  }
  0x52   : > { %s7535_s9 = scalar_select %p8778_p9, [#allocation4], [#allocation21] }
  0x53   : > { %s10892_s15 = scalar_select %p8784_p1, 1, 0 }
  0x54   : > { %s88_s10 = ssub.s32 %s84_s28, %s86_s27  ;;  %s493_s7 = scalar_lea.vmem [#allocation8], %s7518_s26 }
  0x55   : > { %10893 = sst [smem:[#allocation35_spill]] %s10892_s15  ;;  %s503_s21 = sshll.u32 %s493_s7, 4  ;;  %s8800_s21 = int_to_ptr.vmem [resolvable:$true] %s503_s21 }
  0x56   : > { %p89_p3 = scmp.eq.s32.totalorder %s88_s10, 0  ;;  %s11066_s9 = smov (!%p10848_p8, %s7535_s9), [#allocation22] }
  0x57   : > { %s7536_s15 = scalar_select %p8778_p9, %s8562_s22, 0 }
  0x58   : > { %s8806_s11 = scalar_select %p89_p3, %s8542_s18, %s91_s5  }
  0x59   : > { %s11068_s15 = smov (!%p10848_p8, %s7536_s15), 0  ;;  %s416_s25 = sshll.u32 %s8574_s17, 4  ;;  %s417_s25 = int_to_ptr.vmem [resolvable:$true] %s416_s25 }
  0x5a   : > { %s8812_s16 = sld [smem:[%s11066_s9 + %s11068_s15]]  ;;  %s8285_s4 = scalar_lea.vmem %s417_s25, 9216 }
  0x5b   : > { %p8286_p12 = scmp.ne.s32.totalorder %s417_s25, %s8285_s4  ;;  %p8293_p4 = scmp.lt.s32.totalorder %s417_s25, %s417_s25 }
  0x5c   : > { %p8294_p7 = scmp.lt.s32.totalorder %s8285_s4, %s8285_s4 }
  0x5d   : > { %p8288_p13 = pnand %p8286_p12, %p8733_p6 }
  0x5e   : > { %p8295_p10 = por %p8294_p7, %p8293_p4 }
  0x5f   : > { %p8289_p0 = pneg %p8288_p13 }
  0x61   : > { %p8296_p9 = pnand %p8295_p10, %p8289_p0 }
  0x63   : > { %8299 = shalt.err (!%p8296_p9)
}
  0x64   : > { %s10895_s7 = smov 12   ;;  %s10896_s10 = smov 192  }
  0x65   : > { %s10897_s8 = sld [smem:[#allocation86_spill]]  ;;  %s8575_s17 = smov [#allocation19]  }
  0x66   : > { %s448_s28 = sshll.u32 %s8575_s17, 4  ;;  %s449_s28 = int_to_ptr.vmem [resolvable:$true] %s448_s28 }
  0x67   : > { %s8311_s5 = scalar_lea.vmem %s449_s28, 9216  ;;  %p8319_p0 = scmp.lt.s32.totalorder %s449_s28, %s449_s28 }
  0x68   : > { %p8312_p3 = scmp.ne.s32.totalorder %s449_s28, %s8311_s5  ;;  %p8320_p4 = scmp.lt.s32.totalorder %s8311_s5, %s8311_s5 }
  0x6a   : > { %p8314_p12 = pnand %p8312_p3, %p8733_p6  ;;  %p8321_p7 = por %p8320_p4, %p8319_p0 }
  0x6b   : > { %7567 = dma.hbm_to_vmem [thread:$0]  (!%p8727_p5), %s10897_s8, 9216, %s417_s25, [#allocation15], %s10896_s10, %s10896_s10, %s10895_s7  }
  0x6c   : > { %p8315_p13 = pneg %p8314_p12 }
  0x6e   : > { %p8322_p10 = pnand %p8321_p7, %p8315_p13 }
  0x70   : > { %8325 = shalt.err (!%p8322_p10)
}
  0x71   : > { %7573 = dma.hbm_to_vmem [thread:$0]  (!%p8727_p5), %s10834_s12, 9216, %s449_s28, [#allocation18], %s10896_s10, %s10896_s10, %s10895_s7  }
  0x72   : > { %s7519_s13 = smul.u32 6144, %s8812_s16  ;;  %s10898_s2 = sld [smem:[#allocation80_spill]] }
  0x73   : > { %s10899_s9 = sand.u32 1, %s8566_s23   ;;  %p8328_p9 = pneg %p8796_p11 }
  0x74   : > { %s8842_s30 = scalar_lea.sflag [#allocation9], %s10899_s9 }
  0x78   : > { %s8838_s15 = scalar_lea.hbm %s10898_s2, %s7519_s13  ;;  %s8331_s16 = scalar_lea.hbm %s10898_s2, 12288 }
  0x79   : > { %s8326_s26 = scalar_lea.hbm %s8838_s15, 6144  ;;  %p8332_p5 = scmp.lt.s32.totalorder %s8838_s15, %s10898_s2 }
  0x7a   : > { %p8327_p6 = scmp.ne.s32.totalorder %s8838_s15, %s8326_s26  ;;  %p8333_p13 = scmp.lt.s32.totalorder %s8331_s16, %s8326_s26 }
  0x7c   : > { %p8329_p3 = pnand %p8328_p9, %p8327_p6  ;;  %p8334_p0 = por %p8333_p13, %p8332_p5 }
  0x7e   : > { %p8330_p12 = pneg %p8329_p3 }
  0x80   : > { %p8335_p4 = pnand %p8334_p0, %p8330_p12 }
  0x82   : > { %8338 = shalt.err (!%p8335_p4)
}
  0x83   : > { %s8339_s25 = scalar_lea.vmem %s8800_s21, 6144  ;;  %s8576_s13 = smov [#allocation8]  }
  0x84   : > { %p8340_p7 = scmp.ne.s32.totalorder %s8800_s21, %s8339_s25  ;;  %s8344_s27 = sshll.u32 %s8576_s13, 4  ;;  %s8345_s27 = int_to_ptr.vmem [resolvable:$false] %s8344_s27 }
  0x85   : > { %s8346_s14 = scalar_lea.vmem %s8345_s27, 12288  ;;  %p8347_p3 = scmp.lt.s32.totalorder %s8800_s21, %s8345_s27 }
  0x86   : > { %p8342_p10 = pnand %p8340_p7, %p8328_p9  ;;  %p8348_p8 = scmp.lt.s32.totalorder %s8346_s14, %s8339_s25 }
  0x88   : > { %p8343_p6 = pneg %p8342_p10  ;;  %p8349_p2 = por %p8348_p8, %p8347_p3 }
  0x8a   : > { %p8350_p1 = pnand %p8349_p2, %p8343_p6 }
  0x8c   : > { %8353 = shalt.err (!%p8350_p1)
}
  0x8d   : > { %7582 = dma.hbm_to_vmem [thread:$0]  (!%p8796_p11), %s8838_s15, 6144, %s8800_s21, %s8842_s30, %s10896_s10, %s10896_s10, %s10895_s7  }
  0x8e   : > { %s56_s6 = ssub.s32 %s8562_s22, %s11064_s29  ;;  %s61_s9 = sadd.s32 1, %s8554_s20 }
  0x8f   : > { %p59_p2 = scmp.eq.s32.totalorder %s56_s6, 0  ;;  %p68_p8 = scmp.ne.s32.totalorder %s8554_s20, %s8550_s0 }
  0x90   : > { %p74_p1 = scmp.ne.s32.totalorder %s8550_s0, %s8546_s19  ;;  %s8874_s26 = sand.u32 1, %s8554_s20  }
  0x91   : > { %s8877_s17 = scalar_select %p59_p2, %s8554_s20, %s61_s9  }
  0x92   : > { %p10900_p9 = scmp.eq.s32.totalorder %s8566_s23, 0  ;;  %p10901_p5 = scmp.eq.s32.totalorder %s8714_s24, 0 }
  0x93   : > { %s6513_s21 = sshll.u32 %s8874_s26, 8  ;;  %s6910_s7 = sshll.u32 %s8562_s22, 12 }
  0x94   : > { %p70_p12 = por %p10900_p9, %p68_p8  ;;  %p8883_p13 = por %p10901_p5, %p74_p1 }
  0x95   : > { %s10903_s1 = sld [smem:[#allocation79_spill]]  ;;  %s469_s16 = scalar_lea.vmem [#allocation5], %s6513_s21 }
  0x96   : > { %s479_s5 = sshll.u32 %s469_s16, 4  ;;  %p10904_p11 = scmp.lt.s32.totalorder %s8566_s23, 2  ;;  %s480_s5 = int_to_ptr.vmem [resolvable:$true] %s479_s5 }
  0x97   : > { %s7520_s25 = smul.u32 768, %s8874_s26  ;;  %s466_s13 = scalar_lea.sflag [#allocation6], %s8874_s26 }
  0x98   : > { %p8894_p0 = pnand %p10904_p11, %p70_p12  ;;  %s8367_s27 = scalar_lea.vmem %s480_s5, 4096 }
  0x99   : > { %p8368_p7 = scmp.ne.s32.totalorder %s480_s5, %s8367_s27  ;;  %s8577_s14 = smov [#allocation5]  }
  0x9a   : > { %p8356_p4 = pneg %p8894_p0  ;;  %s8372_s6 = sshll.u32 %s8577_s14, 4  ;;  %s8373_s6 = int_to_ptr.vmem [resolvable:$false] %s8372_s6 }
  0x9b   : > { %s478_s19 = scalar_lea.hbm %s10903_s1, %s6910_s7  ;;  %s8374_s9 = scalar_lea.vmem %s8373_s6, 8192 }
  0x9c   : > { %p8370_p10 = pnand %p8368_p7, %p8356_p4  ;;  %p8375_p3 = scmp.lt.s32.totalorder %s480_s5, %s8373_s6 }
  0x9d   : > { %p8376_p2 = scmp.lt.s32.totalorder %s8374_s9, %s8367_s27 }
  0x9e   : > { %p8371_p6 = pneg %p8370_p10 }
  0x9f   : > { %p8377_p8 = por %p8376_p2, %p8375_p3 }
  0xa1   : > { %p8378_p1 = pnand %p8377_p8, %p8371_p6 }
  0xa3   : > { %8381 = shalt.err (!%p8378_p1)
}
  0xa4   : > { %s8578_s21 = smov 128   ;;  %s8579_s7 = smov 8  }
  0xa5   : > { %7577 = dma.hbm_to_vmem [thread:$0]  (!%p8894_p0), %s478_s19, 4096, %s480_s5, %s466_s13, %s8578_s21, %s8578_s21, %s8579_s7  }
  0xa6   : > { %s7521_s10 = smul.u32 12288, %s8562_s22  ;;  %s517_s15 = scalar_lea.vmem [#allocation10], %s7520_s25 }
  0xa7   : > { %s525_s16 = sshll.u32 %s517_s15, 4  ;;  %s10906_s3 = sld [smem:[#allocation81_spill]]  ;;  %s526_s16 = int_to_ptr.vmem [resolvable:$true] %s525_s16 }
  0xa8   : > { %s8395_s6 = scalar_lea.vmem %s526_s16, 12288  ;;  %s8580_s27 = smov [#allocation10]  }
  0xa9   : > { %p8396_p9 = scmp.ne.s32.totalorder %s526_s16, %s8395_s6  ;;  %s8400_s9 = sshll.u32 %s8580_s27, 4  ;;  %s8401_s9 = int_to_ptr.vmem [resolvable:$false] %s8400_s9 }
  0xaa   : > { %s8402_s8 = scalar_lea.vmem %s8401_s9, 24576  ;;  %p8403_p11 = scmp.lt.s32.totalorder %s526_s16, %s8401_s9 }
  0xab   : > { %p8398_p12 = pnand %p8396_p9, %p8356_p4  ;;  %p8404_p7 = scmp.lt.s32.totalorder %s8402_s8, %s8395_s6 }
  0xad   : > { %s524_s14 = scalar_lea.hbm %s10906_s3, %s7521_s10  ;;  %p8399_p5 = pneg %p8398_p12 }
  0xae   : > { %p8405_p10 = por %p8404_p7, %p8403_p11 }
  0xb0   : > { %p8406_p6 = pnand %p8405_p10, %p8399_p5 }
  0xb2   : > { %8409 = shalt.err (!%p8406_p6)
}
  0xb3   : > { %s8581_s19 = smov 384   ;;  %s8582_s1 = smov 24  }
  0xb4   : > { %7585 = dma.hbm_to_vmem [thread:$0]  (!%p8894_p0), %s524_s14, 12288, %s526_s16, %s8842_s30, %s8581_s19, %s8581_s19, %s8582_s1  }
  0xb5   : > { %s6523_s2 = sshll.u32 %s8874_s26, 2  ;;  %s6911_s5 = sshll.u32 %s8562_s22, 6 }
  0xb6   : > { %s10907_s21 = sld [smem:[#allocation82_spill]]  ;;  %s539_s8 = scalar_lea.vmem [#allocation11], %s6523_s2 }
  0xb7   : > { %s547_s10 = sshll.u32 %s539_s8, 4  ;;  %s10908_s15 = sand.u32 1, %s8566_s23   ;;  %s548_s10 = int_to_ptr.vmem [resolvable:$true] %s547_s10 }
  0xb8   : > { %s536_s6 = scalar_lea.sflag [#allocation12], %s10908_s15  ;;  %s8423_s27 = scalar_lea.vmem %s548_s10, 64 }
  0xb9   : > { %p8424_p3 = scmp.ne.s32.totalorder %s548_s10, %s8423_s27  ;;  %s8583_s9 = smov [#allocation11]  }
  0xba   : > { %s8428_s3 = sshll.u32 %s8583_s9, 4  ;;  %s8429_s3 = int_to_ptr.vmem [resolvable:$false] %s8428_s3 }
  0xbb   : > { %p8426_p2 = pnand %p8424_p3, %p8356_p4  ;;  %s8430_s30 = scalar_lea.vmem %s8429_s3, 128 }
  0xbc   : > { %s545_s7 = scalar_lea.hbm %s10907_s21, %s6911_s5  ;;  %p8431_p1 = scmp.lt.s32.totalorder %s548_s10, %s8429_s3 }
  0xbd   : > { %p8427_p8 = pneg %p8426_p2  ;;  %p8432_p9 = scmp.lt.s32.totalorder %s8430_s30, %s8423_s27 }
  0xbf   : > { %p8433_p12 = por %p8432_p9, %p8431_p1 }
  0xc1   : > { %p8434_p5 = pnand %p8433_p12, %p8427_p8 }
  0xc3   : > { %8437 = shalt.err (!%p8434_p5)
}
  0xc4   : > { %7588 = dma.hbm_to_vmem [thread:$0]  (!%p8894_p0), %s545_s7, 64, %s548_s10, %s536_s6  }
  0xc5   : > { %s10909_s26 = sld [smem:[#allocation34_spill]] }
  0xcb   : > { %p10910_p11 = scmp.ne.s32.totalorder %s10909_s26, 0 }
  0xcd   : > { %556 = sbr.rel (%p10910_p11) target bundleno = 1980 (0x7bc), region = 72 }
  0xd2   : > { %s558_s16 = sand.u32 1, %s8550_s0  }
  0xd3   : > { %s6527_s14 = sshll.u32 %s558_s16, 8  ;;  %s559_s19 = scalar_lea.sflag [#allocation6], %s558_s16 }
  0xd4   : > { %s8932_s1 = scalar_lea.vmem [#allocation5], %s6527_s14 }
  0xd5   : > { %8501 = dma.done.wait (%p8883_p13), %s559_s19, 4096  }
  0xd6   : > { %8503 = vsyncadd (%p8883_p13), %s559_s19, 4294963200  ;;  %s10911_s3 = sld [smem:[#allocation32_spill]]  ;;  %s567_s4 = sand.u32 1, %s8714_s24  }
  0xd7   : > { %s10912_s2 = sld [smem:[#allocation35_spill]]  ;;  %s568_s13 = scalar_lea.sflag [#allocation9], %s567_s4 }
  0xdc   : > { %s569_s5 = sand.u32 1, %s10911_s3  }
  0xdd   : > { %s7522_s25 = smul.u32 384, %s569_s5  ;;  %p10913_p0 = scmp.ne.s32.totalorder %s10912_s2, 0 }
  0xdf   : > { %s8940_s21 = scalar_lea.vmem [#allocation8], %s7522_s25 }
  0xe0   : > { %8505 = dma.done.wait (%p10913_p0), %s568_s13, 6144  }
  0xe1   : > { %8507 = vsyncadd (%p10913_p0), %s568_s13, 4294961152  ;;  %s7523_s7 = smul.u32 768, %s558_s16 }
  0xe3   : > { %s8946_s8 = scalar_lea.vmem [#allocation10], %s7523_s7 }
  0xe4   : > { %8509 = dma.done.wait (%p8883_p13), %s568_s13, 12288  }
  0xe5   : > { %8511 = vsyncadd (%p8883_p13), %s568_s13, 4294955008  ;;  %s6528_s10 = sshll.u32 %s558_s16, 2  ;;  %s586_s15 = scalar_lea.sflag [#allocation12], %s567_s4 }
  0xe6   : > { %s8952_s6 = scalar_lea.vmem [#allocation11], %s6528_s10 }
  0xe7   : > { %8513 = dma.done.wait (%p8883_p13), %s586_s15, 64  }
  0xe8   : > { %8515 = vsyncadd (%p8883_p13), %s586_s15, 4294967232  ;;  %p10914_p4 = scmp.eq.s32.totalorder %s8714_s24, 0 }
  0xea   : > { %8517 = dma.done.wait (%p10914_p4), [#allocation12], 192   ;;  %p10915_p7 = pmov %p10914_p4 }
  0xeb   : > { %p10916_p10 = pmov %p10914_p4 }
  0xec   : > { %8519 = vsyncadd (%p10915_p7), [#allocation12], 4294967104 }
  0xed   : > { %8521 = dma.done.wait (%p10916_p10), [#allocation15], 18432   ;;  %p10917_p6 = pmov %p10914_p4 }
  0xee   : > { %p10918_p3 = pmov %p10914_p4 }
  0xef   : > { %8523 = vsyncadd (%p10917_p6), [#allocation15], 4294948864 }
  0xf0   : > { %8525 = dma.done.wait (%p10918_p3), [#allocation18], 18432   ;;  %p10919_p2 = pmov %p10918_p3 }
  0xf1   : > { %s10920_s28 = sld [smem:[#allocation33_spill]] }
  0xf2   : > { %8527 = vsyncadd (%p10919_p2), [#allocation18], 4294948864 }
  0xf7   : > { %p670_p13 = scmp.eq.s32.totalorder %s10920_s28, 0 }
  0xf8   : > { %v8584_v0 = vmov (%p670_p13), 0.0  }
  0xf9   : > { %675 = sbr.rel (!%p670_p13) target bundleno = 254 (0xfe), region = 112  ;;  %676 = vst [vmem:[#allocation20] sm:$0xff] (%p670_p13), %v8584_v0  ;;  %677 = vst [vmem:[#allocation20 + $0x8] sm:$0xf] (%p670_p13), %v8584_v0 }
  0xfe PF: > { %v7692_v1 = vld [vmem:[%s8940_s21 + $0xac] ss:$12 sps:$4 sm:$0xff]   ;;  %v7694_v2 = vld [vmem:[%s8940_s21 + $0x170] ss:$12 sps:$4 sm:$0xff]   ;;  %v7695_v3 = vld [vmem:[%s8940_s21 + $0xa8] ss:$12 sps:$4 sm:$0xff]  }
  0xff   : > { %1385 = vmatprep.subr.bf16.mxu0 %v7692_v1  ;;  %6914 = vmatprep.subr.bf16.mxu1 %v7694_v2  ;;  %v7696_v4 = vld [vmem:[%s8940_s21 + $0xb0] ss:$12 sps:$4 sm:$0xff]   ;;  %v7697_v5 = vld [vmem:[%s8940_s21 + $0x94] ss:$12 sps:$4 sm:$0xff]   ;;  %v7699_v6 = vld [vmem:[%s8940_s21 + $0x158] ss:$12 sps:$4 sm:$0xff]  }
 0x100   : > { %1386 = vmatpush1.bf16.msra.mxu0 %v7695_v3  ;;  %6915 = vmatpush3.bf16.msra.mxu1 %v7696_v4  ;;  %v7700_v7 = vld [vmem:[%s8940_s21 + $0x90] ss:$12 sps:$4 sm:$0xff]   ;;  %v7701_v8 = vld [vmem:[%s8940_s21 + $0x98] ss:$12 sps:$4 sm:$0xff]   ;;  %v7704_v10 = vld [vmem:[%s8940_s21 + $0x140] ss:$12 sps:$4 sm:$0xff]  }
 0x101   : > { %1387 = vmatprep.subr.bf16.mxu0 %v7697_v5  ;;  %6916 = vmatprep.subr.bf16.mxu1 %v7699_v6  ;;  %v7702_v9 = vld [vmem:[%s8940_s21 + $0x7c] ss:$12 sps:$4 sm:$0xff]   ;;  %v7705_v11 = vld [vmem:[%s8940_s21 + $0x78] ss:$12 sps:$4 sm:$0xff]   ;;  %v7706_v12 = vld [vmem:[%s8940_s21 + $0x80] ss:$12 sps:$4 sm:$0xff]  }
 0x102   : > { %v7707_v13 = vld [vmem:[%s8940_s21 + $0x64] ss:$12 sps:$4 sm:$0xff]   ;;  %v7709_v14 = vld [vmem:[%s8940_s21 + $0x128] ss:$12 sps:$4 sm:$0xff]   ;;  %v7710_v15 = vld [vmem:[%s8940_s21 + $0x60] ss:$12 sps:$4 sm:$0xff]  }
 0x103   : > { %v7711_v16 = vld [vmem:[%s8940_s21 + $0x68] ss:$12 sps:$4 sm:$0xff]   ;;  %v7712_v17 = vld [vmem:[%s8940_s21 + $0x4c] ss:$12 sps:$4 sm:$0xff]   ;;  %v7714_v18 = vld [vmem:[%s8940_s21 + $0x110] ss:$12 sps:$4 sm:$0xff]  }
 0x104   : > { %1388 = vmatpush1.bf16.msra.mxu0 %v7700_v7  ;;  %6917 = vmatpush3.bf16.msra.mxu1 %v7701_v8  ;;  %v7715_v19 = vld [vmem:[%s8940_s21 + $0x48] ss:$12 sps:$4 sm:$0xff]   ;;  %v7716_v20 = vld [vmem:[%s8940_s21 + $0x50] ss:$12 sps:$4 sm:$0xff]   ;;  %v7719_v22 = vld [vmem:[%s8940_s21 + $0xf8] ss:$12 sps:$4 sm:$0xff]  }
 0x105   : > { %1389 = vmatprep.subr.bf16.mxu0 %v7702_v9  ;;  %6918 = vmatprep.subr.bf16.mxu1 %v7704_v10  ;;  %v7717_v21 = vld [vmem:[%s8940_s21 + $0x34] ss:$12 sps:$4 sm:$0xff]   ;;  %v7720_v23 = vld [vmem:[%s8940_s21 + $0x30] ss:$12 sps:$4 sm:$0xff]   ;;  %v7721_v24 = vld [vmem:[%s8940_s21 + $0x38] ss:$12 sps:$4 sm:$0xff]  }
 0x106   : > { %v7722_v25 = vld [vmem:[%s8940_s21 + $0x1c] ss:$12 sps:$4 sm:$0xff]   ;;  %v7724_v26 = vld [vmem:[%s8940_s21 + $0xe0] ss:$12 sps:$4 sm:$0xff]   ;;  %v7725_v27 = vld [vmem:[%s8940_s21 + $0x18] ss:$12 sps:$4 sm:$0xff]  }
 0x107   : > { %v7726_v28 = vld [vmem:[%s8940_s21 + $0x20] ss:$12 sps:$4 sm:$0xff]   ;;  %v7727_v29 = vld [vmem:[%s8940_s21 + $0x4] ss:$12 sps:$4 sm:$0xff]   ;;  %v7729_v30 = vld [vmem:[%s8940_s21 + $0xc8] ss:$12 sps:$4 sm:$0xff]  }
 0x108   : > { %1390 = vmatpush1.bf16.msra.mxu0 %v7705_v11  ;;  %6919 = vmatpush3.bf16.msra.mxu1 %v7706_v12  ;;  %v7730_v31 = vld [vmem:[%s8940_s21] ss:$12 sps:$4 sm:$0xff]   ;;  %v7731_v33 = vld [vmem:[%s8940_s21 + $0x8] ss:$12 sps:$4 sm:$0xff]   ;;  %v7740_v39 = vld [vmem:[%s8940_s21 + $0x150] ss:$12 sps:$4 sm:$0xff]  }
 0x109   : > { %1391 = vmatprep.subr.bf16.mxu0 %v7707_v13  ;;  %6920 = vmatprep.subr.bf16.mxu1 %v7709_v14  ;;  %v7734_v32 = vld [vmem:[%s8932_s1 + $0x4] ss:$8 sps:$4 sm:$0xff]   ;;  %v9006_v35 = vld [vmem:[%s8932_s1] ss:$8 sps:$4 sm:$0xff]   ;;  %v7741_v38 = vld [vmem:[%s8932_s1 + $0x14] ss:$8 sps:$4 sm:$0xff]  }
 0x10a   : > { %v7735_v34 = vld [vmem:[%s8940_s21 + $0x16c] ss:$12 sps:$4 sm:$0xff]   ;;  %1610 = vmatprep.mubr.bf16.mxu1 %v7734_v32  ;;  %1417 = vmatprep.mubr.bf16.mxu0 %v7734_v32  ;;  %v7737_v36 = vld [vmem:[%s8940_s21 + $0x168] ss:$12 sps:$4 sm:$0xff]   ;;  %v7747_v43 = vld [vmem:[%s8940_s21 + $0x124] ss:$12 sps:$4 sm:$0xff]  }
 0x10b   : > { %v7738_v37 = vld [vmem:[%s8940_s21 + $0x154] ss:$12 sps:$4 sm:$0xff]   ;;  %v7743_v40 = vld [vmem:[%s8940_s21 + $0x13c] ss:$12 sps:$4 sm:$0xff]   ;;  %v9015_v41 = vld [vmem:[%s8932_s1 + $0x10] ss:$8 sps:$4 sm:$0xff]  }
 0x10c   : > { %1392 = vmatpush1.bf16.msra.mxu0 %v7710_v15  ;;  %6921 = vmatpush3.bf16.msra.mxu1 %v7711_v16  ;;  %v7746_v42 = vld [vmem:[%s8940_s21 + $0x138] ss:$12 sps:$4 sm:$0xff]   ;;  %v7749_v45 = vld [vmem:[%s8940_s21 + $0x120] ss:$12 sps:$4 sm:$0xff]   ;;  %v7755_v48 = vld [vmem:[%s8940_s21 + $0x108] ss:$12 sps:$4 sm:$0xff]  }
 0x10d   : > { %1393 = vmatprep.subr.bf16.mxu0 %v7712_v17  ;;  %6922 = vmatprep.subr.bf16.mxu1 %v7714_v18  ;;  %v9020_v44 = vld [vmem:[%s8932_s1 + $0x24] ss:$8 sps:$4 sm:$0xff]   ;;  %v9027_v47 = vld [vmem:[%s8932_s1 + $0x20] ss:$8 sps:$4 sm:$0xff]   ;;  %v9032_v50 = vld [vmem:[%s8932_s1 + $0x34] ss:$8 sps:$4 sm:$0xff]  }
 0x10e   : > { %v7752_v46 = vld [vmem:[%s8940_s21 + $0x10c] ss:$12 sps:$4 sm:$0xff]   ;;  %v7756_v49 = vld [vmem:[%s8940_s21 + $0xf4] ss:$12 sps:$4 sm:$0xff]   ;;  %v7758_v51 = vld [vmem:[%s8940_s21 + $0xf0] ss:$12 sps:$4 sm:$0xff]  }
 0x10f   : > { %v7761_v52 = vld [vmem:[%s8940_s21 + $0xdc] ss:$12 sps:$4 sm:$0xff]   ;;  %v9039_v53 = vld [vmem:[%s8932_s1 + $0x30] ss:$8 sps:$4 sm:$0xff]   ;;  %v9044_v56 = vld [vmem:[%s8932_s1 + $0x44] ss:$8 sps:$4 sm:$0xff]  }
 0x110   : > { %1394 = vmatpush1.bf16.msra.mxu0 %v7715_v19  ;;  %6923 = vmatpush3.bf16.msra.mxu1 %v7716_v20  ;;  %v7764_v54 = vld [vmem:[%s8940_s21 + $0xd8] ss:$12 sps:$4 sm:$0xff]   ;;  %v7804_v57 = vld [vmem:[#allocation14 + $0xa8] ss:$12 sps:$4 sm:$0xff]   ;;  %v7806_v58 = vld [vmem:[#allocation14 + $0xac] ss:$12 sps:$4 sm:$0xff]  }
 0x111   : > { %1395 = vmatprep.subr.bf16.mxu0 %v7717_v21  ;;  %6924 = vmatprep.subr.bf16.mxu1 %v7719_v22  ;;  %v7765_v55 = vld [vmem:[%s8940_s21 + $0xc4] ss:$12 sps:$4 sm:$0xff]   ;;  %v7767_v59 = vld [vmem:[%s8940_s21 + $0xc0] ss:$12 sps:$4 sm:$0xff]   ;;  %v7812_v61 = vld [vmem:[#allocation14 + $0x94] ss:$12 sps:$4 sm:$0xff]  }
 0x112   : > { %v7809_v60 = vld [vmem:[#allocation14 + $0x22c] ss:$12 sps:$4 sm:$0xff]   ;;  %v7810_v63 = vld [vmem:[#allocation14 + $0x90] ss:$12 sps:$4 sm:$0xff]   ;;  %v7771_v0 = vld [vmem:[%s8932_s1 + $0x54] ss:$8 sps:$4 sm:$0xff]  }
 0x113   : > { %v7770_v62 = vld [vmem:[%s8932_s1 + $0x40] ss:$8 sps:$4 sm:$0xff]   ;;  %v7818_v3 = vld [vmem:[#allocation14 + $0x7c] ss:$12 sps:$4 sm:$0xff]   ;;  %v7816_v4 = vld [vmem:[#allocation14 + $0x78] ss:$12 sps:$4 sm:$0xff]  }
 0x114   : > { %1396 = vmatpush1.bf16.msra.mxu0 %v7720_v23  ;;  %6925 = vmatpush3.bf16.msra.mxu1 %v7721_v24  ;;  %v7807_v1 = vld [vmem:[#allocation14 + $0x228] ss:$12 sps:$4 sm:$0xff]   ;;  %v7824_v5 = vld [vmem:[#allocation14 + $0x64] ss:$12 sps:$4 sm:$0xff]   ;;  %v7822_v11 = vld [vmem:[#allocation14 + $0x60] ss:$12 sps:$4 sm:$0xff]  }
 0x115   : > { %1397 = vmatprep.subr.bf16.mxu0 %v7722_v25  ;;  %6926 = vmatprep.subr.bf16.mxu1 %v7724_v26  ;;  %v7815_v2 = vld [vmem:[#allocation14 + $0x214] ss:$12 sps:$4 sm:$0xff]   ;;  %v7813_v6 = vld [vmem:[#allocation14 + $0x210] ss:$12 sps:$4 sm:$0xff]   ;;  %v7819_v10 = vld [vmem:[#allocation14 + $0x1f8] ss:$12 sps:$4 sm:$0xff]  }
 0x116   : > { %v9053_v7 = vld [vmem:[%s8932_s1 + $0x50] ss:$8 sps:$4 sm:$0xff]   ;;  %v9056_v9 = vld [vmem:[%s8932_s1 + $0x64] ss:$8 sps:$4 sm:$0xff]   ;;  %v7828_v14 = vld [vmem:[#allocation14 + $0x48] ss:$12 sps:$4 sm:$0xff]  }
 0x117   : > { %v7821_v8 = vld [vmem:[#allocation14 + $0x1fc] ss:$12 sps:$4 sm:$0xff]   ;;  %v7827_v12 = vld [vmem:[#allocation14 + $0x1e4] ss:$12 sps:$4 sm:$0xff]   ;;  %v7830_v13 = vld [vmem:[#allocation14 + $0x4c] ss:$12 sps:$4 sm:$0xff]  }
 0x118   : > { %1398 = vmatpush1.bf16.msra.mxu0 %v7725_v27  ;;  %6927 = vmatpush3.bf16.msra.mxu1 %v7726_v28  ;;  %v7825_v15 = vld [vmem:[#allocation14 + $0x1e0] ss:$12 sps:$4 sm:$0xff]   ;;  %v7831_v19 = vld [vmem:[#allocation14 + $0x1c8] ss:$12 sps:$4 sm:$0xff]   ;;  %v7779_v20 = vld [vmem:[%s8932_s1 + $0x70] ss:$8 sps:$4 sm:$0xff]  }
 0x119   : > { %1399 = vmatprep.subr.bf16.mxu0 %v7727_v29  ;;  %6928 = vmatprep.subr.bf16.mxu1 %v7729_v30  ;;  %v7833_v16 = vld [vmem:[#allocation14 + $0x1cc] ss:$12 sps:$4 sm:$0xff]   ;;  %v7777_v18 = vld [vmem:[%s8932_s1 + $0x74] ss:$8 sps:$4 sm:$0xff]   ;;  %v7834_v25 = vld [vmem:[#allocation14 + $0x30] ss:$12 sps:$4 sm:$0xff]  }
 0x11a   : > { %v7776_v17 = vld [vmem:[%s8932_s1 + $0x60] ss:$8 sps:$4 sm:$0xff]   ;;  %v9068_v21 = vld [vmem:[%s8932_s1 + $0x84] ss:$8 sps:$4 sm:$0xff]   ;;  %v9077_v23 = vld [vmem:[%s8932_s1 + $0x94] ss:$8 sps:$4 sm:$0xff]  }
 0x11b   : > { %v9074_v22 = vld [vmem:[%s8932_s1 + $0x80] ss:$8 sps:$4 sm:$0xff]   ;;  %v7837_v27 = vld [vmem:[#allocation14 + $0x1b0] ss:$12 sps:$4 sm:$0xff]   ;;  %s10923_s30 = sld [smem:[#allocation85_spill]] }
 0x11c   : > { %1400 = vmatpush1.bf16.msra.mxu0 %v7730_v31  ;;  %6929 = vmatpush3.bf16.msra.mxu1 %v7731_v33  ;;  %v7836_v24 = vld [vmem:[#allocation14 + $0x34] ss:$12 sps:$4 sm:$0xff]   ;;  %v9082_v28 = vld [vmem:[%s8932_s1 + $0x90] ss:$8 sps:$4 sm:$0xff]   ;;  %v9085_v30 = vld [vmem:[%s8932_s1 + $0xa4] ss:$8 sps:$4 sm:$0xff]  }
 0x11d   : > { %1401 = vmatprep.subr.bf16.mxu0 %v7735_v34  ;;  %2767 = vmatprep.subr.bf16.mxu1 %v7806_v58  ;;  %v7839_v26 = vld [vmem:[#allocation14 + $0x1b4] ss:$12 sps:$4 sm:$0xff]   ;;  %v7842_v29 = vld [vmem:[#allocation14 + $0x1c] ss:$12 sps:$4 sm:$0xff]   ;;  %v7840_v31 = vld [vmem:[#allocation14 + $0x18] ss:$12 sps:$4 sm:$0xff]  }
 0x11e   : > { %v7845_v32 = vld [vmem:[#allocation14 + $0x19c] ss:$12 sps:$4 sm:$0xff]   ;;  %v7843_v33 = vld [vmem:[#allocation14 + $0x198] ss:$12 sps:$4 sm:$0xff]   ;;  %s10945_s14 = sld [smem:[#allocation87_spill]] }
 0x11f   : > { %1611 = vmatmul.mubr.bf16.vlgmr.msra.gmra.mxu1 %v9006_v35  ;;  %v7848_v34 = vld [vmem:[#allocation14 + $0x4] ss:$12 sps:$4 sm:$0xff]   ;;  %s11040_s19 = sld [smem:[#allocation33_spill]] }
 0x120   : > { %1402 = vmatpush2.bf16.msra.mxu0 %v7737_v36  ;;  %1618 = vmatprep.mubr.bf16.mxu1 %v7741_v38  ;;  %v7851_v36 = vld [vmem:[#allocation14 + $0x184] ss:$12 sps:$4 sm:$0xff]  }
 0x121   : > { %1403 = vmatprep.subr.bf16.mxu0 %v7738_v37  ;;  %2768 = vmatpush1.bf16.msra.mxu1 %v7804_v57  ;;  %v7849_v37 = vld [vmem:[#allocation14 + $0x180] ss:$12 sps:$4 sm:$0xff]   ;;  %v7797_v57 = vld [vmem:[%s8932_s1 + $0xd0] ss:$8 sps:$4 sm:$0xff]  }
 0x122   : > { %2769 = vmatprep.subr.bf16.mxu1 %v7812_v61  ;;  %v7870_v58 = vld [vmem:[#allocation14 + $0xd8] ss:$12 sps:$4 sm:$0xff]   ;;  %v7873_v61 = vld [vmem:[#allocation14 + $0xc0] ss:$12 sps:$4 sm:$0xff]  }
 0x124   : > { %1404 = vmatpush2.bf16.msra.mxu0 %v7740_v39  ;;  %v7854_v39 = vld [vmem:[#allocation14 + $0x16c] ss:$12 sps:$4 sm:$0xff]  }
 0x125   : > { %1405 = vmatprep.subr.bf16.mxu0 %v7743_v40  ;;  %2770 = vmatpush1.bf16.msra.mxu1 %v7810_v63  ;;  %v7789_v40 = vld [vmem:[%s8932_s1 + $0xb4] ss:$8 sps:$4 sm:$0xff]   ;;  %p4975_p8 = scmp.eq.s32.totalorder %s11040_s19, 1 }
 0x126   : > { %2771 = vmatprep.subr.bf16.mxu1 %v7818_v3  ;;  %v7801_v63 = vld [vmem:[%s8932_s1 + $0xf4] ss:$8 sps:$4 sm:$0xff]   ;;  %vm8588_vm0 = vmmov (%p4975_p8), 0   ;;  %s11048_s2 = sld [smem:[#allocation89_spill]] (%p4975_p8) }
 0x127   : > { %1619 = vmatmul.mubr.bf16.gmra.mxu1 %v9015_v41  ;;  %s11052_s25 = sld [smem:[#allocation90_spill]] (%p4975_p8) }
 0x128   : > { %1406 = vmatpush2.bf16.msra.mxu0 %v7746_v42  ;;  %1626 = vmatprep.mubr.bf16.mxu1 %v9020_v44  ;;  %v7857_v42 = vld [vmem:[#allocation14 + $0x154] ss:$12 sps:$4 sm:$0xff]  }
 0x129   : > { %1407 = vmatprep.subr.bf16.mxu0 %v7747_v43  ;;  %2772 = vmatpush1.bf16.msra.mxu1 %v7816_v4  ;;  %v7855_v43 = vld [vmem:[#allocation14 + $0x150] ss:$12 sps:$4 sm:$0xff]  }
 0x12a   : > { %2773 = vmatprep.subr.bf16.mxu1 %v7824_v5 }
 0x12c   : > { %1408 = vmatpush2.bf16.msra.mxu0 %v7749_v45  ;;  %v7860_v45 = vld [vmem:[#allocation14 + $0x13c] ss:$12 sps:$4 sm:$0xff]  }
 0x12d   : > { %1409 = vmatprep.subr.bf16.mxu0 %v7752_v46  ;;  %2774 = vmatpush1.bf16.msra.mxu1 %v7822_v11  ;;  %v7792_v46 = vld [vmem:[%s8932_s1 + $0xc4] ss:$8 sps:$4 sm:$0xff]  }
 0x12e   : > { %2775 = vmatprep.subr.bf16.mxu1 %v7830_v13 }
 0x12f   : > { %1627 = vmatmul.mubr.bf16.gmra.mxu1 %v9027_v47 }
 0x130   : > { %1410 = vmatpush2.bf16.msra.mxu0 %v7755_v48  ;;  %1634 = vmatprep.mubr.bf16.mxu1 %v9032_v50  ;;  %v7863_v48 = vld [vmem:[#allocation14 + $0x124] ss:$12 sps:$4 sm:$0xff]  }
 0x131   : > { %1411 = vmatprep.subr.bf16.mxu0 %v7756_v49  ;;  %2776 = vmatpush1.bf16.msra.mxu1 %v7828_v14  ;;  %v7861_v49 = vld [vmem:[#allocation14 + $0x120] ss:$12 sps:$4 sm:$0xff]  }
 0x132   : > { %2777 = vmatprep.subr.bf16.mxu1 %v7836_v24 }
 0x134   : > { %1412 = vmatpush2.bf16.msra.mxu0 %v7758_v51  ;;  %v7866_v51 = vld [vmem:[#allocation14 + $0x10c] ss:$12 sps:$4 sm:$0xff]  }
 0x135   : > { %1413 = vmatprep.subr.bf16.mxu0 %v7761_v52  ;;  %2778 = vmatpush1.bf16.msra.mxu1 %v7834_v25  ;;  %v7795_v52 = vld [vmem:[%s8932_s1 + $0xd4] ss:$8 sps:$4 sm:$0xff]  }
 0x136   : > { %2779 = vmatprep.subr.bf16.mxu1 %v7842_v29  ;;  %v7878_v25 = vld [vmem:[#allocation14 + $0x200] ss:$12 sps:$4 sm:$0xff]  }
 0x137   : > { %1635 = vmatmul.mubr.bf16.gmra.mxu1 %v9039_v53 }
 0x138   : > { %1414 = vmatpush2.bf16.msra.mxu0 %v7764_v54  ;;  %1642 = vmatprep.mubr.bf16.mxu1 %v9044_v56  ;;  %v7869_v54 = vld [vmem:[#allocation14 + $0xf4] ss:$12 sps:$4 sm:$0xff]  }
 0x139   : > { %1415 = vmatprep.subr.bf16.mxu0 %v7765_v55  ;;  %2780 = vmatpush1.bf16.msra.mxu1 %v7840_v31  ;;  %v7867_v55 = vld [vmem:[#allocation14 + $0xf0] ss:$12 sps:$4 sm:$0xff]   ;;  %v7879_v31 = vld [vmem:[#allocation14 + $0x1e8] ss:$12 sps:$4 sm:$0xff]  }
 0x13a   : > { %2781 = vmatprep.subr.bf16.mxu1 %v7848_v34 }
 0x13c   : > { %1416 = vmatpush2.bf16.msra.mxu0 %v7767_v59  ;;  %v7798_v59 = vld [vmem:[%s8932_s1 + $0xe4] ss:$8 sps:$4 sm:$0xff]  }
 0x13d   : > { %2960 = vmatprep.subr.bf16.mxu0 %v7809_v60  ;;  %v7875_v60 = vld [vmem:[#allocation14 + $0xc4] ss:$12 sps:$4 sm:$0xff]  }
 0x13f   : > { %1418 = vmatmul.mubr.bf16.vlgmr.msra.gmra.mxu0 %v9006_v35  ;;  %1643 = vmatmul.mubr.bf16.gmra.mxu1 %v7770_v62  ;;  %v7846_v35 = vld [vmem:[#allocation14] ss:$12 sps:$4 sm:$0xff]  }
 0x140   : > { %1427 = vmatprep.mubr.bf16.mxu0 %v7741_v38  ;;  %1650 = vmatprep.mubr.bf16.mxu1 %v7771_v0  ;;  %v7788_v38 = vld [vmem:[%s8932_s1 + $0xa0] ss:$8 sps:$4 sm:$0xff]  }
 0x141   : > { %2961 = vmatpush1.bf16.msra.mxu0 %v7807_v1  ;;  %2782 = vmatpush1.bf16.msra.mxu1 %v7846_v35  ;;  %v10851_v1 = vmov 0   ;;  %v2047_v35 = vld [vmem:[%s8946_s8 + $0x88] sm:$0xff] }
 0x142   : > { %2962 = vmatprep.subr.bf16.mxu0 %v7815_v2  ;;  %2783 = vmatprep.subr.bf16.mxu1 %v7854_v39  ;;  %v7876_v2 = vld [vmem:[#allocation14 + $0x230] ss:$12 sps:$4 sm:$0xff]  }
 0x145   : > { %2963 = vmatpush1.bf16.msra.mxu0 %v7813_v6  ;;  %v2032_v6 = vld [vmem:[%s8946_s8 + $0x10] sm:$0xff] }
 0x146   : > { %2964 = vmatprep.subr.bf16.mxu0 %v7821_v8 }
 0x147   : > { %1428 = vmatmul.mubr.bf16.gmra.mxu0 %v9015_v41  ;;  %1651 = vmatmul.mubr.bf16.gmra.mxu1 %v9053_v7  ;;  %v7852_v41 = vld [vmem:[#allocation14 + $0x168] ss:$12 sps:$4 sm:$0xff]  }
 0x148   : > { %1437 = vmatprep.mubr.bf16.mxu0 %v9020_v44  ;;  %1658 = vmatprep.mubr.bf16.mxu1 %v9056_v9  ;;  %v7791_v44 = vld [vmem:[%s8932_s1 + $0xb0] ss:$8 sps:$4 sm:$0xff]  }
 0x149   : > { %2965 = vmatpush1.bf16.msra.mxu0 %v7819_v10  ;;  %2784 = vmatpush2.bf16.msra.mxu1 %v7852_v41 }
 0x14a   : > { %2966 = vmatprep.subr.bf16.mxu0 %v7827_v12  ;;  %2785 = vmatprep.subr.bf16.mxu1 %v7857_v42 }
 0x14d   : > { %2967 = vmatpush1.bf16.msra.mxu0 %v7825_v15  ;;  %2786 = vmatpush2.bf16.msra.mxu1 %v7855_v43  ;;  %v7884_v15 = vld [vmem:[#allocation14 + $0x170] ss:$12 sps:$4 sm:$0xff]  }
 0x14e   : > { %2968 = vmatprep.subr.bf16.mxu0 %v7833_v16  ;;  %2787 = vmatprep.subr.bf16.mxu1 %v7860_v45  ;;  %v2050_v45 = vld [vmem:[%s8946_s8 + $0xa0] sm:$0xff] }
 0x14f   : > { %1438 = vmatmul.mubr.bf16.gmra.mxu0 %v9027_v47  ;;  %1659 = vmatmul.mubr.bf16.gmra.mxu1 %v7776_v17  ;;  %v7858_v47 = vld [vmem:[#allocation14 + $0x138] ss:$12 sps:$4 sm:$0xff]  }
 0x150   : > { %1447 = vmatprep.mubr.bf16.mxu0 %v9032_v50  ;;  %1666 = vmatprep.mubr.bf16.mxu1 %v7777_v18  ;;  %v7794_v50 = vld [vmem:[%s8932_s1 + $0xc0] ss:$8 sps:$4 sm:$0xff]  }
 0x151   : > { %2969 = vmatpush1.bf16.msra.mxu0 %v7831_v19  ;;  %2788 = vmatpush2.bf16.msra.mxu1 %v7858_v47  ;;  %v2038_v19 = vld [vmem:[%s8946_s8 + $0x40] sm:$0xff] }
 0x152   : > { %2970 = vmatprep.subr.bf16.mxu0 %v7839_v26  ;;  %2789 = vmatprep.subr.bf16.mxu1 %v7863_v48  ;;  %v2053_v48 = vld [vmem:[%s8946_s8 + $0xb8] sm:$0xff] }
 0x155   : > { %2971 = vmatpush1.bf16.msra.mxu0 %v7837_v27  ;;  %2790 = vmatpush2.bf16.msra.mxu1 %v7861_v49 }
 0x156   : > { %2972 = vmatprep.subr.bf16.mxu0 %v7845_v32  ;;  %2791 = vmatprep.subr.bf16.mxu1 %v7866_v51  ;;  %v2044_v32 = vld [vmem:[%s8946_s8 + $0x70] sm:$0xff] }
 0x157   : > { %1448 = vmatmul.mubr.bf16.gmra.mxu0 %v9039_v53  ;;  %1667 = vmatmul.mubr.bf16.gmra.mxu1 %v7779_v20  ;;  %v7864_v53 = vld [vmem:[#allocation14 + $0x108] ss:$12 sps:$4 sm:$0xff]  }
 0x158   : > { %1457 = vmatprep.mubr.bf16.mxu0 %v9044_v56  ;;  %1674 = vmatprep.mubr.bf16.mxu1 %v9068_v21  ;;  %v7872_v56 = vld [vmem:[#allocation14 + $0xdc] ss:$12 sps:$4 sm:$0xff]  }
 0x159   : > { %2973 = vmatpush1.bf16.msra.mxu0 %v7843_v33  ;;  %2792 = vmatpush2.bf16.msra.mxu1 %v7864_v53 }
 0x15a   : > { %2974 = vmatprep.subr.bf16.mxu0 %v7851_v36  ;;  %2793 = vmatprep.subr.bf16.mxu1 %v7869_v54 }
 0x15d   : > { %2975 = vmatpush1.bf16.msra.mxu0 %v7849_v37  ;;  %2794 = vmatpush2.bf16.msra.mxu1 %v7867_v55 }
 0x15e   : > { %2795 = vmatprep.subr.bf16.mxu1 %v7872_v56  ;;  %7382 = vmatprep.subr.bf16.mxu0 %v7876_v2 }
 0x15f   : > { %1458 = vmatmul.mubr.bf16.gmra.mxu0 %v7770_v62  ;;  %1675 = vmatmul.mubr.bf16.gmra.mxu1 %v9074_v22  ;;  %v7800_v62 = vld [vmem:[%s8932_s1 + $0xe0] ss:$8 sps:$4 sm:$0xff]  }
 0x160   : > { %1467 = vmatprep.mubr.bf16.mxu0 %v7771_v0  ;;  %1682 = vmatprep.mubr.bf16.mxu1 %v9077_v23  ;;  %v7803_v0 = vld [vmem:[%s8932_s1 + $0xf0] ss:$8 sps:$4 sm:$0xff]  }
 0x161   : > { %2796 = vmatpush2.bf16.msra.mxu1 %v7870_v58  ;;  %v2031_v58 = vld [vmem:[%s8946_s8 + $0x8] sm:$0xff] }
 0x162   : > { %2797 = vmatprep.subr.bf16.mxu1 %v7875_v60 }
 0x165   : > { %2798 = vmatpush2.bf16.msra.mxu1 %v7873_v61 }
 0x166   : > { %7026 = vmatprep.subr.bf16.mxu1 %v7884_v15 }
 0x167   : > { %1468 = vmatmul.mubr.bf16.gmra.mxu0 %v9053_v7  ;;  %1683 = vmatmul.mubr.bf16.gmra.mxu1 %v9082_v28 }
 0x168   : > { %1477 = vmatprep.mubr.bf16.mxu0 %v9056_v9  ;;  %1690 = vmatprep.mubr.bf16.mxu1 %v9085_v30  ;;  %v2035_v9 = vld [vmem:[%s8946_s8 + $0x28] sm:$0xff] }
 0x16f   : > { %1478 = vmatmul.mubr.bf16.gmra.mxu0 %v7776_v17  ;;  %1691 = vmatmul.mubr.bf16.gmra.mxu1 %v7788_v38 }
 0x170   : > { %1487 = vmatprep.mubr.bf16.mxu0 %v7777_v18  ;;  %1698 = vmatprep.mubr.bf16.mxu1 %v7789_v40  ;;  %v7877_v18 = vld [vmem:[#allocation14 + $0x218] ss:$12 sps:$4 sm:$0xff]  }
 0x177   : > { %1488 = vmatmul.mubr.bf16.gmra.mxu0 %v7779_v20  ;;  %1699 = vmatmul.mubr.bf16.gmra.mxu1 %v7791_v44 }
 0x178   : > { %1497 = vmatprep.mubr.bf16.mxu0 %v9068_v21  ;;  %1706 = vmatprep.mubr.bf16.mxu1 %v7792_v46 }
 0x17f   : > { %1498 = vmatmul.mubr.bf16.gmra.mxu0 %v9074_v22  ;;  %1707 = vmatmul.mubr.bf16.gmra.mxu1 %v7794_v50  ;;  %v2041_v22 = vld [vmem:[%s8946_s8 + $0x58] sm:$0xff] }
 0x180   : > { %1507 = vmatprep.mubr.bf16.mxu0 %v9077_v23  ;;  %1714 = vmatprep.mubr.bf16.mxu1 %v7795_v52 }
 0x187   : > { %1508 = vmatmul.mubr.bf16.gmra.mxu0 %v9082_v28  ;;  %1715 = vmatmul.mubr.bf16.gmra.mxu1 %v7797_v57 }
 0x188   : > { %1517 = vmatprep.mubr.bf16.mxu0 %v9085_v30  ;;  %1722 = vmatprep.mubr.bf16.mxu1 %v7798_v59 }
 0x18f   : > { %1518 = vmatmul.mubr.bf16.gmra.mxu0 %v7788_v38  ;;  %1723 = vmatmul.mubr.bf16.gmra.mxu1 %v7800_v62  ;;  %v7880_v38 = vld [vmem:[#allocation14 + $0x1d0] ss:$12 sps:$4 sm:$0xff]  }
 0x190   : > { %1527 = vmatprep.mubr.bf16.mxu0 %v7789_v40  ;;  %1730 = vmatprep.mubr.bf16.mxu1 %v7801_v63 }
 0x197   : > { %1528 = vmatmul.mubr.bf16.gmra.mxu0 %v7791_v44  ;;  %1731 = vmatmul.mubr.bf16.gmra.mxu1 %v7803_v0  ;;  %v7881_v44 = vld [vmem:[#allocation14 + $0x1b8] ss:$12 sps:$4 sm:$0xff]  }
 0x198   : > { %1537 = vmatprep.mubr.bf16.mxu0 %v7792_v46 }
 0x19f   : > { %1538 = vmatmul.mubr.bf16.gmra.mxu0 %v7794_v50 }
 0x1a0   : > { %1547 = vmatprep.mubr.bf16.mxu0 %v7795_v52  ;;  %v7882_v52 = vld [vmem:[#allocation14 + $0x1a0] ss:$12 sps:$4 sm:$0xff]  }
 0x1a7   : > { %1548 = vmatmul.mubr.bf16.gmra.mxu0 %v7797_v57  ;;  %v2033_v57 = vld [vmem:[%s8946_s8 + $0x18] sm:$0xff] }
 0x1a8   : > { %1557 = vmatprep.mubr.bf16.mxu0 %v7798_v59 }
 0x1af   : > { %1558 = vmatmul.mubr.bf16.gmra.mxu0 %v7800_v62  ;;  %v2034_v62 = vld [vmem:[%s8946_s8 + $0x20] sm:$0xff] }
 0x1b0   : > { %1567 = vmatprep.mubr.bf16.mxu0 %v7801_v63  ;;  %v7883_v63 = vld [vmem:[#allocation14 + $0x188] ss:$12 sps:$4 sm:$0xff]  }
 0x1b7   : > { %1568 = vmatmul.mubr.bf16.gmra.mxu0 %v7803_v0  ;;  %v2030_v0 = vld [vmem:[%s8946_s8] sm:$0xff] }
 0x1b8   : > { %2992 = vmatprep.mubr.bf16.mxu0 %v10851_v1 }
 0x1df   : > { %v6930_v3 = vpop.f32.mrf.mxu1 }
 0x1e1   : > { %v6931_v4 = vpop.f32.mrf.mxu1 }
 0x1e2   : > { %v6932_v5 = vadd.f32 %v6931_v4, %v6930_v3 }
 0x1e3   : > { %v6933_v7 = vpop.f32.mrf.mxu1 }
 0x1e4   : > { %v2128_v10 = vadd.f32 %v6932_v5, %v2032_v6 }
 0x1e5   : > { %v6934_v8 = vpop.f32.mrf.mxu1 }
 0x1e6   : > { %v6935_v11 = vadd.f32 %v6934_v8, %v6933_v7 }
 0x1e7   : > { %v6936_v12 = vpop.f32.mrf.mxu1 }
 0x1e8   : > { %v2131_v13 = vadd.f32 %v6935_v11, %v2035_v9  ;;  %v2059_v9 = vld [vmem:[%s8946_s8 + $0xe8] sm:$0xff] }
 0x1e9   : > { %v6937_v14 = vpop.f32.mrf.mxu1 }
 0x1ea   : > { %v9110_v16 = vpack.c.bf16 %v2131_v13, %v2128_v10  ;;  %v6938_v17 = vadd.f32 %v6937_v14, %v6936_v12 }
 0x1eb   : > { %v6939_v20 = vpop.f32.mrf.mxu1 }
 0x1ec   : > { %2993 = vmatmul.mubr.bf16.vlgmr.msra.gmra.mxu0 %v9110_v16  ;;  %v2134_v23 = vadd.f32 %v6938_v17, %v2038_v19  ;;  %v7885_v17 = vld [vmem:[#allocation14 + $0xb0] ss:$12 sps:$4 sm:$0xff]  }
 0x1ed   : > { %v6940_v21 = vpop.f32.mrf.mxu1  ;;  %3002 = vmatprep.mubr.bf16.mxu0 %v10851_v1  ;;  %7383 = vmatpush3.bf16.msra.mxu0 %v7876_v2  ;;  %v2056_v2 = vld [vmem:[%s8946_s8 + $0xd0] sm:$0xff] }
 0x1ee   : > { %v6941_v24 = vadd.f32 %v6940_v21, %v6939_v20  ;;  %7384 = vmatprep.subr.bf16.mxu0 %v7877_v18  ;;  %v7886_v21 = vld [vmem:[#allocation14 + $0x158] ss:$12 sps:$4 sm:$0xff]  }
 0x1ef   : > { %v6942_v26 = vpop.f32.mrf.mxu1 }
 0x1f0   : > { %v2137_v27 = vadd.f32 %v6941_v24, %v2041_v22  ;;  %v2037_v24 = vld [vmem:[%s8946_s8 + $0x38] sm:$0xff] }
 0x1f1   : > { %v6943_v28 = vpop.f32.mrf.mxu1  ;;  %7385 = vmatpush3.bf16.msra.mxu0 %v7877_v18 }
 0x1f2   : > { %v6944_v29 = vadd.f32 %v6943_v28, %v6942_v26  ;;  %v9116_v30 = vpack.c.bf16 %v2137_v27, %v2134_v23  ;;  %7386 = vmatprep.subr.bf16.mxu0 %v7878_v25  ;;  %v2039_v23 = vld [vmem:[%s8946_s8 + $0x48] sm:$0xff]  ;;  %v2040_v28 = vld [vmem:[%s8946_s8 + $0x50] sm:$0xff] }
 0x1f3   : > { %v6945_v33 = vpop.f32.mrf.mxu1 }
 0x1f4   : > { %3003 = vmatmul.mubr.bf16.gmra.mxu0 %v9116_v30  ;;  %v2140_v36 = vadd.f32 %v6944_v29, %v2044_v32  ;;  %v2036_v29 = vld [vmem:[%s8946_s8 + $0x30] sm:$0xff] }
 0x1f5   : > { %v6946_v34 = vpop.f32.mrf.mxu1  ;;  %3012 = vmatprep.mubr.bf16.mxu0 %v10851_v1  ;;  %7387 = vmatpush3.bf16.msra.mxu0 %v7878_v25 }
 0x1f6   : > { %v6947_v37 = vadd.f32 %v6946_v34, %v6945_v33  ;;  %7388 = vmatprep.subr.bf16.mxu0 %v7879_v31  ;;  %v7887_v33 = vld [vmem:[#allocation14 + $0x98] ss:$12 sps:$4 sm:$0xff]  }
 0x1f7   : > { %v6948_v39 = vpop.f32.mrf.mxu1 }
 0x1f8   : > { %v2143_v40 = vadd.f32 %v6947_v37, %v2047_v35 }
 0x1f9   : > { %v6949_v41 = vpop.f32.mrf.mxu1  ;;  %7389 = vmatpush3.bf16.msra.mxu0 %v7879_v31  ;;  %v2062_v31 = vld [vmem:[%s8946_s8 + $0x100] sm:$0xff] }
 0x1fa   : > { %v6950_v42 = vadd.f32 %v6949_v41, %v6948_v39  ;;  %v9122_v43 = vpack.c.bf16 %v2143_v40, %v2140_v36  ;;  %7390 = vmatprep.subr.bf16.mxu0 %v7880_v38  ;;  %v7888_v36 = vld [vmem:[#allocation14 + $0x140] ss:$12 sps:$4 sm:$0xff]   ;;  %v2065_v40 = vld [vmem:[%s8946_s8 + $0x118] sm:$0xff] }
 0x1fb   : > { %v6951_v46 = vpop.f32.mrf.mxu1 }
 0x1fc   : > { %3013 = vmatmul.mubr.bf16.gmra.mxu0 %v9122_v43  ;;  %v2146_v49 = vadd.f32 %v6950_v42, %v2050_v45 }
 0x1fd   : > { %v6952_v47 = vpop.f32.mrf.mxu1  ;;  %3022 = vmatprep.mubr.bf16.mxu0 %v10851_v1  ;;  %7391 = vmatpush3.bf16.msra.mxu0 %v7880_v38 }
 0x1fe   : > { %v6953_v50 = vadd.f32 %v6952_v47, %v6951_v46  ;;  %7392 = vmatprep.subr.bf16.mxu0 %v7881_v44 }
 0x1ff   : > { %v1419_v51 = vpop.f32.mrf.mxu0  ;;  %v6954_v53 = vpop.f32.mrf.mxu1 }
 0x200   : > { %v2149_v54 = vadd.f32 %v6953_v50, %v2053_v48  ;;  %v2126_v10 = vadd.f32 %v2030_v0, %v1419_v51  ;;  %v7889_v48 = vld [vmem:[#allocation14 + $0x80] ss:$12 sps:$4 sm:$0xff]   ;;  %v7891_v0 = vld [vmem:[#allocation14 + $0x68] ss:$12 sps:$4 sm:$0xff]  }
 0x201   : > { %v1421_v55 = vpop.f32.mrf.mxu0  ;;  %v6955_v56 = vpop.f32.mrf.mxu1  ;;  %7393 = vmatpush3.bf16.msra.mxu0 %v7881_v44 }
 0x202   : > { %v6956_v59 = vadd.f32 %v6955_v56, %v6954_v53  ;;  %v9130_v61 = vpack.c.bf16 %v2149_v54, %v2146_v49  ;;  %7394 = vmatprep.subr.bf16.mxu0 %v7882_v52  ;;  %v2127_v6 = vadd.f32 %v2031_v58, %v1421_v55  ;;  %v2045_v54 = vld [vmem:[%s8946_s8 + $0x78] sm:$0xff]  ;;  %v2043_v55 = vld [vmem:[%s8946_s8 + $0x68] sm:$0xff] }
 0x203   : > { %v1423_v60 = vpop.f32.mrf.mxu0  ;;  %v6957_v3 = vpop.f32.mrf.mxu1 }
 0x204   : > { %v2129_v4 = vadd.f32 %v2033_v57, %v1423_v60  ;;  %3023 = vmatmul.mubr.bf16.gmra.mxu0 %v9130_v61  ;;  %v2152_v11 = vadd.f32 %v6956_v59, %v2056_v2  ;;  %v2046_v59 = vld [vmem:[%s8946_s8 + $0x80] sm:$0xff] }
 0x205   : > { %v1425_v5 = vpop.f32.mrf.mxu0  ;;  %v6958_v8 = vpop.f32.mrf.mxu1  ;;  %3032 = vmatprep.mubr.bf16.mxu0 %v10851_v1  ;;  %7395 = vmatpush3.bf16.msra.mxu0 %v7882_v52  ;;  %v7890_v52 = vld [vmem:[#allocation14 + $0x128] ss:$12 sps:$4 sm:$0xff]   ;;  %v2042_v60 = vld [vmem:[%s8946_s8 + $0x60] sm:$0xff] }
 0x206   : > { %v2130_v7 = vadd.f32 %v2034_v62, %v1425_v5  ;;  %v6959_v12 = vadd.f32 %v6958_v8, %v6957_v3  ;;  %7396 = vmatprep.subr.bf16.mxu0 %v7883_v63  ;;  %v9140_v18 = vpack.c.bf16 %v2129_v4, %v2126_v10  ;;  %v2068_v62 = vld [vmem:[%s8946_s8 + $0x130] sm:$0xff]  ;;  %v2071_v8 = vld [vmem:[%s8946_s8 + $0x148] sm:$0xff] }
 0x207   : > { %v1429_v13 = vpop.f32.mrf.mxu0  ;;  %v6960_v15 = vpop.f32.mrf.mxu1  ;;  %v7892_v4 = vld [vmem:[#allocation14 + $0x110] ss:$12 sps:$4 sm:$0xff]  }
 0x208   : > { %v9138_v14 = vpack.c.bf16 %v2130_v7, %v2127_v6  ;;  %v2155_v19 = vadd.f32 %v6959_v12, %v2059_v9  ;;  %v2132_v41 = vadd.f32 %v2036_v29, %v1429_v13 }
 0x209   : > { %v1431_v20 = vpop.f32.mrf.mxu0  ;;  %v6961_v22 = vpop.f32.mrf.mxu1  ;;  %7397 = vmatpush3.bf16.msra.mxu0 %v7883_v63 }
 0x20a   : > { %2799 = vmatprep.mubr.bf16.mxu1 %v9138_v14  ;;  %v6962_v25 = vadd.f32 %v6961_v22, %v6960_v15  ;;  %v9146_v27 = vpack.c.bf16 %v2155_v19, %v2152_v11  ;;  %v2133_v37 = vadd.f32 %v2037_v24, %v1431_v20  ;;  %v7894_v22 = vld [vmem:[#allocation14 + $0xf8] ss:$12 sps:$4 sm:$0xff]  }
 0x20b   : > { %v1433_v26 = vpop.f32.mrf.mxu0  ;;  %2800 = vmatmul.mubr.bf16.vlgmr.msra.gmra.mxu1 %v9140_v18  ;;  %v6963_v32 = vpop.f32.mrf.mxu1  ;;  %v2051_v24 = vld [vmem:[%s8946_s8 + $0xa8] sm:$0xff] }
 0x20c   : > { %7027 = vmatpush3.bf16.msra.mxu1 %v7885_v17  ;;  %v2135_v34 = vadd.f32 %v2039_v23, %v1433_v26  ;;  %3033 = vmatmul.mubr.bf16.gmra.mxu0 %v9146_v27  ;;  %v2158_v42 = vadd.f32 %v6962_v25, %v2062_v31  ;;  %v7893_v17 = vld [vmem:[#allocation14 + $0x50] ss:$12 sps:$4 sm:$0xff]   ;;  %v7902_v25 = vld [vmem:[#allocation16 + $0xac] ss:$12 sps:$4 sm:$0xff]   ;;  %v2049_v26 = vld [vmem:[%s8946_s8 + $0x98] sm:$0xff] }
 0x20d   : > { %v1435_v35 = vpop.f32.mrf.mxu0  ;;  %7028 = vmatprep.subr.bf16.mxu1 %v7886_v21  ;;  %v6964_v39 = vpop.f32.mrf.mxu1  ;;  %3042 = vmatprep.mubr.bf16.mxu0 %v10851_v1 }
 0x20e   : > { %v2136_v38 = vadd.f32 %v2040_v28, %v1435_v35  ;;  %v6965_v44 = vadd.f32 %v6964_v39, %v6963_v32  ;;  %v9156_v49 = vpack.c.bf16 %v2135_v34, %v2132_v41  ;;  %v2052_v32 = vld [vmem:[%s8946_s8 + $0xb0] sm:$0xff]  ;;  %v2074_v34 = vld [vmem:[%s8946_s8 + $0x160] sm:$0xff]  ;;  %4116 = vmatprep.subr.bf16.mxu0 %v7902_v25 }
 0x20f   : > { %v1439_v45 = vpop.f32.mrf.mxu0  ;;  %v6966_v47 = vpop.f32.mrf.mxu1  ;;  %v7896_v39 = vld [vmem:[#allocation14 + $0xe0] ss:$12 sps:$4 sm:$0xff]  }
 0x210   : > { %v9154_v46 = vpack.c.bf16 %v2136_v38, %v2133_v37  ;;  %7029 = vmatpush3.bf16.msra.mxu1 %v7887_v33  ;;  %v2161_v50 = vadd.f32 %v6965_v44, %v2065_v40  ;;  %v2138_v9 = vadd.f32 %v2042_v60, %v1439_v45  ;;  %v2048_v33 = vld [vmem:[%s8946_s8 + $0x90] sm:$0xff]  ;;  %v2077_v44 = vld [vmem:[%s8946_s8 + $0x178] sm:$0xff] }
 0x211   : > { %v1441_v51 = vpop.f32.mrf.mxu0  ;;  %7030 = vmatprep.subr.bf16.mxu1 %v7888_v36  ;;  %v6967_v53 = vpop.f32.mrf.mxu1  ;;  %v7895_v36 = vld [vmem:[#allocation14 + $0x38] ss:$12 sps:$4 sm:$0xff]  }
 0x212   : > { %2809 = vmatprep.mubr.bf16.mxu1 %v9154_v46  ;;  %v6968_v56 = vadd.f32 %v6967_v53, %v6966_v47  ;;  %v9162_v58 = vpack.c.bf16 %v2161_v50, %v2158_v42  ;;  %v2139_v5 = vadd.f32 %v2043_v55, %v1441_v51  ;;  %v7897_v53 = vld [vmem:[#allocation14 + $0x20] ss:$12 sps:$4 sm:$0xff]   ;;  %v2057_v60 = vld [vmem:[%s8946_s8 + $0xd8] sm:$0xff] }
 0x213   : > { %v1443_v57 = vpop.f32.mrf.mxu0  ;;  %2810 = vmatmul.mubr.bf16.gmra.mxu1 %v9156_v49  ;;  %v6969_v63 = vpop.f32.mrf.mxu1 }
 0x214   : > { %7031 = vmatpush3.bf16.msra.mxu1 %v7889_v48  ;;  %v2141_v2 = vadd.f32 %v2045_v54, %v1443_v57  ;;  %3043 = vmatmul.mubr.bf16.gmra.mxu0 %v9162_v58  ;;  %v2164_v10 = vadd.f32 %v6968_v56, %v2068_v62  ;;  %v7898_v57 = vld [vmem:[#allocation14 + $0xc8] ss:$12 sps:$4 sm:$0xff]  }
 0x215   : > { %v1445_v3 = vpop.f32.mrf.mxu0  ;;  %7032 = vmatprep.subr.bf16.mxu1 %v7890_v52  ;;  %v6970_v7 = vpop.f32.mrf.mxu1  ;;  %3052 = vmatprep.mubr.bf16.mxu0 %v10851_v1  ;;  %v2055_v62 = vld [vmem:[%s8946_s8 + $0xc8] sm:$0xff] }
 0x216   : > { %v2142_v6 = vadd.f32 %v2046_v59, %v1445_v3  ;;  %v6971_v11 = vadd.f32 %v6970_v7, %v6969_v63  ;;  %v9172_v19 = vpack.c.bf16 %v2141_v2, %v2138_v9  ;;  %v2058_v3 = vld [vmem:[%s8946_s8 + $0xe0] sm:$0xff]  ;;  %v7899_v7 = vld [vmem:[#allocation14 + $0x8] ss:$12 sps:$4 sm:$0xff]  }
 0x217   : > { %v1449_v12 = vpop.f32.mrf.mxu0  ;;  %v6972_v15 = vpop.f32.mrf.mxu1 }
 0x218   : > { %v9170_v13 = vpack.c.bf16 %v2142_v6, %v2139_v5  ;;  %7033 = vmatpush3.bf16.msra.mxu1 %v7891_v0  ;;  %v2167_v20 = vadd.f32 %v6971_v11, %v2071_v8  ;;  %v2144_v45 = vadd.f32 %v2048_v33, %v1449_v12  ;;  %v2080_v5 = vld [vmem:[%s8946_s8 + $0x190] sm:$0xff]  ;;  %v2061_v33 = vld [vmem:[%s8946_s8 + $0xf8] sm:$0xff] }
 0x219   : > { %v1451_v21 = vpop.f32.mrf.mxu0  ;;  %7034 = vmatprep.subr.bf16.mxu1 %v7892_v4  ;;  %v6973_v23 = vpop.f32.mrf.mxu1  ;;  %v2054_v4 = vld [vmem:[%s8946_s8 + $0xc0] sm:$0xff] }
 0x21a   : > { %2819 = vmatprep.mubr.bf16.mxu1 %v9170_v13  ;;  %v6974_v28 = vadd.f32 %v6973_v23, %v6972_v15  ;;  %v9178_v31 = vpack.c.bf16 %v2167_v20, %v2164_v10  ;;  %v2145_v40 = vadd.f32 %v2049_v26, %v1451_v21  ;;  %v2083_v15 = vld [vmem:[%s8946_s8 + $0x1a8] sm:$0xff] }
 0x21b   : > { %v1453_v29 = vpop.f32.mrf.mxu0  ;;  %2820 = vmatmul.mubr.bf16.gmra.mxu1 %v9172_v19  ;;  %v6975_v35 = vpop.f32.mrf.mxu1 }
 0x21c   : > { %7035 = vmatpush3.bf16.msra.mxu1 %v7893_v17  ;;  %v2147_v37 = vadd.f32 %v2051_v24, %v1453_v29  ;;  %3053 = vmatmul.mubr.bf16.gmra.mxu0 %v9178_v31  ;;  %v2170_v47 = vadd.f32 %v6974_v28, %v2074_v34 }
 0x21d   : > { %v1455_v38 = vpop.f32.mrf.mxu0  ;;  %7036 = vmatprep.subr.bf16.mxu1 %v7894_v22  ;;  %v6976_v42 = vpop.f32.mrf.mxu1  ;;  %3062 = vmatprep.mubr.bf16.mxu0 %v10851_v1 }
 0x21e   : > { %v2148_v41 = vadd.f32 %v2052_v32, %v1455_v38  ;;  %v6977_v48 = vadd.f32 %v6976_v42, %v6975_v35  ;;  %v9188_v54 = vpack.c.bf16 %v2147_v37, %v2144_v45  ;;  %v2063_v32 = vld [vmem:[%s8946_s8 + $0x108] sm:$0xff]  ;;  %v2064_v37 = vld [vmem:[%s8946_s8 + $0x110] sm:$0xff] }
 0x21f   : > { %v1459_v50 = vpop.f32.mrf.mxu0  ;;  %v6978_v52 = vpop.f32.mrf.mxu1  ;;  %v2060_v38 = vld [vmem:[%s8946_s8 + $0xf0] sm:$0xff] }
 0x220   : > { %v9186_v51 = vpack.c.bf16 %v2148_v41, %v2145_v40  ;;  %7037 = vmatpush3.bf16.msra.mxu1 %v7895_v36  ;;  %v2173_v55 = vadd.f32 %v6977_v48, %v2077_v44  ;;  %v2150_v17 = vadd.f32 %v2054_v4, %v1459_v50  ;;  %v2089_v48 = vld [vmem:[%s8946_s8 + $0x1d8] sm:$0xff] }
 0x221   : > { %v1461_v56 = vpop.f32.mrf.mxu0  ;;  %7038 = vmatprep.subr.bf16.mxu1 %v7896_v39  ;;  %v6979_v59 = vpop.f32.mrf.mxu1  ;;  %v2086_v39 = vld [vmem:[%s8946_s8 + $0x1c0] sm:$0xff] }
 0x222   : > { %2829 = vmatprep.mubr.bf16.mxu1 %v9186_v51  ;;  %v6980_v63 = vadd.f32 %v6979_v59, %v6978_v52  ;;  %v9194_v2 = vpack.c.bf16 %v2173_v55, %v2170_v47  ;;  %v2151_v10 = vadd.f32 %v2055_v62, %v1461_v56 }
 0x223   : > { %v1463_v0 = vpop.f32.mrf.mxu0  ;;  %2830 = vmatmul.mubr.bf16.gmra.mxu1 %v9188_v54  ;;  %v6981_v6 = vpop.f32.mrf.mxu1 }
 0x224   : > { %7039 = vmatpush3.bf16.msra.mxu1 %v7897_v53  ;;  %v2153_v8 = vadd.f32 %v2057_v60, %v1463_v0  ;;  %3063 = vmatmul.mubr.bf16.gmra.mxu0 %v9194_v2  ;;  %v2176_v20 = vadd.f32 %v6980_v63, %v2080_v5  ;;  %v2069_v0 = vld [vmem:[%s8946_s8 + $0x138] sm:$0xff] }
 0x225   : > { %v1465_v9 = vpop.f32.mrf.mxu0  ;;  %7040 = vmatprep.subr.bf16.mxu1 %v7898_v57  ;;  %v6982_v12 = vpop.f32.mrf.mxu1  ;;  %3072 = vmatprep.mubr.bf16.mxu0 %v10851_v1 }
 0x226   : > { %v2154_v11 = vadd.f32 %v2058_v3, %v1465_v9  ;;  %v6983_v21 = vadd.f32 %v6982_v12, %v6981_v6  ;;  %v9204_v25 = vpack.c.bf16 %v2153_v8, %v2150_v17  ;;  %v2067_v3 = vld [vmem:[%s8946_s8 + $0x128] sm:$0xff]  ;;  %v2066_v8 = vld [vmem:[%s8946_s8 + $0x120] sm:$0xff]  ;;  %v2092_v9 = vld [vmem:[%s8946_s8 + $0x1f0] sm:$0xff] }
 0x227   : > { %v1469_v22 = vpop.f32.mrf.mxu0  ;;  %v6984_v24 = vpop.f32.mrf.mxu1 }
 0x228   : > { %v9202_v23 = vpack.c.bf16 %v2154_v11, %v2151_v10  ;;  %7041 = vmatpush3.bf16.msra.mxu1 %v7899_v7  ;;  %v2179_v26 = vadd.f32 %v6983_v21, %v2083_v15  ;;  %v2156_v50 = vadd.f32 %v2060_v38, %v1469_v22  ;;  %v2070_v7 = vld [vmem:[%s8946_s8 + $0x140] sm:$0xff]  ;;  %v2095_v21 = vld [vmem:[%s8946_s8 + $0x208] sm:$0xff] }
 0x229   : > { %v1471_v28 = vpop.f32.mrf.mxu0  ;;  %v6985_v29 = vpop.f32.mrf.mxu1  ;;  %v2075_v38 = vld [vmem:[%s8946_s8 + $0x168] sm:$0xff] }
 0x22a   : > { %2839 = vmatprep.mubr.bf16.mxu1 %v9202_v23  ;;  %v6986_v34 = vadd.f32 %v6985_v29, %v6984_v24  ;;  %v9210_v36 = vpack.c.bf16 %v2179_v26, %v2176_v20  ;;  %v2157_v44 = vadd.f32 %v2061_v33, %v1471_v28 }
 0x22b   : > { %v1473_v35 = vpop.f32.mrf.mxu0  ;;  %2840 = vmatmul.mubr.bf16.gmra.mxu1 %v9204_v25  ;;  %v6987_v40 = vpop.f32.mrf.mxu1 }
 0x22c   : > { %v2159_v41 = vadd.f32 %v2063_v32, %v1473_v35  ;;  %3073 = vmatmul.mubr.bf16.gmra.mxu0 %v9210_v36  ;;  %v2182_v52 = vadd.f32 %v6986_v34, %v2086_v39  ;;  %v2073_v39 = vld [vmem:[%s8946_s8 + $0x158] sm:$0xff] }
 0x22d   : > { %v1475_v42 = vpop.f32.mrf.mxu0  ;;  %v6988_v47 = vpop.f32.mrf.mxu1  ;;  %3082 = vmatprep.mubr.bf16.mxu0 %v10851_v1 }
 0x22e   : > { %v2160_v45 = vadd.f32 %v2064_v37, %v1475_v42  ;;  %v6989_v53 = vadd.f32 %v6988_v47, %v6987_v40  ;;  %v9220_v59 = vpack.c.bf16 %v2159_v41, %v2156_v50  ;;  %v2098_v47 = vld [vmem:[%s8946_s8 + $0x220] sm:$0xff] }
 0x22f   : > { %v1479_v55 = vpop.f32.mrf.mxu0  ;;  %v6990_v57 = vpop.f32.mrf.mxu1 }
 0x230   : > { %v9218_v56 = vpack.c.bf16 %v2160_v45, %v2157_v44  ;;  %v2185_v60 = vadd.f32 %v6989_v53, %v2089_v48  ;;  %v2162_v22 = vadd.f32 %v2066_v8, %v1479_v55  ;;  %v2076_v44 = vld [vmem:[%s8946_s8 + $0x170] sm:$0xff] }
 0x231   : > { %v1481_v62 = vpop.f32.mrf.mxu0  ;;  %v6991_v63 = vpop.f32.mrf.mxu1  ;;  %v2072_v45 = vld [vmem:[%s8946_s8 + $0x150] sm:$0xff] }
 0x232   : > { %2849 = vmatprep.mubr.bf16.mxu1 %v9218_v56  ;;  %v6992_v4 = vadd.f32 %v6991_v63, %v6990_v57  ;;  %v9226_v6 = vpack.c.bf16 %v2185_v60, %v2182_v52  ;;  %v2163_v15 = vadd.f32 %v2067_v3, %v1481_v62  ;;  %v2101_v60 = vld [vmem:[%s8946_s8 + $0x238] sm:$0xff] }
 0x233   : > { %v1483_v5 = vpop.f32.mrf.mxu0  ;;  %2850 = vmatmul.mubr.bf16.gmra.mxu1 %v9220_v59  ;;  %v6993_v10 = vpop.f32.mrf.mxu1 }
 0x234   : > { %v2165_v11 = vadd.f32 %v2069_v0, %v1483_v5  ;;  %3083 = vmatmul.mubr.bf16.gmra.mxu0 %v9226_v6  ;;  %v2188_v24 = vadd.f32 %v6992_v4, %v2092_v9 }
 0x235   : > { %v1485_v12 = vpop.f32.mrf.mxu0  ;;  %v6994_v20 = vpop.f32.mrf.mxu1  ;;  %3092 = vmatprep.mubr.bf16.mxu0 %v10851_v1 }
 0x236   : > { %v2166_v17 = vadd.f32 %v2070_v7, %v1485_v12  ;;  %v6995_v26 = vadd.f32 %v6994_v20, %v6993_v10  ;;  %v9236_v33 = vpack.c.bf16 %v2165_v11, %v2162_v22  ;;  %v2081_v11 = vld [vmem:[%s8946_s8 + $0x198] sm:$0xff]  ;;  %v2079_v12 = vld [vmem:[%s8946_s8 + $0x188] sm:$0xff]  ;;  %v2078_v22 = vld [vmem:[%s8946_s8 + $0x180] sm:$0xff] }
 0x237   : > { %v1489_v28 = vpop.f32.mrf.mxu0  ;;  %v6996_v32 = vpop.f32.mrf.mxu1 }
 0x238   : > { %v9234_v29 = vpack.c.bf16 %v2166_v17, %v2163_v15  ;;  %v2191_v34 = vadd.f32 %v6995_v26, %v2095_v21  ;;  %v2168_v62 = vadd.f32 %v2072_v45, %v1489_v28  ;;  %v2082_v21 = vld [vmem:[%s8946_s8 + $0x1a0] sm:$0xff] }
 0x239   : > { %v1491_v35 = vpop.f32.mrf.mxu0  ;;  %v6997_v37 = vpop.f32.mrf.mxu1 }
 0x23a   : > { %2859 = vmatprep.mubr.bf16.mxu1 %v9234_v29  ;;  %v6998_v40 = vadd.f32 %v6997_v37, %v6996_v32  ;;  %v9242_v42 = vpack.c.bf16 %v2191_v34, %v2188_v24  ;;  %v2169_v53 = vadd.f32 %v2073_v39, %v1491_v35  ;;  %v2104_v24 = vld [vmem:[%s8946_s8 + $0x250] sm:$0xff] }
 0x23b   : > { %v1493_v41 = vpop.f32.mrf.mxu0  ;;  %2860 = vmatmul.mubr.bf16.gmra.mxu1 %v9236_v33  ;;  %v6999_v48 = vpop.f32.mrf.mxu1 }
 0x23c   : > { %v2171_v50 = vadd.f32 %v2075_v38, %v1493_v41  ;;  %3093 = vmatmul.mubr.bf16.gmra.mxu0 %v9242_v42  ;;  %v2194_v63 = vadd.f32 %v6998_v40, %v2098_v47  ;;  %v2107_v38 = vld [vmem:[%s8946_s8 + $0x268] sm:$0xff] }
 0x23d   : > { %v1495_v52 = vpop.f32.mrf.mxu0  ;;  %v7000_v57 = vpop.f32.mrf.mxu1  ;;  %3102 = vmatprep.mubr.bf16.mxu0 %v10851_v1 }
 0x23e   : > { %v2172_v55 = vadd.f32 %v2076_v44, %v1495_v52  ;;  %v7001_v0 = vadd.f32 %v7000_v57, %v6999_v48  ;;  %v9252_v7 = vpack.c.bf16 %v2171_v50, %v2168_v62 }
 0x23f   : > { %v1499_v3 = vpop.f32.mrf.mxu0  ;;  %v7002_v5 = vpop.f32.mrf.mxu1 }
 0x240   : > { %v9250_v4 = vpack.c.bf16 %v2172_v55, %v2169_v53  ;;  %v2197_v8 = vadd.f32 %v7001_v0, %v2101_v60  ;;  %v2174_v39 = vadd.f32 %v2078_v22, %v1499_v3  ;;  %v2087_v55 = vld [vmem:[%s8946_s8 + $0x1c8] sm:$0xff]  ;;  %v2085_v60 = vld [vmem:[%s8946_s8 + $0x1b8] sm:$0xff]  ;;  %v2088_v0 = vld [vmem:[%s8946_s8 + $0x1d0] sm:$0xff] }
 0x241   : > { %v1501_v9 = vpop.f32.mrf.mxu0  ;;  %v7003_v10 = vpop.f32.mrf.mxu1  ;;  %v2084_v3 = vld [vmem:[%s8946_s8 + $0x1b0] sm:$0xff] }
 0x242   : > { %2869 = vmatprep.mubr.bf16.mxu1 %v9250_v4  ;;  %v7004_v15 = vadd.f32 %v7003_v10, %v7002_v5  ;;  %v9258_v20 = vpack.c.bf16 %v2197_v8, %v2194_v63  ;;  %v2175_v34 = vadd.f32 %v2079_v12, %v1501_v9  ;;  %v2110_v5 = vld [vmem:[%s8946_s8 + $0x280] sm:$0xff] }
 0x243   : > { %v1503_v17 = vpop.f32.mrf.mxu0  ;;  %2870 = vmatmul.mubr.bf16.gmra.mxu1 %v9252_v7  ;;  %v7005_v26 = vpop.f32.mrf.mxu1 }
 0x244   : > { %v2177_v28 = vadd.f32 %v2081_v11, %v1503_v17  ;;  %3103 = vmatmul.mubr.bf16.gmra.mxu0 %v9258_v20  ;;  %v2200_v40 = vadd.f32 %v7004_v15, %v2104_v24  ;;  %v2113_v17 = vld [vmem:[%s8946_s8 + $0x298] sm:$0xff] }
 0x245   : > { %v1505_v32 = vpop.f32.mrf.mxu0  ;;  %v7006_v37 = vpop.f32.mrf.mxu1  ;;  %3112 = vmatprep.mubr.bf16.mxu0 %v10851_v1 }
 0x246   : > { %v2178_v35 = vadd.f32 %v2082_v21, %v1505_v32  ;;  %v7007_v41 = vadd.f32 %v7006_v37, %v7005_v26  ;;  %v9268_v48 = vpack.c.bf16 %v2177_v28, %v2174_v39  ;;  %v2093_v39 = vld [vmem:[%s8946_s8 + $0x1f8] sm:$0xff] }
 0x247   : > { %v1509_v44 = vpop.f32.mrf.mxu0  ;;  %v7008_v47 = vpop.f32.mrf.mxu1 }
 0x248   : > { %v9266_v45 = vpack.c.bf16 %v2178_v35, %v2175_v34  ;;  %v2203_v50 = vadd.f32 %v7007_v41, %v2107_v38  ;;  %v2180_v21 = vadd.f32 %v2084_v3, %v1509_v44  ;;  %v2091_v41 = vld [vmem:[%s8946_s8 + $0x1e8] sm:$0xff] }
 0x249   : > { %v1511_v52 = vpop.f32.mrf.mxu0  ;;  %v7009_v53 = vpop.f32.mrf.mxu1 }
 0x24a   : > { %2879 = vmatprep.mubr.bf16.mxu1 %v9266_v45  ;;  %v9272_v57 = vpack.c.bf16 %v2203_v50, %v2200_v40  ;;  %v7010_v62 = vadd.f32 %v7009_v53, %v7008_v47  ;;  %v2181_v11 = vadd.f32 %v2085_v60, %v1511_v52  ;;  %v2094_v50 = vld [vmem:[%s8946_s8 + $0x200] sm:$0xff]  ;;  %v2116_v53 = vld [vmem:[%s8946_s8 + $0x2b0] sm:$0xff] }
 0x24b   : > { %v1513_v63 = vpop.f32.mrf.mxu0  ;;  %2880 = vmatmul.mubr.bf16.gmra.mxu1 %v9268_v48  ;;  %v7011_v8 = vpop.f32.mrf.mxu1  ;;  %v2090_v52 = vld [vmem:[%s8946_s8 + $0x1e0] sm:$0xff] }
 0x24c   : > { %v2183_v9 = vadd.f32 %v2087_v55, %v1513_v63  ;;  %3113 = vmatmul.mubr.bf16.gmra.mxu0 %v9272_v57  ;;  %v2206_v22 = vadd.f32 %v7010_v62, %v2110_v5  ;;  %v2119_v5 = vld [vmem:[%s8946_s8 + $0x2c8] sm:$0xff] }
 0x24d   : > { %v1515_v10 = vpop.f32.mrf.mxu0  ;;  %v7012_v15 = vpop.f32.mrf.mxu1  ;;  %3122 = vmatprep.mubr.bf16.mxu0 %v10851_v1 }
 0x24e   : > { %v2184_v12 = vadd.f32 %v2088_v0, %v1515_v10  ;;  %v7013_v24 = vadd.f32 %v7012_v15, %v7011_v8  ;;  %v9284_v34 = vpack.c.bf16 %v2183_v9, %v2180_v21 }
 0x24f   : > { %v1519_v26 = vpop.f32.mrf.mxu0  ;;  %v7014_v32 = vpop.f32.mrf.mxu1 }
 0x250   : > { %v9282_v28 = vpack.c.bf16 %v2184_v12, %v2181_v11  ;;  %v2209_v35 = vadd.f32 %v7013_v24, %v2113_v17  ;;  %v2186_v8 = vadd.f32 %v2090_v52, %v1519_v26  ;;  %v2097_v26 = vld [vmem:[%s8946_s8 + $0x218] sm:$0xff] }
 0x251   : > { %v1521_v37 = vpop.f32.mrf.mxu0  ;;  %v7015_v38 = vpop.f32.mrf.mxu1 }
 0x252   : > { %2889 = vmatprep.mubr.bf16.mxu1 %v9282_v28  ;;  %v9288_v40 = vpack.c.bf16 %v2209_v35, %v2206_v22  ;;  %v7016_v44 = vadd.f32 %v7015_v38, %v7014_v32  ;;  %v2187_v63 = vadd.f32 %v2091_v41, %v1521_v37  ;;  %v2099_v32 = vld [vmem:[%s8946_s8 + $0x228] sm:$0xff]  ;;  %v2096_v41 = vld [vmem:[%s8946_s8 + $0x210] sm:$0xff] }
 0x253   : > { %v1523_v47 = vpop.f32.mrf.mxu0  ;;  %2890 = vmatmul.mubr.bf16.gmra.mxu1 %v9284_v34  ;;  %v7017_v55 = vpop.f32.mrf.mxu1 }
 0x254   : > { %v2189_v60 = vadd.f32 %v2093_v39, %v1523_v47  ;;  %3123 = vmatmul.mubr.bf16.gmra.mxu0 %v9288_v40  ;;  %v2212_v9 = vadd.f32 %v7016_v44, %v2116_v53  ;;  %v2100_v39 = vld [vmem:[%s8946_s8 + $0x230] sm:$0xff]  ;;  %v2122_v44 = vld [vmem:[%s8946_s8 + $0x2e0] sm:$0xff] }
 0x255   : > { %v1525_v62 = vpop.f32.mrf.mxu0  ;;  %v7018_v3 = vpop.f32.mrf.mxu1  ;;  %3132 = vmatprep.mubr.bf16.mxu0 %v10851_v1 }
 0x256   : > { %v2190_v0 = vadd.f32 %v2094_v50, %v1525_v62  ;;  %v7019_v10 = vadd.f32 %v7018_v3, %v7017_v55  ;;  %v9300_v17 = vpack.c.bf16 %v2189_v60, %v2186_v8  ;;  %v2125_v62 = vld [vmem:[%s8946_s8 + $0x2f8] sm:$0xff] }
 0x257   : > { %v1529_v11 = vpop.f32.mrf.mxu0  ;;  %v7020_v15 = vpop.f32.mrf.mxu1 }
 0x258   : > { %v9298_v12 = vpack.c.bf16 %v2190_v0, %v2187_v63  ;;  %v2215_v21 = vadd.f32 %v7019_v10, %v2119_v5  ;;  %v2192_v63 = vadd.f32 %v2096_v41, %v1529_v11  ;;  %v2106_v11 = vld [vmem:[%s8946_s8 + $0x260] sm:$0xff] }
 0x259   : > { %v1531_v22 = vpop.f32.mrf.mxu0  ;;  %v7021_v24 = vpop.f32.mrf.mxu1 }
 0x25a   : > { %2899 = vmatprep.mubr.bf16.mxu1 %v9298_v12  ;;  %v9304_v35 = vpack.c.bf16 %v2215_v21, %v2212_v9  ;;  %v7022_v37 = vadd.f32 %v7021_v24, %v7020_v15  ;;  %v2193_v53 = vadd.f32 %v2097_v26, %v1531_v22  ;;  %v2105_v21 = vld [vmem:[%s8946_s8 + $0x258] sm:$0xff]  ;;  %v2103_v24 = vld [vmem:[%s8946_s8 + $0x248] sm:$0xff]  ;;  %v2102_v26 = vld [vmem:[%s8946_s8 + $0x240] sm:$0xff] }
 0x25b   : > { %v1533_v38 = vpop.f32.mrf.mxu0  ;;  %2900 = vmatmul.mubr.bf16.gmra.mxu1 %v9300_v17  ;;  %v7023_v47 = vpop.f32.mrf.mxu1 }
 0x25c   : > { %v2195_v50 = vadd.f32 %v2099_v32, %v1533_v38  ;;  %3133 = vmatmul.mubr.bf16.gmra.mxu0 %v9304_v35  ;;  %v2218_v0 = vadd.f32 %v7022_v37, %v2122_v44 }
 0x25d   : > { %v1535_v52 = vpop.f32.mrf.mxu0  ;;  %v7024_v60 = vpop.f32.mrf.mxu1  ;;  %3142 = vmatprep.mubr.bf16.mxu0 %v10851_v1 }
 0x25e   : > { %v2196_v55 = vadd.f32 %v2100_v39, %v1535_v52  ;;  %v7025_v3 = vadd.f32 %v7024_v60, %v7023_v47  ;;  %v9316_v9 = vpack.c.bf16 %v2195_v50, %v2192_v63  ;;  %v7900_v60 = vld [vmem:[#allocation16 + $0xa8] ss:$12 sps:$4 sm:$0xff]  }
 0x25f   : > { %v1539_v5 = vpop.f32.mrf.mxu0 }
 0x260   : > { %v9314_v8 = vpack.c.bf16 %v2196_v55, %v2193_v53  ;;  %v2221_v10 = vadd.f32 %v7025_v3, %v2125_v62  ;;  %v2198_v44 = vadd.f32 %v2102_v26, %v1539_v5  ;;  %v2111_v55 = vld [vmem:[%s8946_s8 + $0x288] sm:$0xff]  ;;  %v2109_v62 = vld [vmem:[%s8946_s8 + $0x278] sm:$0xff] }
 0x261   : > { %v1541_v15 = vpop.f32.mrf.mxu0  ;;  %v7905_v3 = vld [vmem:[#allocation16 + $0x94] ss:$12 sps:$4 sm:$0xff]   ;;  %v7908_v26 = vld [vmem:[#allocation16 + $0x7c] ss:$12 sps:$4 sm:$0xff]  }
 0x262   : > { %2909 = vmatprep.mubr.bf16.mxu1 %v9314_v8  ;;  %v9320_v22 = vpack.c.bf16 %v2221_v10, %v2218_v0  ;;  %v2199_v39 = vadd.f32 %v2103_v24, %v1541_v15  ;;  %v2112_v0 = vld [vmem:[%s8946_s8 + $0x290] sm:$0xff] }
 0x263   : > { %v1543_v32 = vpop.f32.mrf.mxu0  ;;  %2910 = vmatmul.mubr.bf16.gmra.mxu1 %v9316_v9  ;;  %v2108_v10 = vld [vmem:[%s8946_s8 + $0x270] sm:$0xff] }
 0x264   : > { %v2201_v37 = vadd.f32 %v2105_v21, %v1543_v32  ;;  %3143 = vmatmul.mubr.bf16.gmra.mxu0 %v9320_v22  ;;  %v7903_v24 = vld [vmem:[#allocation16 + $0x90] ss:$12 sps:$4 sm:$0xff]  }
 0x265   : > { %v1545_v38 = vpop.f32.mrf.mxu0  ;;  %7398 = vmatprep.mubr.bf16.mxu0 %v9110_v16 }
 0x266   : > { %v2202_v41 = vadd.f32 %v2106_v11, %v1545_v38  ;;  %v9330_v52 = vpack.c.bf16 %v2201_v37, %v2198_v44  ;;  %v2115_v44 = vld [vmem:[%s8946_s8 + $0x2a8] sm:$0xff] }
 0x267   : > { %v1549_v47 = vpop.f32.mrf.mxu0 }
 0x268   : > { %v9328_v50 = vpack.c.bf16 %v2202_v41, %v2199_v39  ;;  %v2204_v32 = vadd.f32 %v2108_v10, %v1549_v47  ;;  %v7906_v41 = vld [vmem:[#allocation16 + $0x78] ss:$12 sps:$4 sm:$0xff]  }
 0x269   : > { %v1551_v53 = vpop.f32.mrf.mxu0  ;;  %v7911_v47 = vld [vmem:[#allocation16 + $0x64] ss:$12 sps:$4 sm:$0xff]  }
 0x26a   : > { %2919 = vmatprep.mubr.bf16.mxu1 %v9328_v50  ;;  %v2205_v5 = vadd.f32 %v2109_v62, %v1551_v53  ;;  %v2118_v53 = vld [vmem:[%s8946_s8 + $0x2c0] sm:$0xff] }
 0x26b   : > { %v1553_v63 = vpop.f32.mrf.mxu0  ;;  %2920 = vmatmul.mubr.bf16.gmra.mxu1 %v9330_v52 }
 0x26c   : > { %v2207_v15 = vadd.f32 %v2111_v55, %v1553_v63  ;;  %7399 = vmatmul.mubr.bf16.vlgmr.msra.gmra.mxu0 %v9116_v30  ;;  %v2117_v30 = vld [vmem:[%s8946_s8 + $0x2b8] sm:$0xff]  ;;  %v2114_v55 = vld [vmem:[%s8946_s8 + $0x2a0] sm:$0xff] }
 0x26d   : > { %v1555_v16 = vpop.f32.mrf.mxu0  ;;  %7402 = vmatprep.mubr.bf16.mxu0 %v9122_v43  ;;  %4117 = vmatpush1.bf16.msra.mxu0 %v7900_v60 }
 0x26e   : > { %v2208_v21 = vadd.f32 %v2112_v0, %v1555_v16  ;;  %4118 = vmatprep.subr.bf16.mxu0 %v7905_v3  ;;  %v9342_v38 = vpack.c.bf16 %v2207_v15, %v2204_v32  ;;  %v7909_v3 = vld [vmem:[#allocation16 + $0x60] ss:$12 sps:$4 sm:$0xff]   ;;  %v7912_v32 = vld [vmem:[#allocation16 + $0x48] ss:$12 sps:$4 sm:$0xff]  }
 0x26f   : > { %v1559_v11 = vpop.f32.mrf.mxu0  ;;  %v7914_v16 = vld [vmem:[#allocation16 + $0x4c] ss:$12 sps:$4 sm:$0xff]  }
 0x270   : > { %v9340_v37 = vpack.c.bf16 %v2208_v21, %v2205_v5  ;;  %v2210_v10 = vadd.f32 %v2114_v55, %v1559_v11  ;;  %v7917_v11 = vld [vmem:[#allocation16 + $0x34] ss:$12 sps:$4 sm:$0xff]  }
 0x271   : > { %v1561_v39 = vpop.f32.mrf.mxu0  ;;  %4119 = vmatpush1.bf16.msra.mxu0 %v7903_v24 }
 0x272   : > { %2929 = vmatprep.mubr.bf16.mxu1 %v9340_v37  ;;  %4120 = vmatprep.subr.bf16.mxu0 %v7908_v26  ;;  %v2211_v63 = vadd.f32 %v2115_v44, %v1561_v39  ;;  %v2121_v26 = vld [vmem:[%s8946_s8 + $0x2d8] sm:$0xff]  ;;  %v2124_v39 = vld [vmem:[%s8946_s8 + $0x2f0] sm:$0xff] }
 0x273   : > { %v1563_v43 = vpop.f32.mrf.mxu0  ;;  %2930 = vmatmul.mubr.bf16.gmra.mxu1 %v9342_v38 }
 0x274   : > { %v2213_v60 = vadd.f32 %v2117_v30, %v1563_v43  ;;  %7403 = vmatmul.mubr.bf16.gmra.mxu0 %v9130_v61  ;;  %v2123_v61 = vld [vmem:[%s8946_s8 + $0x2e8] sm:$0xff]  ;;  %v2120_v30 = vld [vmem:[%s8946_s8 + $0x2d0] sm:$0xff] }
 0x275   : > { %v1565_v62 = vpop.f32.mrf.mxu0  ;;  %7406 = vmatprep.mubr.bf16.mxu0 %v9146_v27  ;;  %4121 = vmatpush1.bf16.msra.mxu0 %v7906_v41 }
 0x276   : > { %v2214_v0 = vadd.f32 %v2118_v53, %v1565_v62  ;;  %4122 = vmatprep.subr.bf16.mxu0 %v7911_v47  ;;  %v9354_v21 = vpack.c.bf16 %v2213_v60, %v2210_v10  ;;  %v7915_v47 = vld [vmem:[#allocation16 + $0x30] ss:$12 sps:$4 sm:$0xff]   ;;  %v7924_v10 = vld [vmem:[#allocation16 + $0x168] ss:$12 sps:$4 sm:$0xff]  }
 0x277   : > { %v1569_v15 = vpop.f32.mrf.mxu0  ;;  %v7920_v60 = vld [vmem:[#allocation16 + $0x1c] ss:$12 sps:$4 sm:$0xff]  }
 0x278   : > { %v9352_v5 = vpack.c.bf16 %v2214_v0, %v2211_v63  ;;  %v2216_v55 = vadd.f32 %v2120_v30, %v1569_v15  ;;  %v7918_v0 = vld [vmem:[#allocation16 + $0x18] ss:$12 sps:$4 sm:$0xff]   ;;  %v7929_v15 = vld [vmem:[#allocation16 + $0x154] ss:$12 sps:$4 sm:$0xff]  }
 0x279   : > { %v1571_v24 = vpop.f32.mrf.mxu0  ;;  %4123 = vmatpush1.bf16.msra.mxu0 %v7909_v3  ;;  %v7926_v3 = vld [vmem:[#allocation16 + $0x16c] ss:$12 sps:$4 sm:$0xff]  }
 0x27a   : > { %2939 = vmatprep.mubr.bf16.mxu1 %v9352_v5  ;;  %4124 = vmatprep.subr.bf16.mxu0 %v7914_v16  ;;  %v2217_v43 = vadd.f32 %v2121_v26, %v1571_v24  ;;  %v7935_v16 = vld [vmem:[#allocation16 + $0x124] ss:$12 sps:$4 sm:$0xff]  }
 0x27b   : > { %v1573_v27 = vpop.f32.mrf.mxu0  ;;  %2940 = vmatmul.mubr.bf16.gmra.mxu1 %v9354_v21 }
 0x27c   : > { %v2219_v41 = vadd.f32 %v2123_v61, %v1573_v27  ;;  %7407 = vmatmul.mubr.bf16.gmra.mxu0 %v9162_v58  ;;  %v7923_v58 = vld [vmem:[#allocation16 + $0x4] ss:$12 sps:$4 sm:$0xff]   ;;  %v7951_v61 = vld [vmem:[#allocation16 + $0x22c] ss:$12 sps:$4 sm:$0xff]   ;;  %v7956_v27 = vld [vmem:[#allocation16 + $0x214] ss:$12 sps:$4 sm:$0xff]  }
 0x27d   : > { %v1575_v44 = vpop.f32.mrf.mxu0  ;;  %7410 = vmatprep.mubr.bf16.mxu0 %v9178_v31  ;;  %4125 = vmatpush1.bf16.msra.mxu0 %v7912_v32  ;;  %v7921_v31 = vld [vmem:[#allocation16] ss:$12 sps:$4 sm:$0xff]   ;;  %v7949_v32 = vld [vmem:[#allocation16 + $0x228] ss:$12 sps:$4 sm:$0xff]  }
 0x27e   : > { %v2220_v53 = vadd.f32 %v2124_v39, %v1575_v44  ;;  %4126 = vmatprep.subr.bf16.mxu0 %v7917_v11  ;;  %v9366_v63 = vpack.c.bf16 %v2219_v41, %v2216_v55  ;;  %4309 = vmatprep.subr.bf16.mxu1 %v7951_v61  ;;  %v7954_v39 = vld [vmem:[#allocation16 + $0x210] ss:$12 sps:$4 sm:$0xff]   ;;  %v7959_v41 = vld [vmem:[#allocation16 + $0x1f8] ss:$12 sps:$4 sm:$0xff]  }
 0x27f   : > { %v7966_v55 = vld [vmem:[#allocation16 + $0x1e4] ss:$12 sps:$4 sm:$0xff]  }
 0x280   : > { %v9364_v62 = vpack.c.bf16 %v2220_v53, %v2217_v43 }
 0x281   : > { %4127 = vmatpush1.bf16.msra.mxu0 %v7915_v47 }
 0x282   : > { %2949 = vmatprep.mubr.bf16.mxu1 %v9364_v62  ;;  %4128 = vmatprep.subr.bf16.mxu0 %v7920_v60 }
 0x283   : > { %2950 = vmatmul.mubr.bf16.gmra.mxu1 %v9366_v63 }
 0x284   : > { %3185 = vmatprep.mubr.bf16.mxu1 %v9138_v14  ;;  %7411 = vmatmul.mubr.bf16.gmra.mxu0 %v9194_v2  ;;  %v7927_v14 = vld [vmem:[#allocation16 + $0x150] ss:$12 sps:$4 sm:$0xff]  }
 0x285   : > { %7414 = vmatprep.mubr.bf16.mxu0 %v9210_v36  ;;  %4129 = vmatpush1.bf16.msra.mxu0 %v7918_v0  ;;  %v7932_v2 = vld [vmem:[#allocation16 + $0x13c] ss:$12 sps:$4 sm:$0xff]   ;;  %v7930_v36 = vld [vmem:[#allocation16 + $0x138] ss:$12 sps:$4 sm:$0xff]  }
 0x286   : > { %4130 = vmatprep.subr.bf16.mxu0 %v7923_v58 }
 0x289   : > { %4131 = vmatpush1.bf16.msra.mxu0 %v7921_v31 }
 0x28a   : > { %4132 = vmatprep.subr.bf16.mxu0 %v7926_v3 }
 0x28b   : > { %3186 = vmatmul.mubr.bf16.vlgmr.msra.gmra.mxu1 %v9140_v18  ;;  %v7933_v18 = vld [vmem:[#allocation16 + $0x120] ss:$12 sps:$4 sm:$0xff]  }
 0x28c   : > { %3193 = vmatprep.mubr.bf16.mxu1 %v9154_v46  ;;  %7415 = vmatmul.mubr.bf16.gmra.mxu0 %v9226_v6  ;;  %v7938_v46 = vld [vmem:[#allocation16 + $0x10c] ss:$12 sps:$4 sm:$0xff]   ;;  %v7936_v6 = vld [vmem:[#allocation16 + $0x108] ss:$12 sps:$4 sm:$0xff]  }
 0x28d   : > { %7418 = vmatprep.mubr.bf16.mxu0 %v9242_v42  ;;  %4133 = vmatpush2.bf16.msra.mxu0 %v7924_v10  ;;  %v7941_v42 = vld [vmem:[#allocation16 + $0xf4] ss:$12 sps:$4 sm:$0xff]   ;;  %v7971_v10 = vld [vmem:[#allocation16 + $0x1cc] ss:$12 sps:$4 sm:$0xff]  }
 0x28e   : > { %4134 = vmatprep.subr.bf16.mxu0 %v7929_v15  ;;  %4310 = vmatpush1.bf16.msra.mxu1 %v7949_v32  ;;  %v7969_v15 = vld [vmem:[#allocation16 + $0x1c8] ss:$12 sps:$4 sm:$0xff]  }
 0x28f   : > { %4311 = vmatprep.subr.bf16.mxu1 %v7956_v27  ;;  %v7981_v32 = vld [vmem:[#allocation16 + $0x19c] ss:$12 sps:$4 sm:$0xff]   ;;  %v7979_v27 = vld [vmem:[#allocation16 + $0x198] ss:$12 sps:$4 sm:$0xff]  }
 0x291   : > { %4135 = vmatpush2.bf16.msra.mxu0 %v7927_v14 }
 0x292   : > { %4136 = vmatprep.subr.bf16.mxu0 %v7932_v2  ;;  %4312 = vmatpush1.bf16.msra.mxu1 %v7954_v39 }
 0x293   : > { %3194 = vmatmul.mubr.bf16.gmra.mxu1 %v9156_v49  ;;  %v7939_v49 = vld [vmem:[#allocation16 + $0xf0] ss:$12 sps:$4 sm:$0xff]  }
 0x294   : > { %3201 = vmatprep.mubr.bf16.mxu1 %v9170_v13  ;;  %7419 = vmatmul.mubr.bf16.gmra.mxu0 %v9258_v20  ;;  %v7944_v13 = vld [vmem:[#allocation16 + $0xdc] ss:$12 sps:$4 sm:$0xff]   ;;  %v7942_v20 = vld [vmem:[#allocation16 + $0xd8] ss:$12 sps:$4 sm:$0xff]  }
 0x295   : > { %7422 = vmatprep.mubr.bf16.mxu0 %v9272_v57  ;;  %4137 = vmatpush2.bf16.msra.mxu0 %v7930_v36  ;;  %v7947_v57 = vld [vmem:[#allocation16 + $0xc4] ss:$12 sps:$4 sm:$0xff]  }
 0x296   : > { %4138 = vmatprep.subr.bf16.mxu0 %v7935_v16 }
 0x299   : > { %4139 = vmatpush2.bf16.msra.mxu0 %v7933_v18 }
 0x29a   : > { %4140 = vmatprep.subr.bf16.mxu0 %v7938_v46 }
 0x29b   : > { %3202 = vmatmul.mubr.bf16.gmra.mxu1 %v9172_v19  ;;  %v7945_v19 = vld [vmem:[#allocation16 + $0xc0] ss:$12 sps:$4 sm:$0xff]  }
 0x29c   : > { %3209 = vmatprep.mubr.bf16.mxu1 %v9186_v51  ;;  %7423 = vmatmul.mubr.bf16.gmra.mxu0 %v9288_v40 }
 0x29d   : > { %7426 = vmatprep.mubr.bf16.mxu0 %v9304_v35  ;;  %4141 = vmatpush2.bf16.msra.mxu0 %v7936_v6  ;;  %v7976_v6 = vld [vmem:[#allocation16 + $0x1b4] ss:$12 sps:$4 sm:$0xff]  }
 0x29e   : > { %4142 = vmatprep.subr.bf16.mxu0 %v7941_v42 }
 0x2a1   : > { %4143 = vmatpush2.bf16.msra.mxu0 %v7939_v49 }
 0x2a2   : > { %4144 = vmatprep.subr.bf16.mxu0 %v7944_v13 }
 0x2a3   : > { %3210 = vmatmul.mubr.bf16.gmra.mxu1 %v9188_v54 }
 0x2a4   : > { %3217 = vmatprep.mubr.bf16.mxu1 %v9202_v23  ;;  %7427 = vmatmul.mubr.bf16.gmra.mxu0 %v9320_v22 }
 0x2a5   : > { %4145 = vmatpush2.bf16.msra.mxu0 %v7942_v20 }
 0x2a6   : > { %4146 = vmatprep.subr.bf16.mxu0 %v7947_v57 }
 0x2a9   : > { %4147 = vmatpush2.bf16.msra.mxu0 %v7945_v19 }
 0x2ab   : > { %3218 = vmatmul.mubr.bf16.gmra.mxu1 %v9204_v25  ;;  %v7948_v25 = vld [vmem:[#allocation16 + $0x170] ss:$12 sps:$4 sm:$0xff]  }
 0x2ac   : > { %3225 = vmatprep.mubr.bf16.mxu1 %v9218_v56  ;;  %v9390_v51 = vpop.f32.mrf.mxu0  ;;  %7162 = vmatprep.subr.bf16.mxu0 %v7948_v25 }
 0x2ae   : > { %v9392_v40 = vpop.f32.mrf.mxu0 }
 0x2b0   : > { %v9394_v35 = vpop.f32.mrf.mxu0 }
 0x2b2   : > { %v9396_v54 = vpop.f32.mrf.mxu0 }
 0x2b3   : > { %3226 = vmatmul.mubr.bf16.gmra.mxu1 %v9220_v59 }
 0x2b4   : > { %3233 = vmatprep.mubr.bf16.mxu1 %v9234_v29  ;;  %v9400_v23 = vpop.f32.mrf.mxu0  ;;  %v2368_v29 = vlaneseq }
 0x2b6   : > { %v9402_v22 = vpop.f32.mrf.mxu0 }
 0x2b8   : > { %v9404_v24 = vpop.f32.mrf.mxu0 }
 0x2ba   : > { %v9406_v56 = vpop.f32.mrf.mxu0 }
 0x2bb   : > { %3234 = vmatmul.mubr.bf16.gmra.mxu1 %v9236_v33  ;;  %v9419_v33 = vshrl.u32 %v2368_v29, 7 }
 0x2bc   : > { %3241 = vmatprep.mubr.bf16.mxu1 %v9250_v4  ;;  %v9410_v26 = vpop.f32.mrf.mxu0  ;;  %v7961_v4 = vld [vmem:[#allocation16 + $0x1fc] ss:$12 sps:$4 sm:$0xff]  }
 0x2bd   : > { %4313 = vmatprep.subr.bf16.mxu1 %v7961_v4  ;;  %v9425_v43 = vsub.s32 1, %v9419_v33  ;;  %v9430_v47 = vsub.s32 0, %v9419_v33 }
 0x2be   : > { %v9412_v59 = vpop.f32.mrf.mxu0  ;;  %4314 = vmatpush1.bf16.msra.mxu1 %v7959_v41 }
 0x2bf   : > { %10921 = vst [vmem:[#allocation36_spill] sm:$0xff] %v9425_v43  ;;  %10922 = vst [vmem:[#allocation37_spill] sm:$0xff] %v9430_v47  ;;  %4315 = vmatprep.subr.bf16.mxu1 %v7966_v55 }
 0x2c0   : > { %v9414_v11 = vpop.f32.mrf.mxu0 }
 0x2c2   : > { %v9416_v30 = vpop.f32.mrf.mxu0 }
 0x2c3   : > { %3242 = vmatmul.mubr.bf16.gmra.mxu1 %v9252_v7  ;;  %v9435_v7 = vld [vmem:[%s10923_s30] sm:$0x7] }
 0x2c4   : > { %3249 = vmatprep.mubr.bf16.mxu1 %v9266_v45  ;;  %v9422_v44 = vpop.f32.mrf.mxu0  ;;  %v7964_v45 = vld [vmem:[#allocation16 + $0x1e0] ss:$12 sps:$4 sm:$0xff]   ;;  %v9441_v0 = vrot.slane %v9435_v7, %v9425_v43  ;;  %v9447_v31 = vrot.slane %v9435_v7, %v9430_v47 }
 0x2c5   : > { %4316 = vmatpush1.bf16.msra.mxu1 %v7964_v45 }
 0x2c6   : > { %v9427_v53 = vpop.f32.mrf.mxu0  ;;  %4317 = vmatprep.subr.bf16.mxu1 %v7971_v10 }
 0x2c8   : > { %v9437_v60 = vpop.f32.mrf.mxu0 }
 0x2c9   : > { %4318 = vmatpush1.bf16.msra.mxu1 %v7969_v15  ;;  %v7952_v15 = vld [vmem:[#allocation16 + $0xb0] ss:$12 sps:$4 sm:$0xff]  }
 0x2ca   : > { %v9443_v58 = vpop.f32.mrf.mxu0  ;;  %4319 = vmatprep.subr.bf16.mxu1 %v7976_v6  ;;  %v7953_v6 = vld [vmem:[#allocation16 + $0x158] ss:$12 sps:$4 sm:$0xff]  }
 0x2cb   : > { %v2801_v3 = vpop.f32.mrf.mxu1  ;;  %3250 = vmatmul.mubr.bf16.gmra.mxu1 %v9268_v48  ;;  %v7974_v48 = vld [vmem:[#allocation16 + $0x1b0] ss:$12 sps:$4 sm:$0xff]  }
 0x2cc   : > { %3257 = vmatprep.mubr.bf16.mxu1 %v9282_v28  ;;  %v9451_v14 = vpop.f32.mrf.mxu0  ;;  %v2802_v16 = vadd.f32 %v2801_v3, %v9447_v31 }
 0x2cd   : > { %v2803_v2 = vpop.f32.mrf.mxu1  ;;  %4320 = vmatpush1.bf16.msra.mxu1 %v7974_v48 }
 0x2ce   : > { %v2804_v36 = vadd.f32 %v2803_v2, %v9441_v0  ;;  %v9455_v18 = vpop.f32.mrf.mxu0  ;;  %v2995_v19 = vadd.f32 %v9390_v51, %v2802_v16  ;;  %4321 = vmatprep.subr.bf16.mxu1 %v7981_v32  ;;  %v7984_v2 = vld [vmem:[#allocation16 + $0x180] ss:$12 sps:$4 sm:$0xff]  }
 0x2cf   : > { %v2805_v46 = vpop.f32.mrf.mxu1 }
 0x2d0   : > { %v2806_v42 = vadd.f32 %v2805_v46, %v9447_v31  ;;  %v9458_v49 = vpop.f32.mrf.mxu0  ;;  %v2997_v13 = vadd.f32 %v9392_v40, %v2804_v36  ;;  %v3475_v55 = vmax.f32 %v2995_v19, 0.0 }
 0x2d1   : > { %v2807_v28 = vpop.f32.mrf.mxu1  ;;  %4322 = vmatpush1.bf16.msra.mxu1 %v7979_v27 }
 0x2d2   : > { %v2999_v20 = vadd.f32 %v9394_v35, %v2806_v42  ;;  %v2808_v57 = vadd.f32 %v2807_v28, %v9441_v0  ;;  %v9464_v25 = vpop.f32.mrf.mxu0  ;;  %v3476_v4 = vmax.f32 %v2997_v13, 0.0 }
 0x2d3   : > { %v2811_v61 = vpop.f32.mrf.mxu1  ;;  %3258 = vmatmul.mubr.bf16.gmra.mxu1 %v9284_v34 }
 0x2d4   : > { %v3001_v29 = vadd.f32 %v9396_v54, %v2808_v57  ;;  %3265 = vmatprep.mubr.bf16.mxu1 %v9298_v12  ;;  %v3478_v39 = vmax.f32 %v2999_v20, 0.0  ;;  %v9469_v40 = vpop.f32.mrf.mxu0  ;;  %v2812_v45 = vadd.f32 %v2811_v61, %v9447_v31  ;;  %v7986_v54 = vld [vmem:[#allocation16 + $0x184] ss:$12 sps:$4 sm:$0xff]  }
 0x2d5   : > { %v2813_v35 = vpop.f32.mrf.mxu1  ;;  %4323 = vmatprep.subr.bf16.mxu1 %v7986_v54  ;;  %v7963_v54 = vld [vmem:[#allocation16 + $0x128] ss:$12 sps:$4 sm:$0xff]  }
 0x2d6   : > { %v3479_v41 = vmax.f32 %v3001_v29, 0.0  ;;  %v2814_v51 = vadd.f32 %v2813_v35, %v9441_v0  ;;  %v9473_v34 = vpop.f32.mrf.mxu0  ;;  %v9478_v36 = vpack.c.bf16 %v3478_v39, %v3475_v55  ;;  %4324 = vmatpush1.bf16.msra.mxu1 %v7984_v2  ;;  %v3005_v13 = vadd.f32 %v9400_v23, %v2812_v45  ;;  %v7958_v29 = vld [vmem:[#allocation16 + $0x140] ss:$12 sps:$4 sm:$0xff]  }
 0x2d7   : > { %v2815_v3 = vpop.f32.mrf.mxu1 }
 0x2d8   : > { %v2816_v12 = vadd.f32 %v2815_v3, %v9447_v31  ;;  %v9476_v10 = vpack.c.bf16 %v3479_v41, %v3476_v4  ;;  %v9480_v16 = vpop.f32.mrf.mxu0  ;;  %v3007_v42 = vadd.f32 %v9402_v22, %v2814_v51  ;;  %v7957_v22 = vld [vmem:[#allocation16 + $0x98] ss:$12 sps:$4 sm:$0xff]   ;;  %v3481_v35 = vmax.f32 %v3005_v13, 0.0  ;;  %v7962_v51 = vld [vmem:[#allocation16 + $0x80] ss:$12 sps:$4 sm:$0xff]  }
 0x2d9   : > { %v2817_v46 = vpop.f32.mrf.mxu1 }
 0x2da   : > { %v3009_v48 = vadd.f32 %v9404_v24, %v2816_v12  ;;  %v2818_v28 = vadd.f32 %v2817_v46, %v9441_v0  ;;  %4148 = vmatprep.mubr.bf16.mxu0 %v9476_v10  ;;  %v9487_v20 = vpop.f32.mrf.mxu0  ;;  %v3482_v23 = vmax.f32 %v3007_v42, 0.0 }
 0x2db   : > { %v2821_v57 = vpop.f32.mrf.mxu1  ;;  %3266 = vmatmul.mubr.bf16.gmra.mxu1 %v9300_v17  ;;  %4149 = vmatmul.mubr.bf16.vlgmr.msra.gmra.mxu0 %v9478_v36 }
 0x2dc   : > { %v3011_v19 = vadd.f32 %v9406_v56, %v2818_v28  ;;  %3273 = vmatprep.mubr.bf16.mxu1 %v9314_v8  ;;  %7163 = vmatpush3.bf16.msra.mxu0 %v7952_v15  ;;  %v3484_v24 = vmax.f32 %v3009_v48, 0.0  ;;  %v9493_v61 = vpop.f32.mrf.mxu0  ;;  %v2822_v17 = vadd.f32 %v2821_v57, %v9447_v31  ;;  %v7968_v57 = vld [vmem:[#allocation16 + $0x110] ss:$12 sps:$4 sm:$0xff]  }
 0x2dd   : > { %v2823_v32 = vpop.f32.mrf.mxu1  ;;  %7164 = vmatprep.subr.bf16.mxu0 %v7953_v6 }
 0x2de   : > { %v3485_v27 = vmax.f32 %v3011_v19, 0.0  ;;  %v2824_v39 = vadd.f32 %v2823_v32, %v9441_v0  ;;  %v9497_v4 = vpop.f32.mrf.mxu0  ;;  %v9502_v55 = vpack.c.bf16 %v3484_v24, %v3481_v35  ;;  %v3015_v46 = vadd.f32 %v9410_v26, %v2822_v17  ;;  %v7973_v17 = vld [vmem:[#allocation16 + $0xf8] ss:$12 sps:$4 sm:$0xff]  }
 0x2df   : > { %v2825_v56 = vpop.f32.mrf.mxu1 }
 0x2e0   : > { %v2826_v8 = vadd.f32 %v2825_v56, %v9447_v31  ;;  %v9500_v41 = vpack.c.bf16 %v3485_v27, %v3482_v23  ;;  %7165 = vmatpush3.bf16.msra.mxu0 %v7957_v22  ;;  %v9504_v45 = vpop.f32.mrf.mxu0  ;;  %v3017_v12 = vadd.f32 %v9412_v59, %v2824_v39  ;;  %v7967_v59 = vld [vmem:[#allocation16 + $0x68] ss:$12 sps:$4 sm:$0xff]   ;;  %v3487_v24 = vmax.f32 %v3015_v46, 0.0  ;;  %v7972_v23 = vld [vmem:[#allocation16 + $0x50] ss:$12 sps:$4 sm:$0xff]  }
 0x2e1   : > { %v2827_v3 = vpop.f32.mrf.mxu1  ;;  %7166 = vmatprep.subr.bf16.mxu0 %v7958_v29 }
 0x2e2   : > { %v3019_v15 = vadd.f32 %v9414_v11, %v2826_v8  ;;  %v2828_v2 = vadd.f32 %v2827_v3, %v9441_v0  ;;  %4158 = vmatprep.mubr.bf16.mxu0 %v9500_v41  ;;  %v9511_v6 = vpop.f32.mrf.mxu0  ;;  %v3488_v26 = vmax.f32 %v3017_v12, 0.0 }
 0x2e3   : > { %v2831_v42 = vpop.f32.mrf.mxu1  ;;  %3274 = vmatmul.mubr.bf16.gmra.mxu1 %v9316_v9  ;;  %4159 = vmatmul.mubr.bf16.gmra.mxu0 %v9502_v55 }
 0x2e4   : > { %v3021_v48 = vadd.f32 %v9416_v30, %v2828_v2  ;;  %3281 = vmatprep.mubr.bf16.mxu1 %v9328_v50  ;;  %7167 = vmatpush3.bf16.msra.mxu0 %v7962_v51  ;;  %v3490_v11 = vmax.f32 %v3019_v15, 0.0  ;;  %v9517_v28 = vpop.f32.mrf.mxu0  ;;  %v2832_v9 = vadd.f32 %v2831_v42, %v9447_v31  ;;  %v7978_v42 = vld [vmem:[#allocation16 + $0xe0] ss:$12 sps:$4 sm:$0xff]  }
 0x2e5   : > { %v2833_v13 = vpop.f32.mrf.mxu1  ;;  %7168 = vmatprep.subr.bf16.mxu0 %v7963_v54 }
 0x2e6   : > { %v3491_v19 = vmax.f32 %v3021_v48, 0.0  ;;  %v2834_v22 = vadd.f32 %v2833_v13, %v9441_v0  ;;  %v9521_v32 = vpop.f32.mrf.mxu0  ;;  %v9526_v27 = vpack.c.bf16 %v3490_v11, %v3487_v24  ;;  %v3025_v3 = vadd.f32 %v9422_v44, %v2832_v9  ;;  %v7983_v9 = vld [vmem:[#allocation16 + $0xc8] ss:$12 sps:$4 sm:$0xff]  }
 0x2e7   : > { %v2835_v30 = vpop.f32.mrf.mxu1 }
 0x2e8   : > { %v2836_v50 = vadd.f32 %v2835_v30, %v9447_v31  ;;  %v9524_v29 = vpack.c.bf16 %v3491_v19, %v3488_v26  ;;  %7169 = vmatpush3.bf16.msra.mxu0 %v7967_v59  ;;  %v9528_v39 = vpop.f32.mrf.mxu0  ;;  %v3027_v56 = vadd.f32 %v9427_v53, %v2834_v22  ;;  %v7977_v53 = vld [vmem:[#allocation16 + $0x38] ss:$12 sps:$4 sm:$0xff]   ;;  %v3493_v11 = vmax.f32 %v3025_v3, 0.0  ;;  %v7982_v26 = vld [vmem:[#allocation16 + $0x20] ss:$12 sps:$4 sm:$0xff]  }
 0x2e9   : > { %v2837_v35 = vpop.f32.mrf.mxu1  ;;  %7170 = vmatprep.subr.bf16.mxu0 %v7968_v57 }
 0x2ea   : > { %v3029_v8 = vadd.f32 %v9437_v60, %v2836_v50  ;;  %v2838_v51 = vadd.f32 %v2837_v35, %v9441_v0  ;;  %4168 = vmatprep.mubr.bf16.mxu0 %v9524_v29  ;;  %v9535_v54 = vpop.f32.mrf.mxu0  ;;  %v3494_v44 = vmax.f32 %v3027_v56, 0.0 }
 0x2eb   : > { %v2841_v12 = vpop.f32.mrf.mxu1  ;;  %3282 = vmatmul.mubr.bf16.gmra.mxu1 %v9330_v52  ;;  %4169 = vmatmul.mubr.bf16.gmra.mxu0 %v9526_v27 }
 0x2ec   : > { %v3031_v15 = vadd.f32 %v9443_v58, %v2838_v51  ;;  %3289 = vmatprep.mubr.bf16.mxu1 %v9340_v37  ;;  %7171 = vmatpush3.bf16.msra.mxu0 %v7972_v23  ;;  %v3496_v60 = vmax.f32 %v3029_v8, 0.0  ;;  %v9541_v2 = vpop.f32.mrf.mxu0  ;;  %v2842_v52 = vadd.f32 %v2841_v12, %v9447_v31 }
 0x2ed   : > { %v2843_v46 = vpop.f32.mrf.mxu1  ;;  %7172 = vmatprep.subr.bf16.mxu0 %v7973_v17 }
 0x2ee   : > { %v3497_v48 = vmax.f32 %v3031_v15, 0.0  ;;  %v2844_v59 = vadd.f32 %v2843_v46, %v9441_v0  ;;  %v9545_v13 = vpop.f32.mrf.mxu0  ;;  %v9550_v19 = vpack.c.bf16 %v3496_v60, %v3493_v11  ;;  %v3035_v35 = vadd.f32 %v9451_v14, %v2842_v52 }
 0x2ef   : > { %v2845_v58 = vpop.f32.mrf.mxu1 }
 0x2f0   : > { %v2846_v37 = vadd.f32 %v2845_v58, %v9447_v31  ;;  %v9548_v57 = vpack.c.bf16 %v3497_v48, %v3494_v44  ;;  %7173 = vmatpush3.bf16.msra.mxu0 %v7977_v53  ;;  %v9552_v22 = vpop.f32.mrf.mxu0  ;;  %v3037_v30 = vadd.f32 %v9455_v18, %v2844_v59  ;;  %v7987_v18 = vld [vmem:[#allocation16 + $0x8] ss:$12 sps:$4 sm:$0xff]   ;;  %v3499_v53 = vmax.f32 %v3035_v35, 0.0 }
 0x2f1   : > { %v2847_v24 = vpop.f32.mrf.mxu1  ;;  %7174 = vmatprep.subr.bf16.mxu0 %v7978_v42 }
 0x2f2   : > { %v3039_v50 = vadd.f32 %v9458_v49, %v2846_v37  ;;  %v2848_v23 = vadd.f32 %v2847_v24, %v9441_v0  ;;  %4178 = vmatprep.mubr.bf16.mxu0 %v9548_v57  ;;  %v9559_v17 = vpop.f32.mrf.mxu0  ;;  %v3500_v12 = vmax.f32 %v3037_v30, 0.0 }
 0x2f3   : > { %v2851_v56 = vpop.f32.mrf.mxu1  ;;  %3290 = vmatmul.mubr.bf16.gmra.mxu1 %v9342_v38  ;;  %4179 = vmatmul.mubr.bf16.gmra.mxu0 %v9550_v19 }
 0x2f4   : > { %v3041_v8 = vadd.f32 %v9464_v25, %v2848_v23  ;;  %3297 = vmatprep.mubr.bf16.mxu1 %v9352_v5  ;;  %7175 = vmatpush3.bf16.msra.mxu0 %v7982_v26  ;;  %v3502_v49 = vmax.f32 %v3039_v50, 0.0  ;;  %v9565_v51 = vpop.f32.mrf.mxu0  ;;  %v2852_v38 = vadd.f32 %v2851_v56, %v9447_v31 }
 0x2f5   : > { %v2853_v3 = vpop.f32.mrf.mxu1  ;;  %7176 = vmatprep.subr.bf16.mxu0 %v7983_v9 }
 0x2f6   : > { %v3503_v14 = vmax.f32 %v3041_v8, 0.0  ;;  %v2854_v15 = vadd.f32 %v2853_v3, %v9441_v0  ;;  %v9569_v60 = vpop.f32.mrf.mxu0  ;;  %v9574_v42 = vpack.c.bf16 %v3502_v49, %v3499_v53  ;;  %v3045_v58 = vadd.f32 %v9469_v40, %v2852_v38 }
 0x2f7   : > { %v2855_v46 = vpop.f32.mrf.mxu1 }
 0x2f8   : > { %v2856_v25 = vadd.f32 %v2855_v46, %v9447_v31  ;;  %v9572_v5 = vpack.c.bf16 %v3503_v14, %v3500_v12  ;;  %7177 = vmatpush3.bf16.msra.mxu0 %v7987_v18  ;;  %v9576_v44 = vpop.f32.mrf.mxu0  ;;  %v3047_v59 = vadd.f32 %v9473_v34, %v2854_v15  ;;  %v3505_v40 = vmax.f32 %v3045_v58, 0.0 }
 0x2f9   : > { %v2857_v48 = vpop.f32.mrf.mxu1 }
 0x2fa   : > { %v3049_v11 = vadd.f32 %v9480_v16, %v2856_v25  ;;  %v2858_v52 = vadd.f32 %v2857_v48, %v9441_v0  ;;  %4188 = vmatprep.mubr.bf16.mxu0 %v9572_v5  ;;  %v9583_v37 = vpop.f32.mrf.mxu0  ;;  %v3506_v30 = vmax.f32 %v3047_v59, 0.0 }
 0x2fb   : > { %v2861_v26 = vpop.f32.mrf.mxu1  ;;  %3298 = vmatmul.mubr.bf16.gmra.mxu1 %v9354_v21  ;;  %4189 = vmatmul.mubr.bf16.gmra.mxu0 %v9574_v42 }
 0x2fc   : > { %v3051_v24 = vadd.f32 %v9487_v20, %v2858_v52  ;;  %3305 = vmatprep.mubr.bf16.mxu1 %v9364_v62  ;;  %v3508_v34 = vmax.f32 %v3049_v11, 0.0  ;;  %v9589_v9 = vpop.f32.mrf.mxu0  ;;  %v2862_v35 = vadd.f32 %v2861_v26, %v9447_v31 }
 0x2fd   : > { %v2863_v16 = vpop.f32.mrf.mxu1 }
 0x2fe   : > { %v3509_v50 = vmax.f32 %v3051_v24, 0.0  ;;  %v2864_v23 = vadd.f32 %v2863_v16, %v9441_v0  ;;  %v9593_v56 = vpop.f32.mrf.mxu0  ;;  %v9598_v20 = vpack.c.bf16 %v3508_v34, %v3505_v40  ;;  %v3055_v15 = vadd.f32 %v9493_v61, %v2862_v35 }
 0x2ff   : > { %v2865_v21 = vpop.f32.mrf.mxu1 }
 0x300   : > { %v2866_v8 = vadd.f32 %v2865_v21, %v9447_v31  ;;  %v9596_v18 = vpack.c.bf16 %v3509_v50, %v3506_v30  ;;  %v9600_v62 = vpop.f32.mrf.mxu0  ;;  %v3057_v3 = vadd.f32 %v9497_v4, %v2864_v23  ;;  %v3511_v61 = vmax.f32 %v3055_v15, 0.0 }
 0x301   : > { %v2867_v49 = vpop.f32.mrf.mxu1 }
 0x302   : > { %v3059_v12 = vadd.f32 %v9504_v45, %v2866_v8  ;;  %v2868_v14 = vadd.f32 %v2867_v49, %v9441_v0  ;;  %4198 = vmatprep.mubr.bf16.mxu0 %v9596_v18  ;;  %v9607_v53 = vpop.f32.mrf.mxu0  ;;  %v3512_v48 = vmax.f32 %v3057_v3, 0.0 }
 0x303   : > { %v2871_v38 = vpop.f32.mrf.mxu1  ;;  %3306 = vmatmul.mubr.bf16.gmra.mxu1 %v9366_v63  ;;  %4199 = vmatmul.mubr.bf16.gmra.mxu0 %v9598_v20 }
 0x304   : > { %v3061_v46 = vadd.f32 %v9511_v6, %v2868_v14  ;;  %4341 = vmatprep.mubr.bf16.mxu1 %v10851_v1  ;;  %v3514_v4 = vmax.f32 %v3059_v12, 0.0  ;;  %v9613_v25 = vpop.f32.mrf.mxu0  ;;  %v2872_v52 = vadd.f32 %v2871_v38, %v9447_v31 }
 0x305   : > { %v2873_v45 = vpop.f32.mrf.mxu1 }
 0x306   : > { %v3515_v59 = vmax.f32 %v3061_v46, 0.0  ;;  %v2874_v11 = vadd.f32 %v2873_v45, %v9441_v0  ;;  %v9617_v58 = vpop.f32.mrf.mxu0  ;;  %v9622_v6 = vpack.c.bf16 %v3514_v4, %v3511_v61  ;;  %v3065_v40 = vadd.f32 %v9517_v28, %v2872_v52 }
 0x307   : > { %v2875_v63 = vpop.f32.mrf.mxu1 }
 0x308   : > { %v2876_v26 = vadd.f32 %v2875_v63, %v9447_v31  ;;  %v9620_v24 = vpack.c.bf16 %v3515_v59, %v3512_v48  ;;  %v9624_v34 = vpop.f32.mrf.mxu0  ;;  %v3067_v30 = vadd.f32 %v9521_v32, %v2874_v11  ;;  %v3517_v15 = vmax.f32 %v3065_v40, 0.0 }
 0x309   : > { %v2877_v16 = vpop.f32.mrf.mxu1 }
 0x30a   : > { %v3069_v50 = vadd.f32 %v9528_v39, %v2876_v26  ;;  %v2878_v23 = vadd.f32 %v2877_v16, %v9441_v0  ;;  %4208 = vmatprep.mubr.bf16.mxu0 %v9620_v24  ;;  %v9631_v35 = vpop.f32.mrf.mxu0  ;;  %v3518_v32 = vmax.f32 %v3067_v30, 0.0 }
 0x30b   : > { %v2881_v21 = vpop.f32.mrf.mxu1  ;;  %4209 = vmatmul.mubr.bf16.gmra.mxu0 %v9622_v6 }
 0x30c   : > { %v3071_v8 = vadd.f32 %v9535_v54, %v2878_v23  ;;  %v3520_v49 = vmax.f32 %v3069_v50, 0.0  ;;  %v9635_v3 = vpop.f32.mrf.mxu0  ;;  %v2882_v38 = vadd.f32 %v2881_v21, %v9447_v31 }
 0x30d   : > { %v2883_v12 = vpop.f32.mrf.mxu1 }
 0x30e   : > { %v3521_v14 = vmax.f32 %v3071_v8, 0.0  ;;  %v2884_v39 = vadd.f32 %v2883_v12, %v9441_v0  ;;  %v9639_v46 = vpop.f32.mrf.mxu0  ;;  %v9644_v48 = vpack.c.bf16 %v3520_v49, %v3517_v15  ;;  %v3075_v63 = vadd.f32 %v9541_v2, %v2882_v38 }
 0x30f   : > { %v2885_v28 = vpop.f32.mrf.mxu1 }
 0x310   : > { %v2886_v4 = vadd.f32 %v2885_v28, %v9447_v31  ;;  %v9642_v45 = vpack.c.bf16 %v3521_v14, %v3518_v32  ;;  %v9646_v54 = vpop.f32.mrf.mxu0  ;;  %v3077_v11 = vadd.f32 %v9545_v13, %v2884_v39  ;;  %v3523_v8 = vmax.f32 %v3075_v63, 0.0 }
 0x311   : > { %v2887_v59 = vpop.f32.mrf.mxu1 }
 0x312   : > { %v3079_v61 = vadd.f32 %v9552_v22, %v2886_v4  ;;  %v2888_v52 = vadd.f32 %v2887_v59, %v9441_v0  ;;  %4218 = vmatprep.mubr.bf16.mxu0 %v9642_v45  ;;  %v9653_v26 = vpop.f32.mrf.mxu0  ;;  %v3524_v13 = vmax.f32 %v3077_v11, 0.0 }
 0x313   : > { %v2891_v16 = vpop.f32.mrf.mxu1  ;;  %4219 = vmatmul.mubr.bf16.gmra.mxu0 %v9644_v48 }
 0x314   : > { %v3081_v30 = vadd.f32 %v9559_v17, %v2888_v52  ;;  %v3526_v50 = vmax.f32 %v3079_v61, 0.0  ;;  %v9657_v23 = vpop.f32.mrf.mxu0  ;;  %v2892_v49 = vadd.f32 %v2891_v16, %v9447_v31 }
 0x315   : > { %v2893_v40 = vpop.f32.mrf.mxu1 }
 0x316   : > { %v3527_v21 = vmax.f32 %v3081_v30, 0.0  ;;  %v2894_v22 = vadd.f32 %v2893_v40, %v9441_v0  ;;  %v9661_v12 = vpop.f32.mrf.mxu0  ;;  %v9666_v39 = vpack.c.bf16 %v3526_v50, %v3523_v8  ;;  %v3085_v59 = vadd.f32 %v9565_v51, %v2892_v49 }
 0x317   : > { %v2895_v2 = vpop.f32.mrf.mxu1 }
 0x318   : > { %v2896_v32 = vadd.f32 %v2895_v2, %v9447_v31  ;;  %v9664_v14 = vpack.c.bf16 %v3527_v21, %v3524_v13  ;;  %v9668_v17 = vpop.f32.mrf.mxu0  ;;  %v3087_v38 = vadd.f32 %v9569_v60, %v2894_v22  ;;  %v3529_v40 = vmax.f32 %v3085_v59, 0.0 }
 0x319   : > { %v2897_v15 = vpop.f32.mrf.mxu1 }
 0x31a   : > { %v3089_v28 = vadd.f32 %v9576_v44, %v2896_v32  ;;  %v2898_v4 = vadd.f32 %v2897_v15, %v9441_v0  ;;  %4228 = vmatprep.mubr.bf16.mxu0 %v9664_v14  ;;  %v9675_v11 = vpop.f32.mrf.mxu0  ;;  %v3530_v60 = vmax.f32 %v3087_v38, 0.0 }
 0x31b   : > { %v2901_v61 = vpop.f32.mrf.mxu1  ;;  %4229 = vmatmul.mubr.bf16.gmra.mxu0 %v9666_v39 }
 0x31c   : > { %v3091_v52 = vadd.f32 %v9583_v37, %v2898_v4  ;;  %v3532_v63 = vmax.f32 %v3089_v28, 0.0  ;;  %v9679_v16 = vpop.f32.mrf.mxu0  ;;  %v2902_v13 = vadd.f32 %v2901_v61, %v9447_v31 }
 0x31d   : > { %v2903_v30 = vpop.f32.mrf.mxu1 }
 0x31e   : > { %v3533_v50 = vmax.f32 %v3091_v52, 0.0  ;;  %v2904_v44 = vadd.f32 %v2903_v30, %v9441_v0  ;;  %v9683_v21 = vpop.f32.mrf.mxu0  ;;  %v9688_v49 = vpack.c.bf16 %v3532_v63, %v3529_v40  ;;  %v3095_v28 = vadd.f32 %v9589_v9, %v2902_v13 }
 0x31f   : > { %v2905_v51 = vpop.f32.mrf.mxu1 }
 0x320   : > { %v2906_v22 = vadd.f32 %v2905_v51, %v9447_v31  ;;  %v9686_v8 = vpack.c.bf16 %v3533_v50, %v3530_v60  ;;  %v9690_v37 = vpop.f32.mrf.mxu0  ;;  %v3097_v32 = vadd.f32 %v9593_v56, %v2904_v44  ;;  %v3535_v50 = vmax.f32 %v3095_v28, 0.0 }
 0x321   : > { %v2907_v2 = vpop.f32.mrf.mxu1 }
 0x322   : > { %v3099_v15 = vadd.f32 %v9600_v62, %v2906_v22  ;;  %v2908_v38 = vadd.f32 %v2907_v2, %v9441_v0  ;;  %4238 = vmatprep.mubr.bf16.mxu0 %v9686_v8  ;;  %v9697_v4 = vpop.f32.mrf.mxu0  ;;  %v3536_v56 = vmax.f32 %v3097_v32, 0.0 }
 0x323   : > { %v2911_v59 = vpop.f32.mrf.mxu1  ;;  %4239 = vmatmul.mubr.bf16.gmra.mxu0 %v9688_v49 }
 0x324   : > { %v3101_v61 = vadd.f32 %v9607_v53, %v2908_v38  ;;  %v3538_v52 = vmax.f32 %v3099_v15, 0.0  ;;  %v9701_v63 = vpop.f32.mrf.mxu0  ;;  %v2912_v44 = vadd.f32 %v2911_v59, %v9447_v31 }
 0x325   : > { %v2913_v30 = vpop.f32.mrf.mxu1 }
 0x326   : > { %v3539_v60 = vmax.f32 %v3101_v61, 0.0  ;;  %v2914_v62 = vadd.f32 %v2913_v30, %v9441_v0  ;;  %v9705_v40 = vpop.f32.mrf.mxu0  ;;  %v9710_v22 = vpack.c.bf16 %v3538_v52, %v3535_v50  ;;  %v3105_v28 = vadd.f32 %v9613_v25, %v2912_v44 }
 0x327   : > { %v2915_v9 = vpop.f32.mrf.mxu1 }
 0x328   : > { %v2916_v13 = vadd.f32 %v2915_v9, %v9447_v31  ;;  %v9708_v51 = vpack.c.bf16 %v3539_v60, %v3536_v56  ;;  %v9712_v53 = vpop.f32.mrf.mxu0  ;;  %v3107_v32 = vadd.f32 %v9617_v58, %v2914_v62  ;;  %v3541_v50 = vmax.f32 %v3105_v28, 0.0 }
 0x329   : > { %v2917_v2 = vpop.f32.mrf.mxu1 }
 0x32a   : > { %v3109_v15 = vadd.f32 %v9624_v34, %v2916_v13  ;;  %v2918_v38 = vadd.f32 %v2917_v2, %v9441_v0  ;;  %4248 = vmatprep.mubr.bf16.mxu0 %v9708_v51  ;;  %v9719_v59 = vpop.f32.mrf.mxu0  ;;  %v3542_v58 = vmax.f32 %v3107_v32, 0.0 }
 0x32b   : > { %v2921_v61 = vpop.f32.mrf.mxu1  ;;  %4249 = vmatmul.mubr.bf16.gmra.mxu0 %v9710_v22 }
 0x32c   : > { %v3111_v52 = vadd.f32 %v9631_v35, %v2918_v38  ;;  %v3544_v30 = vmax.f32 %v3109_v15, 0.0  ;;  %v9723_v56 = vpop.f32.mrf.mxu0  ;;  %v2922_v9 = vadd.f32 %v2921_v61, %v9447_v31 }
 0x32d   : > { %v2923_v60 = vpop.f32.mrf.mxu1 }
 0x32e   : > { %v3545_v62 = vmax.f32 %v3111_v52, 0.0  ;;  %v2924_v34 = vadd.f32 %v2923_v60, %v9441_v0  ;;  %v9727_v13 = vpop.f32.mrf.mxu0  ;;  %v9732_v1 = vpack.c.bf16 %v3544_v30, %v3541_v50  ;;  %v3115_v61 = vadd.f32 %v9635_v3, %v2922_v9 }
 0x32f   : > { %v2925_v25 = vpop.f32.mrf.mxu1 }
 0x330   : > { %v2926_v44 = vadd.f32 %v2925_v25, %v9447_v31  ;;  %v9730_v2 = vpack.c.bf16 %v3545_v62, %v3542_v58  ;;  %v9734_v35 = vpop.f32.mrf.mxu0  ;;  %v3117_v32 = vadd.f32 %v9639_v46, %v2924_v34  ;;  %v3547_v25 = vmax.f32 %v3115_v61, 0.0 }
 0x331   : > { %v2927_v15 = vpop.f32.mrf.mxu1 }
 0x332   : > { %v3119_v38 = vadd.f32 %v9646_v54, %v2926_v44  ;;  %v2928_v28 = vadd.f32 %v2927_v15, %v9441_v0  ;;  %4258 = vmatprep.mubr.bf16.mxu0 %v9730_v2  ;;  %v9741_v52 = vpop.f32.mrf.mxu0  ;;  %v3548_v46 = vmax.f32 %v3117_v32, 0.0 }
 0x333   : > { %v2931_v60 = vpop.f32.mrf.mxu1  ;;  %4259 = vmatmul.mubr.bf16.gmra.mxu0 %v9732_v1 }
 0x334   : > { %v3121_v30 = vadd.f32 %v9653_v26, %v2928_v28  ;;  %v3550_v58 = vmax.f32 %v3119_v38, 0.0  ;;  %v9745_v62 = vpop.f32.mrf.mxu0  ;;  %v2932_v44 = vadd.f32 %v2931_v60, %v9447_v31 }
 0x335   : > { %v2933_v50 = vpop.f32.mrf.mxu1 }
 0x336   : > { %v3551_v34 = vmax.f32 %v3121_v30, 0.0  ;;  %v2934_v54 = vadd.f32 %v2933_v50, %v9441_v0  ;;  %v9749_v15 = vpop.f32.mrf.mxu0  ;;  %v9754_v47 = vpack.c.bf16 %v3550_v58, %v3547_v25  ;;  %v3125_v60 = vadd.f32 %v9657_v23, %v2932_v44  ;;  %v9766_v58 = vld [vmem:[#allocation16 + $0x230] ss:$12 sps:$4 sm:$0xff]  }
 0x337   : > { %v2935_v3 = vpop.f32.mrf.mxu1  ;;  %7430 = vmatprep.subr.bf16.mxu1 %v9766_v58 }
 0x338   : > { %v2936_v9 = vadd.f32 %v2935_v3, %v9447_v31  ;;  %v9752_v43 = vpack.c.bf16 %v3551_v34, %v3548_v46  ;;  %10925 = vst [vmem:[#allocation39_spill] sm:$0xff] %v9754_v47  ;;  %v9756_v26 = vpop.f32.mrf.mxu0  ;;  %v3127_v32 = vadd.f32 %v9661_v12, %v2934_v54  ;;  %v3553_v23 = vmax.f32 %v3125_v60, 0.0 }
 0x339   : > { %v2937_v38 = vpop.f32.mrf.mxu1 }
 0x33a   : > { %10924 = vst [vmem:[#allocation38_spill] sm:$0xff] %v9752_v43  ;;  %v3129_v28 = vadd.f32 %v9668_v17, %v2936_v9  ;;  %v2938_v61 = vadd.f32 %v2937_v38, %v9441_v0  ;;  %4268 = vmatprep.mubr.bf16.mxu0 %v9752_v43  ;;  %v9763_v30 = vpop.f32.mrf.mxu0  ;;  %v3554_v17 = vmax.f32 %v3127_v32, 0.0 }
 0x33b   : > { %v2941_v50 = vpop.f32.mrf.mxu1  ;;  %4269 = vmatmul.mubr.bf16.gmra.mxu0 %v9754_v47 }
 0x33c   : > { %v3131_v46 = vadd.f32 %v9675_v11, %v2938_v61  ;;  %v3556_v34 = vmax.f32 %v3129_v28, 0.0  ;;  %v9769_v25 = vpop.f32.mrf.mxu0  ;;  %v2942_v44 = vadd.f32 %v2941_v50, %v9447_v31 }
 0x33d   : > { %v2943_v12 = vpop.f32.mrf.mxu1 }
 0x33e   : > { %v3557_v54 = vmax.f32 %v3131_v46, 0.0  ;;  %v2944_v3 = vadd.f32 %v2943_v12, %v9441_v0  ;;  %v9777_v43 = vpack.c.bf16 %v3556_v34, %v3553_v23  ;;  %v9779_v11 = vpop.f32.mrf.mxu0  ;;  %v3135_v60 = vadd.f32 %v9679_v16, %v2942_v44 }
 0x33f   : > { %v2945_v9 = vpop.f32.mrf.mxu1 }
 0x340   : > { %v2946_v38 = vadd.f32 %v2945_v9, %v9447_v31  ;;  %v9775_v47 = vpack.c.bf16 %v3557_v54, %v3554_v17  ;;  %v3137_v61 = vadd.f32 %v9683_v21, %v2944_v3  ;;  %v9788_v17 = vpop.f32.mrf.mxu0 }
 0x341   : > { %v2947_v28 = vpop.f32.mrf.mxu1 }
 0x342   : > { %v3139_v32 = vadd.f32 %v9690_v37, %v2946_v38  ;;  %v2948_v46 = vadd.f32 %v2947_v28, %v9441_v0  ;;  %4278 = vmatprep.mubr.bf16.mxu0 %v9775_v47  ;;  %v3560_v23 = vmax.f32 %v3137_v61, 0.0  ;;  %v3559_v37 = vmax.f32 %v3135_v60, 0.0 }
 0x343   : > { %v2951_v50 = vpop.f32.mrf.mxu1  ;;  %4279 = vmatmul.mubr.bf16.gmra.mxu0 %v9777_v43  ;;  %v9793_v28 = vsub.s32 2, %v9419_v33 }
 0x344   : > { %v3141_v12 = vadd.f32 %v9697_v4, %v2948_v46  ;;  %v3562_v34 = vmax.f32 %v3139_v32, 0.0  ;;  %v2952_v3 = vadd.f32 %v2951_v50, %v9447_v31  ;;  %v9800_v32 = vpop.f32.mrf.mxu0 }
 0x345   : > { %v2953_v54 = vpop.f32.mrf.mxu1  ;;  %10926 = vst [vmem:[#allocation40_spill] sm:$0xff] %v9793_v28 }
 0x346   : > { %v3563_v9 = vmax.f32 %v3141_v12, 0.0  ;;  %v2954_v21 = vadd.f32 %v2953_v54, %v9441_v0  ;;  %v9798_v4 = vpack.c.bf16 %v3562_v34, %v3559_v37  ;;  %v3145_v33 = vadd.f32 %v9701_v63, %v2952_v3  ;;  %v9813_v54 = vpop.f32.mrf.mxu0 }
 0x347   : > { %v2955_v38 = vpop.f32.mrf.mxu1  ;;  %v9811_v34 = vrot.slane %v9435_v7, %v9793_v28 }
 0x348   : > { %v2956_v16 = vadd.f32 %v2955_v38, %v9447_v31  ;;  %v9796_v44 = vpack.c.bf16 %v3563_v9, %v3560_v23  ;;  %v3147_v61 = vadd.f32 %v9705_v40, %v2954_v21  ;;  %v3565_v21 = vmax.f32 %v3145_v33, 0.0  ;;  %v9818_v38 = vpop.f32.mrf.mxu0 }
 0x349   : > { %v2957_v46 = vpop.f32.mrf.mxu1 }
 0x34a   : > { %v3149_v12 = vadd.f32 %v9712_v53, %v2956_v16  ;;  %v2958_v60 = vadd.f32 %v2957_v46, %v9441_v0  ;;  %4288 = vmatprep.mubr.bf16.mxu0 %v9796_v44  ;;  %v3566_v53 = vmax.f32 %v3147_v61, 0.0 }
 0x34b   : > { %v7042_v50 = vpop.f32.mrf.mxu1  ;;  %4289 = vmatmul.mubr.bf16.gmra.mxu0 %v9798_v4 }
 0x34c   : > { %v3151_v31 = vadd.f32 %v9719_v59, %v2958_v60  ;;  %v3568_v40 = vmax.f32 %v3149_v12, 0.0  ;;  %v9827_v60 = vpop.f32.mrf.mxu0 }
 0x34d   : > { %v7043_v23 = vpop.f32.mrf.mxu1 }
 0x34e   : > { %v3569_v9 = vmax.f32 %v3151_v31, 0.0  ;;  %v7044_v0 = vadd.f32 %v7043_v23, %v7042_v50  ;;  %v9820_v59 = vpack.c.bf16 %v3568_v40, %v3565_v21 }
 0x34f   : > { %v7045_v37 = vpop.f32.mrf.mxu1 }
 0x350   : > { %v3188_v63 = vadd.f32 %v7044_v0, %v9811_v34  ;;  %v9816_v3 = vpack.c.bf16 %v3569_v9, %v3566_v53  ;;  %v9831_v0 = vpop.f32.mrf.mxu0 }
 0x351   : > { %v7046_v16 = vpop.f32.mrf.mxu1 }
 0x352   : > { %v7047_v7 = vadd.f32 %v7046_v16, %v7045_v37  ;;  %4298 = vmatprep.mubr.bf16.mxu0 %v9816_v3  ;;  %v3349_v61 = vadd.f32 %v9727_v13, %v3188_v63  ;;  %v7989_v63 = vld [vmem:[#allocation16 + $0x218] ss:$12 sps:$4 sm:$0xff]  }
 0x353   : > { %v7048_v46 = vpop.f32.mrf.mxu1  ;;  %4299 = vmatmul.mubr.bf16.gmra.mxu0 %v9820_v59 }
 0x354   : > { %v3191_v12 = vadd.f32 %v7047_v7, %v9811_v34  ;;  %4534 = vmatprep.mubr.bf16.mxu0 %v9476_v10  ;;  %v3477_v23 = vmax.f32 %v3349_v61, 0.0  ;;  %v9840_v7 = vpop.f32.mrf.mxu0  ;;  %v10927_v61 = vmov 0  }
 0x355   : > { %v7049_v33 = vpop.f32.mrf.mxu1 }
 0x356   : > { %v3352_v50 = vadd.f32 %v9741_v52, %v3191_v12  ;;  %v7050_v31 = vadd.f32 %v7049_v33, %v7048_v46 }
 0x357   : > { %v7051_v40 = vpop.f32.mrf.mxu1 }
 0x358   : > { %v3480_v53 = vmax.f32 %v3352_v50, 0.0  ;;  %v3196_v9 = vadd.f32 %v7050_v31, %v9811_v34 }
 0x359   : > { %v7052_v21 = vpop.f32.mrf.mxu1 }
 0x35a   : > { %v9833_v37 = vpack.c.bf16 %v3480_v53, %v3477_v23  ;;  %v7053_v13 = vadd.f32 %v7052_v21, %v7051_v40  ;;  %v3357_v10 = vadd.f32 %v9723_v56, %v3196_v9  ;;  %v9846_v23 = vpop.f32.mrf.mxu0  ;;  %v7991_v21 = vld [vmem:[#allocation16 + $0x1e8] ss:$12 sps:$4 sm:$0xff]  }
 0x35b   : > { %v7054_v16 = vpop.f32.mrf.mxu1  ;;  %4535 = vmatmul.mubr.bf16.vlgmr.msra.gmra.mxu0 %v9478_v36  ;;  %v7990_v36 = vld [vmem:[#allocation16 + $0x200] ss:$12 sps:$4 sm:$0xff]  }
 0x35c   : > { %v3199_v52 = vadd.f32 %v7053_v13, %v9811_v34  ;;  %4342 = vmatmul.mubr.bf16.vlgmr.msra.gmra.mxu1 %v9833_v37  ;;  %4542 = vmatprep.mubr.bf16.mxu0 %v9500_v41  ;;  %v3483_v56 = vmax.f32 %v3357_v10, 0.0 }
 0x35d   : > { %v7055_v46 = vpop.f32.mrf.mxu1  ;;  %4351 = vmatprep.mubr.bf16.mxu1 %v10927_v61  ;;  %7431 = vmatpush3.bf16.msra.mxu1 %v9766_v58 }
 0x35e   : > { %v3360_v12 = vadd.f32 %v9734_v35, %v3199_v52  ;;  %v7056_v33 = vadd.f32 %v7055_v46, %v7054_v16  ;;  %7432 = vmatprep.subr.bf16.mxu1 %v7989_v63  ;;  %v9855_v16 = vpop.f32.mrf.mxu0  ;;  %v7992_v46 = vld [vmem:[#allocation16 + $0x1d0] ss:$12 sps:$4 sm:$0xff]  }
 0x35f   : > { %v7057_v50 = vpop.f32.mrf.mxu1 }
 0x360   : > { %v3486_v31 = vmax.f32 %v3360_v12, 0.0  ;;  %v3204_v40 = vadd.f32 %v7056_v33, %v9811_v34 }
 0x361   : > { %v7058_v41 = vpop.f32.mrf.mxu1  ;;  %7433 = vmatpush3.bf16.msra.mxu1 %v7989_v63 }
 0x362   : > { %v7059_v53 = vadd.f32 %v7058_v41, %v7057_v50  ;;  %v9848_v9 = vpack.c.bf16 %v3486_v31, %v3483_v56  ;;  %7434 = vmatprep.subr.bf16.mxu1 %v7990_v36  ;;  %v3365_v35 = vadd.f32 %v9749_v15, %v3204_v40  ;;  %v9860_v50 = vpop.f32.mrf.mxu0  ;;  %v7993_v40 = vld [vmem:[#allocation16 + $0x1b8] ss:$12 sps:$4 sm:$0xff]  }
 0x363   : > { %v7060_v58 = vpop.f32.mrf.mxu1  ;;  %4543 = vmatmul.mubr.bf16.gmra.mxu0 %v9502_v55 }
 0x364   : > { %v3207_v13 = vadd.f32 %v7059_v53, %v9811_v34  ;;  %4352 = vmatmul.mubr.bf16.gmra.mxu1 %v9848_v9  ;;  %4550 = vmatprep.mubr.bf16.mxu0 %v9524_v29  ;;  %v3489_v12 = vmax.f32 %v3365_v35, 0.0  ;;  %v9869_v53 = vpop.f32.mrf.mxu0 }
 0x365   : > { %v7061_v10 = vpop.f32.mrf.mxu1  ;;  %4361 = vmatprep.mubr.bf16.mxu1 %v10927_v61  ;;  %7435 = vmatpush3.bf16.msra.mxu1 %v7990_v36 }
 0x366   : > { %v3368_v63 = vadd.f32 %v9763_v30, %v3207_v13  ;;  %v7062_v52 = vadd.f32 %v7061_v10, %v7060_v58  ;;  %7436 = vmatprep.subr.bf16.mxu1 %v7991_v21  ;;  %v7994_v13 = vld [vmem:[#allocation16 + $0x1a0] ss:$12 sps:$4 sm:$0xff]  }
 0x367   : > { %v7063_v55 = vpop.f32.mrf.mxu1 }
 0x368   : > { %v3492_v15 = vmax.f32 %v3368_v63, 0.0  ;;  %v3212_v33 = vadd.f32 %v7062_v52, %v9811_v34  ;;  %v9874_v52 = vpop.f32.mrf.mxu0 }
 0x369   : > { %v7064_v56 = vpop.f32.mrf.mxu1  ;;  %7437 = vmatpush3.bf16.msra.mxu1 %v7991_v21 }
 0x36a   : > { %v7065_v29 = vadd.f32 %v7064_v56, %v7063_v55  ;;  %v9862_v31 = vpack.c.bf16 %v3492_v15, %v3489_v12  ;;  %7438 = vmatprep.subr.bf16.mxu1 %v7992_v46  ;;  %v3373_v30 = vadd.f32 %v9745_v62, %v3212_v33  ;;  %v7995_v15 = vld [vmem:[#allocation16 + $0x188] ss:$12 sps:$4 sm:$0xff]   ;;  %v9883_v56 = vpop.f32.mrf.mxu0 }
 0x36b   : > { %v7066_v36 = vpop.f32.mrf.mxu1  ;;  %4551 = vmatmul.mubr.bf16.gmra.mxu0 %v9526_v27 }
 0x36c   : > { %v3215_v41 = vadd.f32 %v7065_v29, %v9811_v34  ;;  %4362 = vmatmul.mubr.bf16.gmra.mxu1 %v9862_v31  ;;  %4558 = vmatprep.mubr.bf16.mxu0 %v9548_v57  ;;  %v3495_v10 = vmax.f32 %v3373_v30, 0.0 }
 0x36d   : > { %v7067_v58 = vpop.f32.mrf.mxu1  ;;  %4371 = vmatprep.mubr.bf16.mxu1 %v10927_v61  ;;  %7439 = vmatpush3.bf16.msra.mxu1 %v7992_v46 }
 0x36e   : > { %v3376_v21 = vadd.f32 %v9756_v26, %v3215_v41  ;;  %v7068_v35 = vadd.f32 %v7067_v58, %v7066_v36  ;;  %7440 = vmatprep.subr.bf16.mxu1 %v7993_v40  ;;  %v9888_v58 = vpop.f32.mrf.mxu0 }
 0x36f   : > { %v7069_v27 = vpop.f32.mrf.mxu1 }
 0x370   : > { %v3498_v62 = vmax.f32 %v3376_v21, 0.0  ;;  %v3220_v63 = vadd.f32 %v7068_v35, %v9811_v34 }
 0x371   : > { %v7070_v55 = vpop.f32.mrf.mxu1  ;;  %7441 = vmatpush3.bf16.msra.mxu1 %v7993_v40 }
 0x372   : > { %v7071_v57 = vadd.f32 %v7070_v55, %v7069_v27  ;;  %v9876_v12 = vpack.c.bf16 %v3498_v62, %v3495_v10  ;;  %7442 = vmatprep.subr.bf16.mxu1 %v7994_v13  ;;  %v3381_v26 = vadd.f32 %v9779_v11, %v3220_v63  ;;  %v9897_v10 = vpop.f32.mrf.mxu0 }
 0x373   : > { %v7072_v46 = vpop.f32.mrf.mxu1  ;;  %4559 = vmatmul.mubr.bf16.gmra.mxu0 %v9550_v19 }
 0x374   : > { %v3223_v33 = vadd.f32 %v7071_v57, %v9811_v34  ;;  %4372 = vmatmul.mubr.bf16.gmra.mxu1 %v9876_v12  ;;  %4566 = vmatprep.mubr.bf16.mxu0 %v9572_v5  ;;  %v3501_v19 = vmax.f32 %v3381_v26, 0.0 }
 0x375   : > { %v7073_v29 = vpop.f32.mrf.mxu1  ;;  %4381 = vmatprep.mubr.bf16.mxu1 %v10927_v61  ;;  %7443 = vmatpush3.bf16.msra.mxu1 %v7994_v13 }
 0x376   : > { %v3384_v40 = vadd.f32 %v9800_v32, %v3223_v33  ;;  %v7074_v36 = vadd.f32 %v7073_v29, %v7072_v46  ;;  %7444 = vmatprep.subr.bf16.mxu1 %v7995_v15 }
 0x377   : > { %v7075_v30 = vpop.f32.mrf.mxu1 }
 0x378   : > { %v3504_v41 = vmax.f32 %v3384_v40, 0.0  ;;  %v3228_v11 = vadd.f32 %v7074_v36, %v9811_v34 }
 0x379   : > { %v7076_v21 = vpop.f32.mrf.mxu1  ;;  %7445 = vmatpush3.bf16.msra.mxu1 %v7995_v15 }
 0x37a   : > { %v7077_v5 = vadd.f32 %v7076_v21, %v7075_v30  ;;  %v9890_v35 = vpack.c.bf16 %v3504_v41, %v3501_v19  ;;  %v3389_v13 = vadd.f32 %v9769_v25, %v3228_v11  ;;  %v9902_v25 = vpop.f32.mrf.mxu0 }
 0x37b   : > { %v7078_v27 = vpop.f32.mrf.mxu1  ;;  %4567 = vmatmul.mubr.bf16.gmra.mxu0 %v9574_v42 }
 0x37c   : > { %v3231_v32 = vadd.f32 %v7077_v5, %v9811_v34  ;;  %4382 = vmatmul.mubr.bf16.gmra.mxu1 %v9890_v35  ;;  %4574 = vmatprep.mubr.bf16.mxu0 %v9596_v18  ;;  %v3507_v15 = vmax.f32 %v3389_v13, 0.0 }
 0x37d   : > { %v7079_v62 = vpop.f32.mrf.mxu1  ;;  %4391 = vmatprep.mubr.bf16.mxu1 %v10927_v61 }
 0x37e   : > { %v3392_v63 = vadd.f32 %v9788_v17, %v3231_v32  ;;  %v7080_v55 = vadd.f32 %v7079_v62, %v7078_v27  ;;  %v9911_v17 = vpop.f32.mrf.mxu0 }
 0x37f   : > { %v7081_v57 = vpop.f32.mrf.mxu1 }
 0x380   : > { %v3510_v46 = vmax.f32 %v3392_v63, 0.0  ;;  %v3236_v42 = vadd.f32 %v7080_v55, %v9811_v34 }
 0x381   : > { %v7082_v26 = vpop.f32.mrf.mxu1 }
 0x382   : > { %v7083_v33 = vadd.f32 %v7082_v26, %v7081_v57  ;;  %v9904_v29 = vpack.c.bf16 %v3510_v46, %v3507_v15  ;;  %v3397_v40 = vadd.f32 %v9818_v38, %v3236_v42  ;;  %v9916_v38 = vpop.f32.mrf.mxu0 }
 0x383   : > { %v7084_v18 = vpop.f32.mrf.mxu1  ;;  %4575 = vmatmul.mubr.bf16.gmra.mxu0 %v9598_v20 }
 0x384   : > { %v3239_v36 = vadd.f32 %v7083_v33, %v9811_v34  ;;  %4392 = vmatmul.mubr.bf16.gmra.mxu1 %v9904_v29  ;;  %4582 = vmatprep.mubr.bf16.mxu0 %v9620_v24  ;;  %v3513_v21 = vmax.f32 %v3397_v40, 0.0 }
 0x385   : > { %v7085_v30 = vpop.f32.mrf.mxu1  ;;  %4401 = vmatprep.mubr.bf16.mxu1 %v10927_v61 }
 0x386   : > { %v3400_v19 = vadd.f32 %v9831_v0, %v3239_v36  ;;  %v7086_v41 = vadd.f32 %v7085_v30, %v7084_v18  ;;  %v9925_v0 = vpop.f32.mrf.mxu0 }
 0x387   : > { %v7087_v11 = vpop.f32.mrf.mxu1 }
 0x388   : > { %v3516_v5 = vmax.f32 %v3400_v19, 0.0  ;;  %v3244_v20 = vadd.f32 %v7086_v41, %v9811_v34 }
 0x389   : > { %v7088_v27 = vpop.f32.mrf.mxu1 }
 0x38a   : > { %v7089_v13 = vadd.f32 %v7088_v27, %v7087_v11  ;;  %v9918_v32 = vpack.c.bf16 %v3516_v5, %v3513_v21  ;;  %v3405_v62 = vadd.f32 %v9813_v54, %v3244_v20  ;;  %v9930_v54 = vpop.f32.mrf.mxu0 }
 0x38b   : > { %v7090_v24 = vpop.f32.mrf.mxu1  ;;  %4583 = vmatmul.mubr.bf16.gmra.mxu0 %v9622_v6 }
 0x38c   : > { %v3247_v63 = vadd.f32 %v7089_v13, %v9811_v34  ;;  %4402 = vmatmul.mubr.bf16.gmra.mxu1 %v9918_v32  ;;  %4590 = vmatprep.mubr.bf16.mxu0 %v9642_v45  ;;  %v3519_v42 = vmax.f32 %v3405_v62, 0.0 }
 0x38d   : > { %v7091_v55 = vpop.f32.mrf.mxu1  ;;  %4411 = vmatprep.mubr.bf16.mxu1 %v10927_v61 }
 0x38e   : > { %v3408_v57 = vadd.f32 %v9827_v60, %v3247_v63  ;;  %v7092_v15 = vadd.f32 %v7091_v55, %v7090_v24  ;;  %v9939_v60 = vpop.f32.mrf.mxu0 }
 0x38f   : > { %v7093_v46 = vpop.f32.mrf.mxu1 }
 0x390   : > { %v3522_v26 = vmax.f32 %v3408_v57, 0.0  ;;  %v3252_v6 = vadd.f32 %v7092_v15, %v9811_v34 }
 0x391   : > { %v7094_v33 = vpop.f32.mrf.mxu1 }
 0x392   : > { %v7095_v18 = vadd.f32 %v7094_v33, %v7093_v46  ;;  %v9932_v40 = vpack.c.bf16 %v3522_v26, %v3519_v42  ;;  %v3413_v36 = vadd.f32 %v9846_v23, %v3252_v6  ;;  %v9944_v23 = vpop.f32.mrf.mxu0 }
 0x393   : > { %v7096_v45 = vpop.f32.mrf.mxu1  ;;  %4591 = vmatmul.mubr.bf16.gmra.mxu0 %v9644_v48 }
 0x394   : > { %v3255_v30 = vadd.f32 %v7095_v18, %v9811_v34  ;;  %4412 = vmatmul.mubr.bf16.gmra.mxu1 %v9932_v40  ;;  %4598 = vmatprep.mubr.bf16.mxu0 %v9664_v14  ;;  %v3525_v5 = vmax.f32 %v3413_v36, 0.0 }
 0x395   : > { %v7097_v19 = vpop.f32.mrf.mxu1  ;;  %4421 = vmatprep.mubr.bf16.mxu1 %v10927_v61 }
 0x396   : > { %v3416_v41 = vadd.f32 %v9860_v50, %v3255_v30  ;;  %v7098_v11 = vadd.f32 %v7097_v19, %v7096_v45 }
 0x397   : > { %v7099_v21 = vpop.f32.mrf.mxu1 }
 0x398   : > { %v3528_v20 = vmax.f32 %v3416_v41, 0.0  ;;  %v3260_v48 = vadd.f32 %v7098_v11, %v9811_v34 }
 0x399   : > { %v7100_v27 = vpop.f32.mrf.mxu1 }
 0x39a   : > { %v7101_v13 = vadd.f32 %v7100_v27, %v7099_v21  ;;  %v9946_v24 = vpack.c.bf16 %v3528_v20, %v3525_v5  ;;  %v3421_v63 = vadd.f32 %v9840_v7, %v3260_v48 }
 0x39b   : > { %v7102_v14 = vpop.f32.mrf.mxu1  ;;  %v9948_v62 = vpop.f32.mrf.mxu0  ;;  %4599 = vmatmul.mubr.bf16.gmra.mxu0 %v9666_v39 }
 0x39c   : > { %v3263_v50 = vadd.f32 %v7101_v13, %v9811_v34  ;;  %4422 = vmatmul.mubr.bf16.gmra.mxu1 %v9946_v24  ;;  %4606 = vmatprep.mubr.bf16.mxu0 %v9686_v8  ;;  %v3531_v39 = vmax.f32 %v3421_v63, 0.0 }
 0x39d   : > { %v7103_v55 = vpop.f32.mrf.mxu1  ;;  %v9955_v57 = vpop.f32.mrf.mxu0  ;;  %4431 = vmatprep.mubr.bf16.mxu1 %v10927_v61 }
 0x39e   : > { %v3424_v15 = vadd.f32 %v9855_v16, %v3263_v50  ;;  %v7104_v46 = vadd.f32 %v7103_v55, %v7102_v14 }
 0x39f   : > { %v7105_v42 = vpop.f32.mrf.mxu1  ;;  %v9959_v26 = vpop.f32.mrf.mxu0 }
 0x3a0   : > { %v3534_v6 = vmax.f32 %v3424_v15, 0.0  ;;  %v3268_v7 = vadd.f32 %v7104_v46, %v9811_v34 }
 0x3a1   : > { %v7106_v33 = vpop.f32.mrf.mxu1  ;;  %v9962_v18 = vpop.f32.mrf.mxu0 }
 0x3a2   : > { %v7107_v45 = vadd.f32 %v7106_v33, %v7105_v42  ;;  %v9964_v8 = vpack.c.bf16 %v3534_v6, %v3531_v39  ;;  %v3429_v16 = vadd.f32 %v9874_v52, %v3268_v7 }
 0x3a3   : > { %v7108_v36 = vpop.f32.mrf.mxu1  ;;  %v9966_v30 = vpop.f32.mrf.mxu0  ;;  %4607 = vmatmul.mubr.bf16.gmra.mxu0 %v9688_v49 }
 0x3a4   : > { %v3271_v19 = vadd.f32 %v7107_v45, %v9811_v34  ;;  %4432 = vmatmul.mubr.bf16.gmra.mxu1 %v9964_v8  ;;  %4614 = vmatprep.mubr.bf16.mxu0 %v9708_v51  ;;  %v3537_v49 = vmax.f32 %v3429_v16, 0.0 }
 0x3a5   : > { %v7109_v41 = vpop.f32.mrf.mxu1  ;;  %v9973_v11 = vpop.f32.mrf.mxu0  ;;  %4441 = vmatprep.mubr.bf16.mxu1 %v10927_v61 }
 0x3a6   : > { %v3432_v21 = vadd.f32 %v9888_v58, %v3271_v19  ;;  %v7110_v5 = vadd.f32 %v7109_v41, %v7108_v36 }
 0x3a7   : > { %v7111_v20 = vpop.f32.mrf.mxu1  ;;  %v9977_v48 = vpop.f32.mrf.mxu0 }
 0x3a8   : > { %v3540_v27 = vmax.f32 %v3432_v21, 0.0  ;;  %v3276_v52 = vadd.f32 %v7110_v5, %v9811_v34 }
 0x3a9   : > { %v7112_v13 = vpop.f32.mrf.mxu1  ;;  %v9980_v14 = vpop.f32.mrf.mxu0 }
 0x3aa   : > { %v7113_v63 = vadd.f32 %v7112_v13, %v7111_v20  ;;  %v9982_v51 = vpack.c.bf16 %v3540_v27, %v3537_v49  ;;  %v3437_v58 = vadd.f32 %v9869_v53, %v3276_v52  ;;  %v10928_v20 = vld [vmem:[#allocation38_spill] sm:$0xff] }
 0x3ab   : > { %v7114_v50 = vpop.f32.mrf.mxu1  ;;  %v9984_v55 = vpop.f32.mrf.mxu0  ;;  %4615 = vmatmul.mubr.bf16.gmra.mxu0 %v9710_v22 }
 0x3ac   : > { %v3279_v15 = vadd.f32 %v7113_v63, %v9811_v34  ;;  %4442 = vmatmul.mubr.bf16.gmra.mxu1 %v9982_v51  ;;  %4622 = vmatprep.mubr.bf16.mxu0 %v9730_v2  ;;  %v3543_v22 = vmax.f32 %v3437_v58, 0.0 }
 0x3ad   : > { %v7115_v46 = vpop.f32.mrf.mxu1  ;;  %v9991_v42 = vpop.f32.mrf.mxu0  ;;  %4451 = vmatprep.mubr.bf16.mxu1 %v10927_v61 }
 0x3ae   : > { %v3440_v39 = vadd.f32 %v9883_v56, %v3279_v15  ;;  %v7116_v6 = vadd.f32 %v7115_v46, %v7114_v50 }
 0x3af   : > { %v7117_v7 = vpop.f32.mrf.mxu1  ;;  %v9995_v33 = vpop.f32.mrf.mxu0 }
 0x3b0   : > { %v3546_v45 = vmax.f32 %v3440_v39, 0.0  ;;  %v3284_v53 = vadd.f32 %v7116_v6, %v9811_v34 }
 0x3b1   : > { %v7118_v36 = vpop.f32.mrf.mxu1  ;;  %v9998_v16 = vpop.f32.mrf.mxu0 }
 0x3b2   : > { %v7119_v19 = vadd.f32 %v7118_v36, %v7117_v7  ;;  %v10000_v2 = vpack.c.bf16 %v3546_v45, %v3543_v22  ;;  %v3445_v56 = vadd.f32 %v9902_v25, %v3284_v53  ;;  %v10929_v45 = vld [vmem:[#allocation39_spill] sm:$0xff] }
 0x3b3   : > { %v7120_v41 = vpop.f32.mrf.mxu1  ;;  %v10002_v21 = vpop.f32.mrf.mxu0  ;;  %4623 = vmatmul.mubr.bf16.gmra.mxu0 %v9732_v1 }
 0x3b4   : > { %v3287_v5 = vadd.f32 %v7119_v19, %v9811_v34  ;;  %4452 = vmatmul.mubr.bf16.gmra.mxu1 %v10000_v2  ;;  %4630 = vmatprep.mubr.bf16.mxu0 %v10928_v20  ;;  %v3549_v1 = vmax.f32 %v3445_v56, 0.0 }
 0x3b5   : > { %v7121_v49 = vpop.f32.mrf.mxu1  ;;  %v10009_v27 = vpop.f32.mrf.mxu0  ;;  %4461 = vmatprep.mubr.bf16.mxu1 %v10927_v61 }
 0x3b6   : > { %v3448_v52 = vadd.f32 %v9916_v38, %v3287_v5  ;;  %v7122_v13 = vadd.f32 %v7121_v49, %v7120_v41 }
 0x3b7   : > { %v7123_v63 = vpop.f32.mrf.mxu1  ;;  %v10013_v50 = vpop.f32.mrf.mxu0 }
 0x3b8   : > { %v3552_v58 = vmax.f32 %v3448_v52, 0.0  ;;  %v3292_v25 = vadd.f32 %v7122_v13, %v9811_v34 }
 0x3b9   : > { %v7124_v15 = vpop.f32.mrf.mxu1  ;;  %v10016_v46 = vpop.f32.mrf.mxu0 }
 0x3ba   : > { %v7125_v39 = vadd.f32 %v7124_v15, %v7123_v63  ;;  %v10018_v6 = vpack.c.bf16 %v3552_v58, %v3549_v1  ;;  %v3453_v38 = vadd.f32 %v9897_v10, %v3292_v25 }
 0x3bb   : > { %v7126_v7 = vpop.f32.mrf.mxu1  ;;  %v10020_v22 = vpop.f32.mrf.mxu0  ;;  %4631 = vmatmul.mubr.bf16.gmra.mxu0 %v10929_v45 }
 0x3bc   : > { %v3295_v53 = vadd.f32 %v7125_v39, %v9811_v34  ;;  %4462 = vmatmul.mubr.bf16.gmra.mxu1 %v10018_v6  ;;  %4638 = vmatprep.mubr.bf16.mxu0 %v9775_v47  ;;  %v3555_v49 = vmax.f32 %v3453_v38, 0.0 }
 0x3bd   : > { %v7127_v36 = vpop.f32.mrf.mxu1  ;;  %v10027_v19 = vpop.f32.mrf.mxu0  ;;  %4471 = vmatprep.mubr.bf16.mxu1 %v10927_v61 }
 0x3be   : > { %v3456_v41 = vadd.f32 %v9911_v17, %v3295_v53  ;;  %v7128_v56 = vadd.f32 %v7127_v36, %v7126_v7 }
 0x3bf   : > { %v7129_v5 = vpop.f32.mrf.mxu1  ;;  %v10031_v20 = vpop.f32.mrf.mxu0 }
 0x3c0   : > { %v3558_v52 = vmax.f32 %v3456_v41, 0.0  ;;  %v3300_v10 = vadd.f32 %v7128_v56, %v9811_v34 }
 0x3c1   : > { %v7130_v13 = vpop.f32.mrf.mxu1  ;;  %v10034_v63 = vpop.f32.mrf.mxu0 }
 0x3c2   : > { %v10036_v1 = vpack.c.bf16 %v3558_v52, %v3555_v49  ;;  %v7131_v47 = vadd.f32 %v7130_v13, %v7129_v5  ;;  %v3461_v17 = vadd.f32 %v9930_v54, %v3300_v10 }
 0x3c3   : > { %v7132_v58 = vpop.f32.mrf.mxu1  ;;  %v10038_v25 = vpop.f32.mrf.mxu0  ;;  %4639 = vmatmul.mubr.bf16.gmra.mxu0 %v9777_v43 }
 0x3c4   : > { %v3303_v15 = vadd.f32 %v7131_v47, %v9811_v34  ;;  %4472 = vmatmul.mubr.bf16.gmra.mxu1 %v10036_v1  ;;  %4646 = vmatprep.mubr.bf16.mxu0 %v9796_v44  ;;  %v3561_v43 = vmax.f32 %v3461_v17, 0.0 }
 0x3c5   : > { %v7133_v39 = vpop.f32.mrf.mxu1  ;;  %v10045_v7 = vpop.f32.mrf.mxu0  ;;  %4481 = vmatprep.mubr.bf16.mxu1 %v10927_v61 }
 0x3c6   : > { %v3464_v45 = vadd.f32 %v9944_v23, %v3303_v15  ;;  %v7134_v38 = vadd.f32 %v7133_v39, %v7132_v58 }
 0x3c7   : > { %v7135_v53 = vpop.f32.mrf.mxu1  ;;  %v10049_v36 = vpop.f32.mrf.mxu0 }
 0x3c8   : > { %v3564_v41 = vmax.f32 %v3464_v45, 0.0  ;;  %v3308_v54 = vadd.f32 %v7134_v38, %v9811_v34 }
 0x3c9   : > { %v7136_v56 = vpop.f32.mrf.mxu1  ;;  %v10052_v5 = vpop.f32.mrf.mxu0 }
 0x3ca   : > { %v3615_v49 = vpack.c.bf16 %v3564_v41, %v3561_v43  ;;  %v7137_v44 = vadd.f32 %v7136_v56, %v7135_v53  ;;  %v3469_v10 = vadd.f32 %v9925_v0, %v3308_v54 }
 0x3cb   : > { %v10054_v52 = vpop.f32.mrf.mxu0  ;;  %4647 = vmatmul.mubr.bf16.gmra.mxu0 %v9798_v4 }
 0x3cc   : > { %v3311_v23 = vadd.f32 %v7137_v44, %v9811_v34  ;;  %4482 = vmatmul.mubr.bf16.gmra.mxu1 %v3615_v49  ;;  %4654 = vmatprep.mubr.bf16.mxu0 %v9816_v3  ;;  %v3567_v17 = vmax.f32 %v3469_v10, 0.0 }
 0x3cd   : > { %v10060_v13 = vpop.f32.mrf.mxu0  ;;  %4491 = vmatprep.mubr.bf16.mxu1 %v10927_v61 }
 0x3ce   : > { %v3472_v47 = vadd.f32 %v9939_v60, %v3311_v23 }
 0x3cf   : > { %v10064_v58 = vpop.f32.mrf.mxu0 }
 0x3d0   : > { %v3570_v15 = vmax.f32 %v3472_v47, 0.0 }
 0x3d1   : > { %v10066_v39 = vpop.f32.mrf.mxu0 }
 0x3d2   : > { %v3618_v4 = vpack.c.bf16 %v3570_v15, %v3567_v17 }
 0x3d3   : > { %v10068_v45 = vpop.f32.mrf.mxu0  ;;  %4655 = vmatmul.mubr.bf16.gmra.mxu0 %v9820_v59 }
 0x3d4   : > { %4492 = vmatmul.mubr.bf16.gmra.mxu1 %v3618_v4 }
 0x3d5   : > { %v10071_v34 = vpop.f32.mrf.mxu0  ;;  %7446 = vmatprep.mubr.bf16.mxu1 %v9833_v37 }
 0x3d7   : > { %v10074_v3 = vpop.f32.mrf.mxu0 }
 0x3d9   : > { %v10076_v61 = vpop.f32.mrf.mxu0 }
 0x3db   : > { %v10078_v0 = vpop.f32.mrf.mxu0 }
 0x3dc   : > { %7447 = vmatmul.mubr.bf16.vlgmr.msra.gmra.mxu1 %v9848_v9 }
 0x3dd   : > { %v10081_v60 = vpop.f32.mrf.mxu0  ;;  %7450 = vmatprep.mubr.bf16.mxu1 %v9862_v31 }
 0x3df   : > { %v10084_v38 = vpop.f32.mrf.mxu0 }
 0x3e1   : > { %v10086_v59 = vpop.f32.mrf.mxu0 }
 0x3e3   : > { %v10088_v53 = vpop.f32.mrf.mxu0 }
 0x3e4   : > { %7451 = vmatmul.mubr.bf16.gmra.mxu1 %v9876_v12 }
 0x3e5   : > { %v10091_v37 = vpop.f32.mrf.mxu0  ;;  %7454 = vmatprep.mubr.bf16.mxu1 %v9890_v35 }
 0x3e7   : > { %v10094_v43 = vpop.f32.mrf.mxu0 }
 0x3e9   : > { %v10096_v41 = vpop.f32.mrf.mxu0 }
 0x3eb   : > { %v10098_v9 = vpop.f32.mrf.mxu0 }
 0x3ec   : > { %7455 = vmatmul.mubr.bf16.gmra.mxu1 %v9904_v29 }
 0x3ed   : > { %v10101_v31 = vpop.f32.mrf.mxu0  ;;  %7458 = vmatprep.mubr.bf16.mxu1 %v9918_v32 }
 0x3ef   : > { %v10104_v54 = vpop.f32.mrf.mxu0 }
 0x3f1   : > { %v10106_v56 = vpop.f32.mrf.mxu0 }
 0x3f3   : > { %v10108_v12 = vpop.f32.mrf.mxu0 }
 0x3f4   : > { %7459 = vmatmul.mubr.bf16.gmra.mxu1 %v9932_v40 }
 0x3f5   : > { %v10111_v35 = vpop.f32.mrf.mxu0  ;;  %7462 = vmatprep.mubr.bf16.mxu1 %v9946_v24 }
 0x3f6   : > { %10930 = vst [vmem:[#allocation38_spill] sm:$0xff] %v10111_v35 }
 0x3f7   : > { %v10114_v44 = vpop.f32.mrf.mxu0 }
 0x3f9   : > { %v10116_v10 = vpop.f32.mrf.mxu0 }
 0x3fa   : > { %10931 = vst [vmem:[#allocation39_spill] sm:$0xff] %v10116_v10 }
 0x3fb   : > { %v10118_v29 = vpop.f32.mrf.mxu0 }
 0x3fc   : > { %10932 = vst [vmem:[#allocation41_spill] sm:$0xff] %v10118_v29  ;;  %7463 = vmatmul.mubr.bf16.gmra.mxu1 %v9964_v8 }
 0x3fd   : > { %v10121_v32 = vpop.f32.mrf.mxu0  ;;  %7466 = vmatprep.mubr.bf16.mxu1 %v9982_v51 }
 0x3fe   : > { %10933 = vst [vmem:[#allocation42_spill] sm:$0xff] %v10121_v32 }
 0x3ff   : > { %v10124_v23 = vpop.f32.mrf.mxu0 }
 0x400   : > { %10934 = vst [vmem:[#allocation43_spill] sm:$0xff] %v10124_v23 }
 0x401   : > { %v10126_v47 = vpop.f32.mrf.mxu0 }
 0x402   : > { %10935 = vst [vmem:[#allocation44_spill] sm:$0xff] %v10126_v47 }
 0x403   : > { %v10128_v40 = vpop.f32.mrf.mxu0 }
 0x404   : > { %10936 = vst [vmem:[#allocation45_spill] sm:$0xff] %v10128_v40  ;;  %7467 = vmatmul.mubr.bf16.gmra.mxu1 %v10000_v2 }
 0x405   : > { %v10131_v24 = vpop.f32.mrf.mxu0  ;;  %7470 = vmatprep.mubr.bf16.mxu1 %v10018_v6  ;;  %v10152_v6 = vld [vmem:[%s10945_s14] sm:$0x7] }
 0x406   : > { %10937 = vst [vmem:[#allocation46_spill] sm:$0xff] %v10131_v24  ;;  %10946 = vst [vmem:[#allocation54_spill] sm:$0xff] %v10152_v6 }
 0x407   : > { %v10134_v17 = vpop.f32.mrf.mxu0 }
 0x408   : > { %10938 = vst [vmem:[#allocation47_spill] sm:$0xff] %v10134_v17 }
 0x409   : > { %v10136_v15 = vpop.f32.mrf.mxu0 }
 0x40a   : > { %10939 = vst [vmem:[#allocation48_spill] sm:$0xff] %v10136_v15 }
 0x40b   : > { %v10138_v8 = vpop.f32.mrf.mxu0 }
 0x40c   : > { %10940 = vst [vmem:[#allocation49_spill] sm:$0xff] %v10138_v8  ;;  %7471 = vmatmul.mubr.bf16.gmra.mxu1 %v10036_v1  ;;  %v10948_v8 = vld [vmem:[#allocation37_spill] sm:$0xff] }
 0x40d   : > { %v10141_v51 = vpop.f32.mrf.mxu0  ;;  %7474 = vmatprep.mubr.bf16.mxu1 %v3615_v49  ;;  %v10158_v1 = vrot.slane %v10152_v6, %v10948_v8  ;;  %v10950_v49 = vld [vmem:[#allocation36_spill] sm:$0xff] }
 0x40e   : > { %10941 = vst [vmem:[#allocation50_spill] sm:$0xff] %v10141_v51 }
 0x40f   : > { %v10143_v28 = vpop.f32.mrf.mxu0 }
 0x410   : > { %10942 = vst [vmem:[#allocation51_spill] sm:$0xff] %v10143_v28  ;;  %v10164_v28 = vrot.slane %v10152_v6, %v10950_v49  ;;  %v4155_v49 = vadd.f32 %v9959_v26, %v10158_v1 }
 0x411   : > { %v10145_v40 = vpop.f32.mrf.mxu0 }
 0x412   : > { %10943 = vst [vmem:[#allocation52_spill] sm:$0xff] %v10145_v40 }
 0x413   : > { %v10147_v2 = vpop.f32.mrf.mxu0 }
 0x414   : > { %10944 = vst [vmem:[#allocation53_spill] sm:$0xff] %v10147_v2  ;;  %7475 = vmatmul.mubr.bf16.gmra.mxu1 %v3618_v4  ;;  %v4151_v2 = vadd.f32 %v9948_v62, %v10158_v1  ;;  %v4153_v4 = vadd.f32 %v9955_v57, %v10164_v28  ;;  %v4157_v62 = vadd.f32 %v9962_v18, %v10164_v28 }
 0x415   : > { %v10154_v15 = vpop.f32.mrf.mxu0 }
 0x416   : > { %10947 = vst [vmem:[#allocation55_spill] sm:$0xff] %v10154_v15 }
 0x417   : > { %v10160_v51 = vpop.f32.mrf.mxu0 }
 0x418   : > { %10949 = vst [vmem:[#allocation56_spill] sm:$0xff] %v10160_v51 }
 0x419   : > { %v10166_v40 = vpop.f32.mrf.mxu0 }
 0x41a   : > { %10951 = vst [vmem:[#allocation57_spill] sm:$0xff] %v10166_v40 }
 0x41b   : > { %v7178_v24 = vpop.f32.mrf.mxu0 }
 0x41c   : > { %v4343_v17 = vpop.f32.mrf.mxu1 }
 0x41d   : > { %v10172_v15 = vadd.f32 %v4343_v17, %v4151_v2  ;;  %v7179_v8 = vpop.f32.mrf.mxu0 }
 0x41e   : > { %v10174_v47 = vadd.f32 %v7179_v8, %v7178_v24  ;;  %v4345_v51 = vpop.f32.mrf.mxu1  ;;  %v4161_v24 = vadd.f32 %v9966_v30, %v10158_v1  ;;  %v4163_v8 = vadd.f32 %v9973_v11, %v10164_v28  ;;  %v4165_v30 = vadd.f32 %v9977_v48, %v10158_v1 }
 0x41f   : > { %10952 = vst [vmem:[#allocation58_spill] sm:$0xff] %v10172_v15  ;;  %v10178_v6 = vadd.f32 %v4345_v51, %v4153_v4  ;;  %v7181_v40 = vpop.f32.mrf.mxu0 }
 0x420   : > { %10953 = vst [vmem:[#allocation59_spill] sm:$0xff] %v10174_v47  ;;  %v4347_v32 = vpop.f32.mrf.mxu1 }
 0x421   : > { %10954 = vst [vmem:[#allocation60_spill] sm:$0xff] %v10178_v6  ;;  %v10182_v23 = vadd.f32 %v4347_v32, %v4155_v49  ;;  %v7182_v29 = vpop.f32.mrf.mxu0 }
 0x422   : > { %v10184_v57 = vadd.f32 %v7182_v29, %v7181_v40  ;;  %v4349_v17 = vpop.f32.mrf.mxu1 }
 0x423   : > { %10955 = vst [vmem:[#allocation61_spill] sm:$0xff] %v10182_v23  ;;  %v10190_v26 = vadd.f32 %v4349_v17, %v4157_v62  ;;  %v7184_v51 = vpop.f32.mrf.mxu0 }
 0x424   : > { %10956 = vst [vmem:[#allocation62_spill] sm:$0xff] %v10184_v57  ;;  %v4353_v4 = vpop.f32.mrf.mxu1  ;;  %v4167_v57 = vadd.f32 %v9980_v14, %v10164_v28 }
 0x425   : > { %10957 = vst [vmem:[#allocation63_spill] sm:$0xff] %v10190_v26  ;;  %v10196_v32 = vadd.f32 %v4353_v4, %v4161_v24  ;;  %v7185_v29 = vpop.f32.mrf.mxu0 }
 0x426   : > { %v10198_v40 = vadd.f32 %v7185_v29, %v7184_v51  ;;  %v4355_v49 = vpop.f32.mrf.mxu1  ;;  %v4171_v51 = vadd.f32 %v9984_v55, %v10158_v1 }
 0x427   : > { %10958 = vst [vmem:[#allocation64_spill] sm:$0xff] %v10196_v32  ;;  %v10202_v2 = vadd.f32 %v4355_v49, %v4163_v8  ;;  %v7187_v62 = vpop.f32.mrf.mxu0 }
 0x428   : > { %10959 = vst [vmem:[#allocation65_spill] sm:$0xff] %v10198_v40  ;;  %v4357_v17 = vpop.f32.mrf.mxu1 }
 0x429   : > { %v10206_v11 = vadd.f32 %v4357_v17, %v4165_v30  ;;  %v7188_v47 = vpop.f32.mrf.mxu0 }
 0x42a   : > { %v10208_v18 = vadd.f32 %v7188_v47, %v7187_v62  ;;  %v4359_v24 = vpop.f32.mrf.mxu1  ;;  %v4175_v62 = vadd.f32 %v9995_v33, %v10158_v1 }
 0x42b   : > { %10960 = vst [vmem:[#allocation66_spill] sm:$0xff] %v10206_v11  ;;  %v10214_v48 = vadd.f32 %v4359_v24, %v4167_v57  ;;  %v7190_v8 = vpop.f32.mrf.mxu0  ;;  %v4173_v57 = vadd.f32 %v9991_v42, %v10164_v28  ;;  %v4177_v24 = vadd.f32 %v9998_v16, %v10164_v28 }
 0x42c   : > { %10961 = vst [vmem:[#allocation67_spill] sm:$0xff] %v10208_v18  ;;  %v4363_v29 = vpop.f32.mrf.mxu1 }
 0x42d   : > { %v10218_v14 = vadd.f32 %v4363_v29, %v4171_v51  ;;  %v7191_v30 = vpop.f32.mrf.mxu0 }
 0x42e   : > { %v10220_v17 = vadd.f32 %v7191_v30, %v7190_v8  ;;  %v4365_v47 = vpop.f32.mrf.mxu1 }
 0x42f   : > { %v7193_v55 = vpop.f32.mrf.mxu0  ;;  %v10232_v8 = vadd.f32 %v4365_v47, %v4173_v57  ;;  %v4185_v47 = vadd.f32 %v10013_v50, %v10158_v1  ;;  %v4183_v57 = vadd.f32 %v10009_v27, %v10164_v28 }
 0x430   : > { %10962 = vst [vmem:[#allocation68_spill] sm:$0xff] %v10220_v17  ;;  %v4367_v18 = vpop.f32.mrf.mxu1 }
 0x431   : > { %v10228_v4 = vadd.f32 %v4367_v18, %v4175_v62  ;;  %v7194_v49 = vpop.f32.mrf.mxu0 }
 0x432   : > { %v10230_v51 = vadd.f32 %v7194_v49, %v7193_v55  ;;  %v4369_v29 = vpop.f32.mrf.mxu1  ;;  %v4181_v49 = vadd.f32 %v10002_v21, %v10158_v1 }
 0x433   : > { %v10236_v33 = vadd.f32 %v4369_v29, %v4177_v24  ;;  %v7196_v17 = vpop.f32.mrf.mxu0  ;;  %v4187_v24 = vadd.f32 %v10016_v46, %v10164_v28 }
 0x434   : > { %10963 = vst [vmem:[#allocation69_spill] sm:$0xff] %v10230_v51  ;;  %v4373_v40 = vpop.f32.mrf.mxu1 }
 0x435   : > { %v7197_v15 = vpop.f32.mrf.mxu0  ;;  %v10250_v29 = vadd.f32 %v4373_v40, %v4181_v49 }
 0x436   : > { %v10240_v16 = vadd.f32 %v7197_v15, %v7196_v17  ;;  %v4375_v18 = vpop.f32.mrf.mxu1 }
 0x437   : > { %v7199_v62 = vpop.f32.mrf.mxu0  ;;  %v10256_v21 = vadd.f32 %v4375_v18, %v4183_v57  ;;  %v4195_v18 = vadd.f32 %v10031_v20, %v10158_v1 }
 0x438   : > { %10964 = vst [vmem:[#allocation70_spill] sm:$0xff] %v10240_v16  ;;  %v4377_v55 = vpop.f32.mrf.mxu1 }
 0x439   : > { %v10252_v30 = vadd.f32 %v4377_v55, %v4185_v47  ;;  %v7200_v15 = vpop.f32.mrf.mxu0 }
 0x43a   : > { %v10254_v17 = vadd.f32 %v7200_v15, %v7199_v62  ;;  %v4379_v42 = vpop.f32.mrf.mxu1  ;;  %v4191_v62 = vadd.f32 %v10020_v22, %v10158_v1 }
 0x43b   : > { %v10260_v51 = vadd.f32 %v4379_v42, %v4187_v24  ;;  %v7202_v16 = vpop.f32.mrf.mxu0 }
 0x43c   : > { %10965 = vst [vmem:[#allocation71_spill] sm:$0xff] %v10254_v17  ;;  %v4383_v27 = vpop.f32.mrf.mxu1 }
 0x43d   : > { %v7203_v40 = vpop.f32.mrf.mxu0  ;;  %v10272_v42 = vadd.f32 %v4383_v27, %v4191_v62  ;;  %v4201_v27 = vadd.f32 %v10038_v25, %v10158_v1  ;;  %v4205_v62 = vadd.f32 %v10049_v36, %v10158_v1 }
 0x43e   : > { %v10264_v49 = vadd.f32 %v7203_v40, %v7202_v16  ;;  %v10266_v47 = vpop.f32.mrf.mxu1 }
 0x43f   : > { %v7205_v55 = vpop.f32.mrf.mxu0 }
 0x440   : > { %10966 = vst [vmem:[#allocation72_spill] sm:$0xff] %v10264_v49  ;;  %v4387_v57 = vpop.f32.mrf.mxu1 }
 0x441   : > { %v10274_v24 = vadd.f32 %v4387_v57, %v4195_v18  ;;  %v7206_v15 = vpop.f32.mrf.mxu0  ;;  %v4203_v57 = vadd.f32 %v10045_v7, %v10164_v28 }
 0x442   : > { %v10276_v50 = vadd.f32 %v7206_v15, %v7205_v55  ;;  %v10278_v46 = vpop.f32.mrf.mxu1  ;;  %v4207_v15 = vadd.f32 %v10052_v5, %v10164_v28 }
 0x443   : > { %v7208_v40 = vpop.f32.mrf.mxu0 }
 0x444   : > { %10967 = vst [vmem:[#allocation73_spill] sm:$0xff] %v10276_v50  ;;  %v4393_v49 = vpop.f32.mrf.mxu1 }
 0x445   : > { %v7209_v22 = vpop.f32.mrf.mxu0  ;;  %v10292_v16 = vadd.f32 %v4393_v49, %v4201_v27 }
 0x446   : > { %v10282_v17 = vadd.f32 %v7209_v22, %v7208_v40  ;;  %v4395_v20 = vpop.f32.mrf.mxu1 }
 0x447   : > { %v7211_v18 = vpop.f32.mrf.mxu0  ;;  %v10298_v25 = vadd.f32 %v4395_v20, %v4203_v57  ;;  %v4215_v20 = vadd.f32 %v10064_v58, %v10158_v1 }
 0x448   : > { %10968 = vst [vmem:[#allocation74_spill] sm:$0xff] %v10282_v17  ;;  %v4397_v55 = vpop.f32.mrf.mxu1 }
 0x449   : > { %v10294_v50 = vadd.f32 %v4397_v55, %v4205_v62  ;;  %v7212_v40 = vpop.f32.mrf.mxu0 }
 0x44a   : > { %v10296_v22 = vadd.f32 %v7212_v40, %v7211_v18  ;;  %v4399_v17 = vpop.f32.mrf.mxu1  ;;  %v4211_v18 = vadd.f32 %v10054_v52, %v10158_v1 }
 0x44b   : > { %v10302_v23 = vadd.f32 %v4399_v17, %v4207_v15  ;;  %v7214_v6 = vpop.f32.mrf.mxu0  ;;  %v4213_v17 = vadd.f32 %v10060_v13, %v10164_v28  ;;  %v4217_v15 = vadd.f32 %v10066_v39, %v10164_v28  ;;  %v4221_v13 = vadd.f32 %v10068_v45, %v10158_v1 }
 0x44c   : > { %10969 = vst [vmem:[#allocation75_spill] sm:$0xff] %v10296_v22  ;;  %v4403_v7 = vpop.f32.mrf.mxu1  ;;  %v4225_v39 = vadd.f32 %v10074_v3, %v10158_v1  ;;  %v4231_v45 = vadd.f32 %v10078_v0, %v10158_v1 }
 0x44d   : > { %v7215_v49 = vpop.f32.mrf.mxu0  ;;  %v4404_v40 = vadd.f32 %v4403_v7, %v4211_v18 }
 0x44e   : > { %v10306_v27 = vadd.f32 %v7215_v49, %v7214_v6  ;;  %v4405_v62 = vpop.f32.mrf.mxu1 }
 0x44f   : > { %v7217_v55 = vpop.f32.mrf.mxu0 }
 0x450   : > { %10970 = vst [vmem:[#allocation76_spill] sm:$0xff] %v10306_v27  ;;  %v4407_v57 = vpop.f32.mrf.mxu1  ;;  %v4406_v27 = vadd.f32 %v4405_v62, %v4213_v17  ;;  %v4223_v62 = vadd.f32 %v10071_v34, %v10164_v28  ;;  %v4233_v34 = vadd.f32 %v10081_v60, %v10164_v28  ;;  %v4237_v60 = vadd.f32 %v10086_v59, %v10164_v28 }
 0x451   : > { %v4408_v36 = vadd.f32 %v4407_v57, %v4215_v20  ;;  %v7218_v5 = vpop.f32.mrf.mxu0 }
 0x452   : > { %v10316_v6 = vadd.f32 %v7218_v5, %v7217_v55  ;;  %v4409_v49 = vpop.f32.mrf.mxu1 }
 0x453   : > { %v4845_v22 = vpack.c.bf16 %v4408_v36, %v4404_v40  ;;  %v4410_v52 = vadd.f32 %v4409_v49, %v4217_v15  ;;  %v7220_v26 = vpop.f32.mrf.mxu0  ;;  %v4227_v36 = vadd.f32 %v10076_v61, %v10164_v28 }
 0x454   : > { %v4413_v10 = vpop.f32.mrf.mxu1 }
 0x455   : > { %v4846_v58 = vpack.c.bf16 %v4410_v52, %v4406_v27  ;;  %v7221_v35 = vpop.f32.mrf.mxu0  ;;  %v4414_v18 = vadd.f32 %v4413_v10, %v4221_v13  ;;  %v4235_v13 = vadd.f32 %v10084_v38, %v10158_v1 }
 0x456   : > { %v10318_v32 = vadd.f32 %v7221_v35, %v7220_v26  ;;  %v4415_v11 = vpop.f32.mrf.mxu1 }
 0x457   : > { %v7223_v7 = vpop.f32.mrf.mxu0  ;;  %v4416_v55 = vadd.f32 %v4415_v11, %v4223_v62 }
 0x458   : > { %v4417_v5 = vpop.f32.mrf.mxu1 }
 0x459   : > { %v4418_v27 = vadd.f32 %v4417_v5, %v4225_v39  ;;  %v7224_v20 = vpop.f32.mrf.mxu0 }
 0x45a   : > { %v10328_v35 = vadd.f32 %v7224_v20, %v7223_v7  ;;  %v4419_v26 = vpop.f32.mrf.mxu1  ;;  %v4197_v7 = vadd.f32 %v10034_v63, %v10164_v28 }
 0x45b   : > { %v4848_v57 = vpack.c.bf16 %v4418_v27, %v4414_v18  ;;  %v4420_v3 = vadd.f32 %v4419_v26, %v4227_v36  ;;  %v7226_v17 = vpop.f32.mrf.mxu0  ;;  %v4193_v36 = vadd.f32 %v10027_v19, %v10164_v28  ;;  %v4241_v27 = vadd.f32 %v10088_v53, %v10158_v1 }
 0x45c   : > { %v4423_v15 = vpop.f32.mrf.mxu1  ;;  %v4390_v20 = vadd.f32 %v10278_v46, %v4197_v7  ;;  %v10971_v46 = vpack.c.bf16 %v10302_v23, %v10298_v25 }
 0x45d   : > { %v4849_v40 = vpack.c.bf16 %v4420_v3, %v4416_v55  ;;  %v10334_v49 = vadd.f32 %v4423_v15, %v4231_v45  ;;  %v7227_v61 = vpop.f32.mrf.mxu0  ;;  %v4386_v19 = vadd.f32 %v10266_v47, %v4193_v36 }
 0x45e   : > { %v10336_v10 = vadd.f32 %v7227_v61, %v7226_v17  ;;  %v4425_v52 = vpop.f32.mrf.mxu1  ;;  %v4247_v61 = vadd.f32 %v10096_v41, %v10164_v28 }
 0x45f   : > { %v10340_v39 = vadd.f32 %v4425_v52, %v4233_v34  ;;  %v7229_v0 = vpop.f32.mrf.mxu0  ;;  %4886 = vmatprep.subr.bf16.mxu1 %v4849_v40  ;;  %v4840_v15 = vpack.c.bf16 %v4390_v20, %v4386_v19  ;;  %v10972_v40 = vpack.c.bf16 %v10294_v50, %v10292_v16  ;;  %v10973_v16 = vpack.c.bf16 %v10274_v24, %v10272_v42 }
 0x460   : > { %v4427_v11 = vpop.f32.mrf.mxu1  ;;  %4887 = vmatpush1.bf16.msra.mxu1 %v4848_v57  ;;  %v4253_v42 = vadd.f32 %v10101_v31, %v10164_v28  ;;  %v4257_v24 = vadd.f32 %v10106_v56, %v10164_v28  ;;  %v10978_v56 = vpack.c.bf16 %v10228_v4, %v10218_v14  ;;  %v4261_v19 = vadd.f32 %v10108_v12, %v10158_v1 }
 0x461   : > { %v10346_v5 = vadd.f32 %v4427_v11, %v4235_v13  ;;  %v7230_v62 = vpop.f32.mrf.mxu0  ;;  %4888 = vmatprep.subr.bf16.mxu1 %v4846_v58  ;;  %v4243_v58 = vadd.f32 %v10091_v37, %v10164_v28  ;;  %v4265_v4 = vadd.f32 %v10114_v44, %v10158_v1  ;;  %v10986_v44 = vld [vmem:[#allocation63_spill] sm:$0xff] }
 0x462   : > { %v10350_v38 = vadd.f32 %v7230_v62, %v7229_v0  ;;  %v4429_v18 = vpop.f32.mrf.mxu1  ;;  %v4255_v62 = vadd.f32 %v10104_v54, %v10158_v1 }
 0x463   : > { %v10357_v26 = vadd.f32 %v4429_v18, %v4237_v60  ;;  %v7232_v59 = vpop.f32.mrf.mxu0  ;;  %v10974_v60 = vpack.c.bf16 %v10260_v51, %v10256_v21  ;;  %v10975_v18 = vpack.c.bf16 %v10252_v30, %v10250_v29  ;;  %v10976_v51 = vpack.c.bf16 %v10236_v33, %v10232_v8 }
 0x464   : > { %v4433_v45 = vpop.f32.mrf.mxu1  ;;  %4889 = vmatpush1.bf16.msra.mxu1 %v4845_v22  ;;  %v4245_v22 = vadd.f32 %v10094_v43, %v10158_v1  ;;  %v4251_v43 = vadd.f32 %v10098_v9, %v10158_v1  ;;  %v10979_v33 = vpack.c.bf16 %v10214_v48, %v10202_v2  ;;  %v10984_v2 = vld [vmem:[#allocation38_spill] sm:$0xff] }
 0x465   : > { %v10364_v57 = vadd.f32 %v4433_v45, %v4241_v27  ;;  %v7233_v53 = vpop.f32.mrf.mxu0  ;;  %4890 = vmatprep.subr.bf16.mxu1 %v10971_v46  ;;  %v10981_v46 = vld [vmem:[#allocation66_spill] sm:$0xff]  ;;  %v4263_v48 = vadd.f32 %v10984_v2, %v10164_v28 }
 0x466   : > { %v10369_v3 = vadd.f32 %v7233_v53, %v7232_v59  ;;  %v4435_v17 = vpop.f32.mrf.mxu1  ;;  %v10426_v59 = vld.sshfl [vmem:[%s8952_s6] sm:$0x33 pattern:$0x76325410] }
 0x467   : > { %v10373_v37 = vadd.f32 %v4435_v17, %v4243_v58  ;;  %v7235_v47 = vpop.f32.mrf.mxu0  ;;  %v4883_v45 = vcombine.high %v10426_v59, %v10426_v59  ;;  %v10982_v17 = vld [vmem:[#allocation64_spill] sm:$0xff] }
 0x468   : > { %v4437_v34 = vpop.f32.mrf.mxu1  ;;  %4891 = vmatpush1.bf16.msra.mxu1 %v10972_v40  ;;  %v10987_v40 = vld [vmem:[#allocation60_spill] sm:$0xff] }
 0x469   : > { %v10380_v23 = vadd.f32 %v4437_v34, %v4245_v22  ;;  %v7236_v25 = vpop.f32.mrf.mxu0  ;;  %4892 = vmatprep.subr.bf16.mxu1 %v4840_v15  ;;  %4918 = vmatprep.mubr.bf16.mxu1 %v4883_v45  ;;  %v10983_v22 = vpack.c.bf16 %v10981_v46, %v10982_v17  ;;  %v10985_v15 = vld [vmem:[#allocation39_spill] sm:$0xff] }
 0x46a   : > { %v10382_v52 = vadd.f32 %v7236_v25, %v7235_v47  ;;  %v4439_v13 = vpop.f32.mrf.mxu1  ;;  %4959 = vmatprep.mubr.bf16.mxu0 %v4883_v45  ;;  %v4267_v47 = vadd.f32 %v10985_v15, %v10164_v28  ;;  %v10996_v45 = vld [vmem:[#allocation42_spill] sm:$0xff] }
 0x46b   : > { %v10388_v11 = vadd.f32 %v4439_v13, %v4247_v61  ;;  %v10420_v29 = vpop.f32.mrf.mxu0  ;;  %v10988_v61 = vpack.c.bf16 %v10986_v44, %v10987_v40  ;;  %v11007_v44 = vld [vmem:[#allocation56_spill] sm:$0xff] }
 0x46c   : > { %v4443_v50 = vpop.f32.mrf.mxu1  ;;  %4893 = vmatpush1.bf16.msra.mxu1 %v10973_v16  ;;  %10977 = vst [vmem:[#allocation77_spill] sm:$0xff] %v10420_v29 }
 0x46d   : > { %v10395_v7 = vadd.f32 %v4443_v50, %v4251_v43  ;;  %4894 = vmatprep.subr.bf16.mxu1 %v10974_v60  ;;  %v10439_v14 = vpop.f32.mrf.mxu0 }
 0x46e   : > { %v4445_v9 = vpop.f32.mrf.mxu1  ;;  %10980 = vst [vmem:[#allocation78_spill] sm:$0xff] %v10439_v14 }
 0x46f   : > { %v10414_v20 = vadd.f32 %v4445_v9, %v4253_v42  ;;  %v10461_v16 = vpop.f32.mrf.mxu0  ;;  %v10990_v9 = vld [vmem:[#allocation61_spill] sm:$0xff] }
 0x470   : > { %v4447_v36 = vpop.f32.mrf.mxu1  ;;  %4895 = vmatpush1.bf16.msra.mxu1 %v10975_v18  ;;  %10989 = vst [vmem:[#allocation66_spill] sm:$0xff] %v10461_v16  ;;  %v11006_v18 = vld [vmem:[#allocation53_spill] sm:$0xff] }
 0x471   : > { %v10409_v27 = vadd.f32 %v4447_v36, %v4255_v62  ;;  %4896 = vmatprep.subr.bf16.mxu1 %v10976_v51  ;;  %v10991_v62 = vld [vmem:[#allocation58_spill] sm:$0xff]  ;;  %v4301_v2 = vadd.f32 %v11006_v18, %v10158_v1 }
 0x472   : > { %v4449_v21 = vpop.f32.mrf.mxu1  ;;  %v10992_v36 = vpack.c.bf16 %v10990_v9, %v10991_v62 }
 0x473   : > { %v10418_v30 = vadd.f32 %v4449_v21, %v4257_v24  ;;  %v10993_v24 = vld [vmem:[#allocation41_spill] sm:$0xff]  ;;  %v10994_v21 = vld [vmem:[#allocation43_spill] sm:$0xff] }
 0x474   : > { %v4453_v31 = vpop.f32.mrf.mxu1  ;;  %4897 = vmatpush1.bf16.msra.mxu1 %v10978_v56  ;;  %v4271_v51 = vadd.f32 %v10993_v24, %v10158_v1  ;;  %v10472_v56 = vpop.f32.mrf.mxu0 }
 0x475   : > { %4898 = vmatprep.subr.bf16.mxu1 %v10979_v33  ;;  %v10448_v34 = vadd.f32 %v4453_v31, %v4261_v19  ;;  %v4275_v31 = vadd.f32 %v10994_v21, %v10158_v1  ;;  %10995 = vst [vmem:[#allocation64_spill] sm:$0xff] %v10472_v56  ;;  %v10997_v19 = vld [vmem:[#allocation44_spill] sm:$0xff] }
 0x476   : > { %v4455_v58 = vpop.f32.mrf.mxu1  ;;  %v10488_v15 = vpop.f32.mrf.mxu0 }
 0x477   : > { %v10455_v13 = vadd.f32 %v4455_v58, %v4263_v48  ;;  %v4273_v58 = vadd.f32 %v10996_v45, %v10164_v28 }
 0x478   : > { %v4457_v53 = vpop.f32.mrf.mxu1  ;;  %4899 = vmatpush1.bf16.msra.mxu1 %v10983_v22  ;;  %v10496_v62 = vpop.f32.mrf.mxu0 }
 0x479   : > { %v10450_v12 = vadd.f32 %v4457_v53, %v4265_v4  ;;  %4900 = vmatprep.subr.bf16.mxu1 %v10988_v61  ;;  %v4277_v4 = vadd.f32 %v10997_v19, %v10164_v28  ;;  %v10998_v61 = vld [vmem:[#allocation45_spill] sm:$0xff] }
 0x47a   : > { %v4459_v25 = vpop.f32.mrf.mxu1 }
 0x47b   : > { %v10459_v50 = vadd.f32 %v4459_v25, %v4267_v47  ;;  %v4281_v25 = vadd.f32 %v10998_v61, %v10158_v1 }
 0x47c   : > { %v4463_v60 = vpop.f32.mrf.mxu1  ;;  %4901 = vmatpush1.bf16.msra.mxu1 %v10992_v36 }
 0x47d   : > { %v10478_v53 = vadd.f32 %v4463_v60, %v4271_v51  ;;  %v10999_v60 = vld [vmem:[#allocation47_spill] sm:$0xff]  ;;  %v11001_v51 = vld [vmem:[#allocation48_spill] sm:$0xff] }
 0x47e   : > { %v4465_v42 = vpop.f32.mrf.mxu1  ;;  %v4285_v9 = vadd.f32 %v10999_v60, %v10158_v1  ;;  %v4287_v21 = vadd.f32 %v11001_v51, %v10164_v28  ;;  %v11003_v51 = vld [vmem:[#allocation51_spill] sm:$0xff] }
 0x47f   : > { %v10482_v22 = vadd.f32 %v4465_v42, %v4273_v58  ;;  %v11000_v42 = vld [vmem:[#allocation46_spill] sm:$0xff] }
 0x480   : > { %v4467_v33 = vpop.f32.mrf.mxu1  ;;  %v4283_v24 = vadd.f32 %v11000_v42, %v10164_v28  ;;  %v11002_v42 = vld [vmem:[#allocation49_spill] sm:$0xff] }
 0x481   : > { %v10480_v46 = vadd.f32 %v4467_v33, %v4275_v31  ;;  %v4291_v55 = vadd.f32 %v11002_v42, %v10158_v1 }
 0x482   : > { %v4469_v17 = vpop.f32.mrf.mxu1 }
 0x483   : > { %v10486_v48 = vadd.f32 %v4469_v17, %v4277_v4  ;;  %v10508_v17 = vpop.f32.mrf.mxu0 }
 0x484   : > { %v4473_v47 = vpop.f32.mrf.mxu1 }
 0x485   : > { %v10502_v31 = vadd.f32 %v4473_v47, %v4281_v25  ;;  %v4295_v47 = vadd.f32 %v11003_v51, %v10158_v1  ;;  %v10514_v25 = vpop.f32.mrf.mxu0 }
 0x486   : > { %v4475_v40 = vpop.f32.mrf.mxu1 }
 0x487   : > { %v4476_v58 = vadd.f32 %v4475_v40, %v4283_v24  ;;  %v11004_v40 = vld [vmem:[#allocation50_spill] sm:$0xff]  ;;  %v11005_v24 = vld [vmem:[#allocation52_spill] sm:$0xff]  ;;  %v10520_v8 = vpop.f32.mrf.mxu0 }
 0x488   : > { %v4477_v36 = vpop.f32.mrf.mxu1 }
 0x489   : > { %v10504_v33 = vadd.f32 %v4477_v36, %v4285_v9  ;;  %v4293_v36 = vadd.f32 %v11004_v40, %v10164_v28  ;;  %v4305_v40 = vadd.f32 %v11007_v44, %v10158_v1  ;;  %v10526_v19 = vpop.f32.mrf.mxu0  ;;  %v11012_v1 = vld [vmem:[#allocation65_spill] sm:$0xff] }
 0x48a   : > { %v4479_v45 = vpop.f32.mrf.mxu1 }
 0x48b   : > { %v4480_v4 = vadd.f32 %v4479_v45, %v4287_v21  ;;  %v4297_v21 = vadd.f32 %v11005_v24, %v10164_v28  ;;  %v10538_v14 = vpop.f32.mrf.mxu0 }
 0x48c   : > { %v4483_v61 = vpop.f32.mrf.mxu1 }
 0x48d   : > { %v4867_v60 = vpack.c.bf16 %v4480_v4, %v4476_v58  ;;  %v4484_v45 = vadd.f32 %v4483_v61, %v4291_v55  ;;  %v11008_v55 = vld [vmem:[#allocation40_spill] sm:$0xff]  ;;  %v11009_v61 = vld [vmem:[#allocation54_spill] sm:$0xff] }
 0x48e   : > { %v4485_v63 = vpop.f32.mrf.mxu1 }
 0x48f   : > { %v4486_v58 = vadd.f32 %v4485_v63, %v4293_v36  ;;  %v11010_v63 = vld [vmem:[#allocation55_spill] sm:$0xff] }
 0x490   : > { %v4487_v9 = vpop.f32.mrf.mxu1 }
 0x491   : > { %v4488_v0 = vadd.f32 %v4487_v9, %v4295_v47  ;;  %v10530_v47 = vrot.slane %v11009_v61, %v11008_v55 }
 0x492   : > { %v4489_v41 = vpop.f32.mrf.mxu1 }
 0x493   : > { %v4869_v4 = vpack.c.bf16 %v4488_v0, %v4484_v45  ;;  %v4490_v54 = vadd.f32 %v4489_v41, %v4297_v21  ;;  %v4303_v0 = vadd.f32 %v11010_v63, %v10164_v28  ;;  %v11011_v41 = vld [vmem:[#allocation57_spill] sm:$0xff]  ;;  %v4545_v44 = vadd.f32 %v11012_v1, %v10530_v47  ;;  %v11013_v63 = vld [vmem:[#allocation59_spill] sm:$0xff] }
 0x494   : > { %v4493_v42 = vpop.f32.mrf.mxu1  ;;  %v4537_v56 = vadd.f32 %v11013_v63, %v10530_v47 }
 0x495   : > { %v4870_v43 = vpack.c.bf16 %v4490_v54, %v4486_v58  ;;  %v4307_v54 = vadd.f32 %v11011_v41, %v10164_v28  ;;  %v4494_v9 = vadd.f32 %v4493_v42, %v4301_v2  ;;  %v11014_v2 = vld [vmem:[#allocation67_spill] sm:$0xff] }
 0x496   : > { %v4495_v51 = vpop.f32.mrf.mxu1  ;;  %v4548_v42 = vadd.f32 %v11014_v2, %v10530_v47 }
 0x497   : > { %v4496_v18 = vadd.f32 %v4495_v51, %v4303_v0  ;;  %v10548_v51 = vpop.f32.mrf.mxu0 }
 0x498   : > { %v4497_v24 = vpop.f32.mrf.mxu1 }
 0x499   : > { %v4498_v36 = vadd.f32 %v4497_v24, %v4305_v40 }
 0x49a   : > { %v4499_v21 = vpop.f32.mrf.mxu1 }
 0x49b   : > { %v4872_v45 = vpack.c.bf16 %v4498_v36, %v4494_v9  ;;  %v4500_v58 = vadd.f32 %v4499_v21, %v4307_v54  ;;  %v10560_v36 = vpop.f32.mrf.mxu0 }
 0x49c   : > { %v7448_v29 = vpop.f32.mrf.mxu1 }
 0x49d   : > { %v4873_v55 = vpack.c.bf16 %v4500_v58, %v4496_v18  ;;  %v10540_v61 = vadd.f32 %v7448_v29, %v4545_v44  ;;  %v11015_v29 = vld [vmem:[#allocation62_spill] sm:$0xff]  ;;  %v10572_v2 = vpop.f32.mrf.mxu0 }
 0x49e   : > { %v4697_v16 = vpop.f32.mrf.mxu1  ;;  %v4540_v0 = vadd.f32 %v11015_v29, %v10530_v47  ;;  %v11021_v29 = vld [vmem:[#allocation69_spill] sm:$0xff] }
 0x49f   : > { %v10544_v28 = vadd.f32 %v4697_v16, %v4537_v56  ;;  %4902 = vmatprep.subr.bf16.mxu1 %v4873_v55  ;;  %v11016_v56 = vld [vmem:[#allocation70_spill] sm:$0xff]  ;;  %v11018_v55 = vld [vmem:[#allocation71_spill] sm:$0xff] }
 0x4a0   : > { %v7449_v40 = vpop.f32.mrf.mxu1  ;;  %4903 = vmatpush2.bf16.msra.mxu1 %v4872_v45  ;;  %v4561_v9 = vadd.f32 %v11016_v56, %v10530_v47  ;;  %v11017_v45 = vld [vmem:[#allocation68_spill] sm:$0xff]  ;;  %v4564_v63 = vadd.f32 %v11018_v55, %v10530_v47  ;;  %v11025_v55 = vld [vmem:[#allocation75_spill] sm:$0xff] }
 0x4a1   : > { %v10550_v24 = vadd.f32 %v7449_v40, %v4548_v42  ;;  %4904 = vmatprep.subr.bf16.mxu1 %v4870_v43  ;;  %v4553_v58 = vadd.f32 %v11017_v45, %v10530_v47 }
 0x4a2   : > { %v4700_v41 = vpop.f32.mrf.mxu1 }
 0x4a3   : > { %v10556_v16 = vadd.f32 %v4700_v41, %v4540_v0  ;;  %v4556_v0 = vadd.f32 %v11021_v29, %v10530_v47  ;;  %v11028_v29 = vpack.c.bf16 %v10418_v30, %v10414_v20  ;;  %v11031_v30 = vpack.c.bf16 %v10388_v11, %v10373_v37 }
 0x4a4   : > { %v7452_v21 = vpop.f32.mrf.mxu1  ;;  %4905 = vmatpush2.bf16.msra.mxu1 %v4869_v4  ;;  %v11019_v4 = vpack.c.bf16 %v10504_v33, %v10502_v31  ;;  %v11022_v31 = vpack.c.bf16 %v10480_v46, %v10478_v53  ;;  %v11026_v53 = vpack.c.bf16 %v10450_v12, %v10448_v34  ;;  %v11034_v11 = vpack.c.bf16 %v10357_v26, %v10340_v39 }
 0x4a5   : > { %v10564_v43 = vadd.f32 %v7452_v21, %v4561_v9  ;;  %4906 = vmatprep.subr.bf16.mxu1 %v4867_v60  ;;  %v11020_v60 = vpack.c.bf16 %v10486_v48, %v10482_v22  ;;  %v10588_v21 = vpop.f32.mrf.mxu0  ;;  %v11023_v48 = vpack.c.bf16 %v10459_v50, %v10455_v13 }
 0x4a6   : > { %v4713_v1 = vpop.f32.mrf.mxu1 }
 0x4a7   : > { %v10568_v44 = vadd.f32 %v4713_v1, %v4553_v58  ;;  %v11024_v58 = vld [vmem:[#allocation74_spill] sm:$0xff] }
 0x4a8   : > { %v7453_v42 = vpop.f32.mrf.mxu1  ;;  %4907 = vmatpush2.bf16.msra.mxu1 %v11019_v4  ;;  %v4577_v1 = vadd.f32 %v11024_v58, %v10530_v47 }
 0x4a9   : > { %v10577_v40 = vadd.f32 %v7453_v42, %v4564_v63  ;;  %4908 = vmatprep.subr.bf16.mxu1 %v11020_v60  ;;  %v4580_v63 = vadd.f32 %v11025_v55, %v10530_v47  ;;  %v10602_v42 = vpop.f32.mrf.mxu0  ;;  %v11027_v60 = vld [vmem:[#allocation72_spill] sm:$0xff]  ;;  %v4593_v55 = vadd.f32 %v10318_v32, %v10530_v47  ;;  %v4588_v32 = vadd.f32 %v10316_v6, %v10530_v47 }
 0x4aa   : > { %v4716_v41 = vpop.f32.mrf.mxu1  ;;  %v4569_v13 = vadd.f32 %v11027_v60, %v10530_v47  ;;  %v11033_v60 = vld [vmem:[#allocation76_spill] sm:$0xff]  ;;  %v4609_v6 = vadd.f32 %v10369_v3, %v10530_v47  ;;  %v7261_v18 = vadd.f32 %v10602_v42, %v10588_v21  ;;  %v7258_v3 = vadd.f32 %v10572_v2, %v10560_v36 }
 0x4ab   : > { %v10586_v9 = vadd.f32 %v4716_v41, %v4556_v0  ;;  %v11029_v0 = vld [vmem:[#allocation73_spill] sm:$0xff] }
 0x4ac   : > { %v7456_v45 = vpop.f32.mrf.mxu1  ;;  %4909 = vmatpush2.bf16.msra.mxu1 %v11022_v31  ;;  %v4572_v41 = vadd.f32 %v11029_v0, %v10530_v47  ;;  %v4644_v21 = vadd.f32 %v7261_v18, %v10530_v47  ;;  %v4641_v36 = vadd.f32 %v7258_v3, %v10530_v47  ;;  %v11038_v3 = vld [vmem:[#allocation77_spill] sm:$0xff] }
 0x4ad   : > { %4910 = vmatprep.subr.bf16.mxu1 %v11023_v48  ;;  %v10607_v46 = vadd.f32 %v7456_v45, %v4577_v1  ;;  %v7262_v45 = vpop.f32.mrf.mxu0  ;;  %v11030_v1 = vpack.c.bf16 %v10409_v27, %v10395_v7  ;;  %v11032_v7 = vpack.c.bf16 %v10380_v23, %v10364_v57 }
 0x4ae   : > { %v4729_v33 = vpop.f32.mrf.mxu1 }
 0x4af   : > { %v10618_v48 = vadd.f32 %v4729_v33, %v4569_v13  ;;  %v4585_v13 = vadd.f32 %v11033_v60, %v10530_v47 }
 0x4b0   : > { %v7457_v4 = vpop.f32.mrf.mxu1  ;;  %4911 = vmatpush2.bf16.msra.mxu1 %v11026_v53 }
 0x4b1   : > { %v10611_v50 = vadd.f32 %v7457_v4, %v4580_v63  ;;  %4912 = vmatprep.subr.bf16.mxu1 %v11028_v29  ;;  %v4596_v63 = vadd.f32 %v10328_v35, %v10530_v47  ;;  %v7263_v4 = vpop.f32.mrf.mxu0 }
 0x4b2   : > { %v4732_v31 = vpop.f32.mrf.mxu1 }
 0x4b3   : > { %v4844_v34 = vpack.c.bf16 %v10611_v50, %v10607_v46  ;;  %v10622_v12 = vadd.f32 %v4732_v31, %v4572_v41  ;;  %v7265_v0 = vpop.f32.mrf.mxu0  ;;  %v11035_v31 = vpack.c.bf16 %v10346_v5, %v10334_v49  ;;  %v4601_v49 = vadd.f32 %v10336_v10, %v10530_v47 }
 0x4b4   : > { %v7460_v58 = vpop.f32.mrf.mxu1  ;;  %4913 = vmatpush2.bf16.msra.mxu1 %v11030_v1  ;;  %v11042_v46 = vpack.c.bf16 %v10577_v40, %v10564_v43  ;;  %v11043_v50 = vpack.c.bf16 %v10586_v9, %v10568_v44  ;;  %v11047_v43 = vpack.c.bf16 %v10556_v16, %v10544_v28  ;;  %v4824_v40 = vld [vmem:[#allocation20] sm:$0xff]  ;;  %v7998_v28 = vld [vmem:[#allocation17 + $0xa8] ss:$12 sps:$4 sm:$0xff] (%p4975_p8)   ;;  %v8586_v16 = vmov (%p4975_p8), 0  }
 0x4b5   : > { %4914 = vmatprep.subr.bf16.mxu1 %v11031_v30  ;;  %v10639_v27 = vadd.f32 %v7460_v58, %v4593_v55  ;;  %v4612_v58 = vadd.f32 %v10382_v52, %v10530_v47  ;;  %v7266_v1 = vpop.f32.mrf.mxu0  ;;  %v4604_v55 = vadd.f32 %v10350_v38, %v10530_v47 }
 0x4b6   : > { %v4745_v33 = vpop.f32.mrf.mxu1 }
 0x4b7   : > { %v10650_v29 = vadd.f32 %v4745_v33, %v4585_v13 }
 0x4b8   : > { %v7461_v53 = vpop.f32.mrf.mxu1  ;;  %4915 = vmatpush2.bf16.msra.mxu1 %v11032_v7  ;;  %v7268_v7 = vpop.f32.mrf.mxu0 }
 0x4b9   : > { %v10643_v37 = vadd.f32 %v7461_v53, %v4596_v63  ;;  %4916 = vmatprep.subr.bf16.mxu1 %v11034_v11 }
 0x4ba   : > { %v4748_v35 = vpop.f32.mrf.mxu1  ;;  %v7269_v10 = vpop.f32.mrf.mxu0 }
 0x4bb   : > { %v4850_v57 = vpack.c.bf16 %v10643_v37, %v10639_v27  ;;  %v10654_v23 = vadd.f32 %v4748_v35, %v4588_v32 }
 0x4bc   : > { %v7464_v41 = vpop.f32.mrf.mxu1  ;;  %4917 = vmatpush2.bf16.msra.mxu1 %v11035_v31  ;;  %v7271_v32 = vpop.f32.mrf.mxu0 }
 0x4bd   : > { %v4847_v39 = vpack.c.bf16 %v10654_v23, %v10650_v29  ;;  %v10666_v33 = vadd.f32 %v7464_v41, %v4609_v6  ;;  %v7270_v6 = vadd.f32 %v7269_v10, %v7268_v7 }
 0x4be   : > { %v4761_v26 = vpop.f32.mrf.mxu1  ;;  %v7272_v41 = vpop.f32.mrf.mxu0 }
 0x4bf   : > { %4919 = vmatmul.mubr.bf16.vlgmr.msra.gmra.mxu1 %v10426_v59  ;;  %v10674_v53 = vadd.f32 %v4761_v26, %v4601_v49  ;;  %v7264_v49 = vadd.f32 %v7263_v4, %v7262_v45  ;;  %v4657_v60 = vadd.f32 %v7270_v6, %v10530_v47  ;;  %v7255_v45 = vadd.f32 %v10548_v51, %v10538_v14 }
 0x4c0   : > { %v7465_v30 = vpop.f32.mrf.mxu1  ;;  %v7246_v51 = vadd.f32 %v10496_v62, %v10488_v15  ;;  %v11041_v6 = vpack.c.bf16 %v10622_v12, %v10618_v48  ;;  %v11045_v48 = vpack.c.bf16 %v10550_v24, %v10540_v61  ;;  %v4825_v24 = vld [vmem:[#allocation20 + $0x8] sm:$0xf]  ;;  %5562 = vmatprep.mubr.bf16.mxu1 (%p4975_p8), %v8586_v16 }
 0x4c1   : > { %v10670_v5 = vadd.f32 %v7465_v30, %v4612_v58  ;;  %v7273_v58 = vadd.f32 %v7272_v41, %v7271_v32  ;;  %v4649_v20 = vadd.f32 %v7264_v49, %v10530_v47  ;;  %v7252_v32 = vadd.f32 %v10526_v19, %v10520_v8  ;;  %v11036_v19 = vld [vmem:[#allocation66_spill] sm:$0xff] }
 0x4c2   : > { %v4764_v63 = vpop.f32.mrf.mxu1  ;;  %v4636_v14 = vadd.f32 %v7255_v45, %v10530_v47  ;;  %v4625_v15 = vadd.f32 %v7246_v51, %v10530_v47  ;;  %v7999_v49 = vld [vmem:[#allocation17 + $0x94] ss:$12 sps:$4 sm:$0xff] (%p4975_p8)   ;;  %v8013_v45 = vld [vmem:[#allocation17 + $0x22c] ss:$12 sps:$4 sm:$0xff] (%p4975_p8)  }
 0x4c3   : > { %v10678_v52 = vadd.f32 %v4764_v63, %v4604_v55  ;;  %v7267_v55 = vadd.f32 %v7266_v1, %v7265_v0  ;;  %v4660_v54 = vadd.f32 %v7273_v58, %v10530_v47  ;;  %v4633_v18 = vadd.f32 %v7252_v32, %v10530_v47  ;;  %5530 = vmatprep.subr.bf16.mxu1 (%p4975_p8), %v8013_v45  ;;  %v8025_v32 = vld [vmem:[#allocation17 + $0x1fc] ss:$12 sps:$4 sm:$0xff] (%p4975_p8)   ;;  %v8034_v51 = vld [vmem:[#allocation17 + $0x1e0] ss:$12 sps:$4 sm:$0xff] (%p4975_p8)  }
 0x4c4   : > { %v7468_v27 = vpop.f32.mrf.mxu1 }
 0x4c5   : > { %v4652_v10 = vadd.f32 %v7267_v55, %v10530_v47  ;;  %v4786_v29 = vadd.f32 %v7468_v27, %v4625_v15  ;;  %v8001_v55 = vld [vmem:[#allocation17 + $0x90] ss:$12 sps:$4 sm:$0xff] (%p4975_p8)   ;;  %v8052_v15 = vld [vmem:[#allocation17 + $0x198] ss:$12 sps:$4 sm:$0xff] (%p4975_p8)  }
 0x4c6   : > { %v4777_v13 = vpop.f32.mrf.mxu1 }
 0x4c8   : > { %v7469_v37 = vpop.f32.mrf.mxu1 }
 0x4ca   : > { %v4780_v11 = vpop.f32.mrf.mxu1 }
 0x4cc   : > { %v7472_v35 = vpop.f32.mrf.mxu1 }
 0x4ce   : > { %v4793_v38 = vpop.f32.mrf.mxu1 }
 0x4d0   : > { %v7473_v31 = vpop.f32.mrf.mxu1 }
 0x4d1   : > { %v4805_v2 = vadd.f32 %v7473_v31, %v4644_v21  ;;  %v8007_v21 = vld [vmem:[#allocation17 + $0x60] ss:$12 sps:$4 sm:$0xff] (%p4975_p8)  }
 0x4d2   : > { %v4796_v26 = vpop.f32.mrf.mxu1 }
 0x4d3   : > { %v4797_v8 = vadd.f32 %v4796_v26, %v4636_v14  ;;  %v8017_v14 = vld [vmem:[#allocation17 + $0x1c] ss:$12 sps:$4 sm:$0xff] (%p4975_p8)  }
 0x4d4   : > { %v7476_v30 = vpop.f32.mrf.mxu1 }
 0x4d5   : > { %v4818_v56 = vadd.f32 %v7476_v30, %v4657_v60 }
 0x4d6   : > { %v4809_v63 = vpop.f32.mrf.mxu1 }
 0x4d7   : > { %v4810_v42 = vadd.f32 %v4809_v63, %v4649_v20  ;;  %v11037_v20 = vld [vmem:[#allocation64_spill] sm:$0xff]  ;;  %v8002_v63 = vld [vmem:[#allocation17 + $0x7c] ss:$12 sps:$4 sm:$0xff] (%p4975_p8)  }
 0x4d8   : > { %v7477_v22 = vpop.f32.mrf.mxu1 }
 0x4d9   : > { %v4821_v7 = vadd.f32 %v7477_v22, %v4660_v54  ;;  %v7249_v54 = vadd.f32 %v10514_v25, %v10508_v17  ;;  %v4802_v22 = vadd.f32 %v7472_v35, %v4641_v36  ;;  %v4794_v25 = vadd.f32 %v4793_v38, %v4633_v18  ;;  %v11039_v35 = vld [vmem:[#allocation78_spill] sm:$0xff]  ;;  %v8010_v36 = vld [vmem:[#allocation17 + $0x48] ss:$12 sps:$4 sm:$0xff] (%p4975_p8)   ;;  %v8037_v18 = vld [vmem:[#allocation17 + $0x1cc] ss:$12 sps:$4 sm:$0xff] (%p4975_p8)  }
 0x4da   : > { %v4812_v4 = vpop.f32.mrf.mxu1  ;;  %v7240_v41 = vadd.f32 %v11039_v35, %v11038_v3  ;;  %v8049_v3 = vld [vmem:[#allocation17 + $0x19c] ss:$12 sps:$4 sm:$0xff] (%p4975_p8)  }
 0x4db   : > { %v4874_v0 = vpack.c.bf16 %v4821_v7, %v4818_v56  ;;  %v4813_v1 = vadd.f32 %v4812_v4, %v4652_v10  ;;  %v4868_v56 = vpack.c.bf16 %v4805_v2, %v4802_v22  ;;  %v4628_v17 = vadd.f32 %v7249_v54, %v10530_v47  ;;  %v8004_v7 = vld [vmem:[#allocation17 + $0x78] ss:$12 sps:$4 sm:$0xff] (%p4975_p8)   ;;  %v8016_v4 = vld [vmem:[#allocation17 + $0x228] ss:$12 sps:$4 sm:$0xff] (%p4975_p8)   ;;  %v8015_v22 = vld [vmem:[#allocation17 + $0x30] ss:$12 sps:$4 sm:$0xff] (%p4975_p8)  }
 0x4dc   : > { %v4865_v31 = vpack.c.bf16 %v4797_v8, %v4794_v25  ;;  %v8005_v10 = vld [vmem:[#allocation17 + $0x64] ss:$12 sps:$4 sm:$0xff] (%p4975_p8)   ;;  %5531 = vmatpush1.bf16.msra.mxu1 (%p4975_p8), %v8016_v4  ;;  %v8040_v8 = vld [vmem:[#allocation17 + $0x1c8] ss:$12 sps:$4 sm:$0xff] (%p4975_p8)  }
 0x4dd   : > { %v4871_v60 = vpack.c.bf16 %v4813_v1, %v4810_v42  ;;  %7298 = vmatprep.subr.bf16.mxu0 %v4874_v0  ;;  %v4789_v62 = vadd.f32 %v7469_v37, %v4628_v17  ;;  %v8019_v42 = vld [vmem:[#allocation17 + $0x214] ss:$12 sps:$4 sm:$0xff] (%p4975_p8)   ;;  %v8022_v0 = vld [vmem:[#allocation17 + $0x210] ss:$12 sps:$4 sm:$0xff] (%p4975_p8)   ;;  %v8008_v1 = vld [vmem:[#allocation17 + $0x4c] ss:$12 sps:$4 sm:$0xff] (%p4975_p8)  }
 0x4de   : > { %7299 = vmatpush3.bf16.msra.mxu0 %v4850_v57  ;;  %v7243_v57 = vadd.f32 %v11037_v20, %v11036_v19  ;;  %5532 = vmatprep.subr.bf16.mxu1 (%p4975_p8), %v8019_v42  ;;  %v8028_v2 = vld [vmem:[#allocation17 + $0x1f8] ss:$12 sps:$4 sm:$0xff] (%p4975_p8)   ;;  %v8043_v20 = vld [vmem:[#allocation17 + $0x1b4] ss:$12 sps:$4 sm:$0xff] (%p4975_p8)   ;;  %v8046_v25 = vld [vmem:[#allocation17 + $0x1b0] ss:$12 sps:$4 sm:$0xff] (%p4975_p8)  }
 0x4df   : > { %7300 = vmatprep.subr.bf16.mxu0 %v4871_v60  ;;  %v4862_v38 = vpack.c.bf16 %v4789_v62, %v4786_v29  ;;  %v8011_v60 = vld [vmem:[#allocation17 + $0x34] ss:$12 sps:$4 sm:$0xff] (%p4975_p8)   ;;  %v8031_v54 = vld [vmem:[#allocation17 + $0x1e4] ss:$12 sps:$4 sm:$0xff] (%p4975_p8)   ;;  %v8029_v17 = vld [vmem:[#allocation17 + $0x16c] ss:$12 sps:$4 sm:$0xff] (%p4975_p8)  }
 0x4e0   : > { %v4620_v23 = vadd.f32 %v7243_v57, %v10530_v47  ;;  %5533 = vmatpush1.bf16.msra.mxu1 (%p4975_p8), %v8022_v0  ;;  %v8023_v19 = vld [vmem:[#allocation17 + $0x4] ss:$12 sps:$4 sm:$0xff] (%p4975_p8)   ;;  %v8027_v57 = vld [vmem:[#allocation17] ss:$12 sps:$4 sm:$0xff] (%p4975_p8)   ;;  %v8033_v35 = vld [vmem:[#allocation17 + $0x168] ss:$12 sps:$4 sm:$0xff] (%p4975_p8)  }
 0x4e1   : > { %5534 = vmatprep.subr.bf16.mxu1 (%p4975_p8), %v8025_v32  ;;  %v8055_v29 = vld [vmem:[#allocation17 + $0x184] ss:$12 sps:$4 sm:$0xff] (%p4975_p8)   ;;  %v8587_v42 = vmov (%p4975_p8), 0.0   ;;  %v8086_v0 = vld [vmem:[#allocation17 + $0xc8] ss:$12 sps:$4 sm:$0xff] (%p4975_p8)  }
 0x4e2   : > { %7301 = vmatpush3.bf16.msra.mxu0 %v4847_v39  ;;  %v4617_v39 = vadd.f32 %v7240_v41, %v10530_v47  ;;  %v4781_v26 = vadd.f32 %v4780_v11, %v4620_v23  ;;  %v11044_v47 = vpack.c.bf16 %v10670_v5, %v10666_v33  ;;  %v8035_v41 = vld [vmem:[#allocation17 + $0x154] ss:$12 sps:$4 sm:$0xff] (%p4975_p8)   ;;  %v8039_v23 = vld [vmem:[#allocation17 + $0x150] ss:$12 sps:$4 sm:$0xff] (%p4975_p8)  }
 0x4e3   : > { %7302 = vmatprep.subr.bf16.mxu0 %v4868_v56  ;;  %v8021_v56 = vld [vmem:[#allocation17 + $0x18] ss:$12 sps:$4 sm:$0xff] (%p4975_p8)   ;;  %v8076_v4 = vld [vmem:[#allocation17 + $0x230] ss:$12 sps:$4 sm:$0xff] (%p4975_p8)   ;;  %v8087_v32 = vld [vmem:[#allocation17 + $0x8] ss:$12 sps:$4 sm:$0xff] (%p4975_p8)  }
 0x4e4   : > { %v4778_v58 = vadd.f32 %v4777_v13, %v4617_v39  ;;  %5535 = vmatpush1.bf16.msra.mxu1 (%p4975_p8), %v8028_v2  ;;  %v8041_v39 = vld [vmem:[#allocation17 + $0x13c] ss:$12 sps:$4 sm:$0xff] (%p4975_p8)   ;;  %v8082_v2 = vld [vmem:[#allocation17 + $0x200] ss:$12 sps:$4 sm:$0xff] (%p4975_p8)  }
 0x4e5   : > { %5536 = vmatprep.subr.bf16.mxu1 (%p4975_p8), %v8031_v54  ;;  %v8097_v54 = vld [vmem:[#allocation19 + $0x94] ss:$12 sps:$4 sm:$0xff] (%p4975_p8)  }
 0x4e6   : > { %7303 = vmatpush3.bf16.msra.mxu0 %v4844_v34  ;;  %v4859_v37 = vpack.c.bf16 %v4781_v26, %v4778_v58  ;;  %v11046_v34 = vpack.c.bf16 %v10678_v52, %v10674_v53  ;;  %v8058_v26 = vld [vmem:[#allocation17 + $0x180] ss:$12 sps:$4 sm:$0xff] (%p4975_p8)   ;;  %v8045_v58 = vld [vmem:[#allocation17 + $0x138] ss:$12 sps:$4 sm:$0xff] (%p4975_p8)  }
 0x4e7   : > { %7304 = vmatprep.subr.bf16.mxu0 %v4865_v31  ;;  %v4983_v31 = vld [vmem:[#allocation13 + $0x8] sm:$0xf] (%p4975_p8) }
 0x4e8   : > { %5537 = vmatpush1.bf16.msra.mxu1 (%p4975_p8), %v8034_v51  ;;  %v8100_v51 = vld [vmem:[#allocation19 + $0x7c] ss:$12 sps:$4 sm:$0xff] (%p4975_p8)  }
 0x4e9   : > { %5538 = vmatprep.subr.bf16.mxu1 (%p4975_p8), %v8037_v18  ;;  %v8088_v18 = vld [vmem:[#allocation17 + $0x1d0] ss:$12 sps:$4 sm:$0xff] (%p4975_p8)  }
 0x4ea   : > { %7305 = vmatpush3.bf16.msra.mxu0 %v11041_v6  ;;  %v8061_v6 = vld [vmem:[#allocation17 + $0x170] ss:$12 sps:$4 sm:$0xff] (%p4975_p8)  }
 0x4eb   : > { %7306 = vmatprep.subr.bf16.mxu0 %v4862_v38 }
 0x4ec   : > { %5539 = vmatpush1.bf16.msra.mxu1 (%p4975_p8), %v8040_v8  ;;  %v8103_v8 = vld [vmem:[#allocation19 + $0x64] ss:$12 sps:$4 sm:$0xff] (%p4975_p8)  }
 0x4ed   : > { %5540 = vmatprep.subr.bf16.mxu1 (%p4975_p8), %v8043_v20  ;;  %v8101_v20 = vld [vmem:[#allocation19 + $0x60] ss:$12 sps:$4 sm:$0xff] (%p4975_p8)  }
 0x4ee   : > { %7307 = vmatpush3.bf16.msra.mxu0 %v11042_v46 }
 0x4ef   : > { %7308 = vmatprep.subr.bf16.mxu0 %v4859_v37  ;;  %v8047_v37 = vld [vmem:[#allocation17 + $0x124] ss:$12 sps:$4 sm:$0xff] (%p4975_p8)  }
 0x4f0   : > { %5541 = vmatpush1.bf16.msra.mxu1 (%p4975_p8), %v8046_v25  ;;  %v8104_v25 = vld [vmem:[#allocation19 + $0x48] ss:$12 sps:$4 sm:$0xff] (%p4975_p8)  }
 0x4f1   : > { %5542 = vmatprep.subr.bf16.mxu1 (%p4975_p8), %v8049_v3  ;;  %v8109_v3 = vld [vmem:[#allocation19 + $0x34] ss:$12 sps:$4 sm:$0xff] (%p4975_p8)  }
 0x4f2   : > { %7309 = vmatpush3.bf16.msra.mxu0 %v11043_v50  ;;  %v8063_v50 = vld [vmem:[#allocation17 + $0xb0] ss:$12 sps:$4 sm:$0xff] (%p4975_p8)  }
 0x4f3   : > { %7310 = vmatprep.subr.bf16.mxu0 %v11044_v47 }
 0x4f4   : > { %5543 = vmatpush1.bf16.msra.mxu1 (%p4975_p8), %v8052_v15  ;;  %v8112_v15 = vld [vmem:[#allocation19 + $0x1c] ss:$12 sps:$4 sm:$0xff] (%p4975_p8)  }
 0x4f5   : > { %5544 = vmatprep.subr.bf16.mxu1 (%p4975_p8), %v8055_v29  ;;  %v8113_v29 = vld [vmem:[#allocation19] ss:$12 sps:$4 sm:$0xff] (%p4975_p8)  }
 0x4f6   : > { %7311 = vmatpush3.bf16.msra.mxu0 %v11045_v48  ;;  %v4982_v48 = vld [vmem:[#allocation13] sm:$0xff] (%p4975_p8) }
 0x4f7   : > { %7312 = vmatprep.subr.bf16.mxu0 %v11046_v34  ;;  %v8066_v34 = vld [vmem:[#allocation17 + $0x158] ss:$12 sps:$4 sm:$0xff] (%p4975_p8)  }
 0x4f8   : > { %5545 = vmatpush1.bf16.msra.mxu1 (%p4975_p8), %v8058_v26  ;;  %v8119_v26 = vld [vmem:[#allocation19 + $0x150] ss:$12 sps:$4 sm:$0xff] (%p4975_p8)  }
 0x4f9   : > { %7320 = vmatprep.subr.bf16.mxu1 (%p4975_p8), %v8061_v6  ;;  %v8124_v6 = vld [vmem:[#allocation19 + $0x13c] ss:$12 sps:$4 sm:$0xff] (%p4975_p8)  }
 0x4fa   : > { %7313 = vmatpush3.bf16.msra.mxu0 %v11047_v43 }
 0x4fd   : > { %4960 = vmatmul.mubr.bf16.vlgmr.msra.gmra.mxu0 %v10426_v59  ;;  %v7996_v59 = vld [vmem:[#allocation17 + $0xac] ss:$12 sps:$4 sm:$0xff] (%p4975_p8)  }
 0x4fe   : > { %5489 = vmatprep.subr.bf16.mxu0 (%p4975_p8), %v7996_v59  ;;  %v8067_v59 = vld [vmem:[#allocation17 + $0xd8] ss:$12 sps:$4 sm:$0xff] (%p4975_p8)  }
 0x4ff   : > { %5490 = vmatpush1.bf16.msra.mxu0 (%p4975_p8), %v7998_v28  ;;  %v8069_v28 = vld [vmem:[#allocation17 + $0xc4] ss:$12 sps:$4 sm:$0xff] (%p4975_p8)  }
 0x500   : > { %5491 = vmatprep.subr.bf16.mxu0 (%p4975_p8), %v7999_v49  ;;  %v8078_v49 = vld [vmem:[#allocation17 + $0x50] ss:$12 sps:$4 sm:$0xff] (%p4975_p8)  }
 0x503   : > { %5492 = vmatpush1.bf16.msra.mxu0 (%p4975_p8), %v8001_v55  ;;  %v8080_v55 = vld [vmem:[#allocation17 + $0xf8] ss:$12 sps:$4 sm:$0xff] (%p4975_p8)  }
 0x504   : > { %5493 = vmatprep.subr.bf16.mxu0 (%p4975_p8), %v8002_v63  ;;  %v8072_v63 = vld [vmem:[#allocation17 + $0xc0] ss:$12 sps:$4 sm:$0xff] (%p4975_p8)  }
 0x507   : > { %5494 = vmatpush1.bf16.msra.mxu0 (%p4975_p8), %v8004_v7  ;;  %v8081_v7 = vld [vmem:[#allocation17 + $0x38] ss:$12 sps:$4 sm:$0xff] (%p4975_p8)  }
 0x508   : > { %5495 = vmatprep.subr.bf16.mxu0 (%p4975_p8), %v8005_v10  ;;  %v8083_v10 = vld [vmem:[#allocation17 + $0xe0] ss:$12 sps:$4 sm:$0xff] (%p4975_p8)  }
 0x50b   : > { %5496 = vmatpush1.bf16.msra.mxu0 (%p4975_p8), %v8007_v21  ;;  %v8084_v21 = vld [vmem:[#allocation17 + $0x20] ss:$12 sps:$4 sm:$0xff] (%p4975_p8)  }
 0x50c   : > { %5497 = vmatprep.subr.bf16.mxu0 (%p4975_p8), %v8008_v1  ;;  %v8079_v1 = vld [vmem:[#allocation17 + $0x218] ss:$12 sps:$4 sm:$0xff] (%p4975_p8)  }
 0x50f   : > { %5498 = vmatpush1.bf16.msra.mxu0 (%p4975_p8), %v8010_v36  ;;  %v8094_v36 = vld [vmem:[#allocation19 + $0xac] ss:$12 sps:$4 sm:$0xff] (%p4975_p8)  }
 0x510   : > { %5499 = vmatprep.subr.bf16.mxu0 (%p4975_p8), %v8011_v60  ;;  %v8092_v60 = vld [vmem:[#allocation19 + $0xa8] ss:$12 sps:$4 sm:$0xff] (%p4975_p8)  }
 0x513   : > { %5500 = vmatpush1.bf16.msra.mxu0 (%p4975_p8), %v8015_v22  ;;  %v8085_v22 = vld [vmem:[#allocation17 + $0x1e8] ss:$12 sps:$4 sm:$0xff] (%p4975_p8)  }
 0x514   : > { %5501 = vmatprep.subr.bf16.mxu0 (%p4975_p8), %v8017_v14  ;;  %v8095_v14 = vld [vmem:[#allocation19 + $0x90] ss:$12 sps:$4 sm:$0xff] (%p4975_p8)  }
 0x517   : > { %5502 = vmatpush1.bf16.msra.mxu0 (%p4975_p8), %v8021_v56  ;;  %v8098_v56 = vld [vmem:[#allocation19 + $0x78] ss:$12 sps:$4 sm:$0xff] (%p4975_p8)  }
 0x518   : > { %5503 = vmatprep.subr.bf16.mxu0 (%p4975_p8), %v8023_v19  ;;  %v8089_v19 = vld [vmem:[#allocation17 + $0x1b8] ss:$12 sps:$4 sm:$0xff] (%p4975_p8)  }
 0x51b   : > { %5504 = vmatpush1.bf16.msra.mxu0 (%p4975_p8), %v8027_v57  ;;  %v8106_v57 = vld [vmem:[#allocation19 + $0x4c] ss:$12 sps:$4 sm:$0xff] (%p4975_p8)  }
 0x51c   : > { %5505 = vmatprep.subr.bf16.mxu0 (%p4975_p8), %v8029_v17  ;;  %v8090_v17 = vld [vmem:[#allocation17 + $0x1a0] ss:$12 sps:$4 sm:$0xff] (%p4975_p8)  }
 0x51f   : > { %5506 = vmatpush2.bf16.msra.mxu0 (%p4975_p8), %v8033_v35  ;;  %v8091_v35 = vld [vmem:[#allocation17 + $0x188] ss:$12 sps:$4 sm:$0xff] (%p4975_p8)  }
 0x520   : > { %5507 = vmatprep.subr.bf16.mxu0 (%p4975_p8), %v8035_v41  ;;  %v8107_v41 = vld [vmem:[#allocation19 + $0x30] ss:$12 sps:$4 sm:$0xff] (%p4975_p8)  }
 0x523   : > { %5508 = vmatpush2.bf16.msra.mxu0 (%p4975_p8), %v8039_v23  ;;  %v8118_v23 = vld [vmem:[#allocation19 + $0x16c] ss:$12 sps:$4 sm:$0xff] (%p4975_p8)  }
 0x524   : > { %5509 = vmatprep.subr.bf16.mxu0 (%p4975_p8), %v8041_v39  ;;  %v8116_v39 = vld [vmem:[#allocation19 + $0x168] ss:$12 sps:$4 sm:$0xff] (%p4975_p8)  }
 0x527   : > { %5510 = vmatpush2.bf16.msra.mxu0 (%p4975_p8), %v8045_v58  ;;  %v8122_v58 = vld [vmem:[#allocation19 + $0x138] ss:$12 sps:$4 sm:$0xff] (%p4975_p8)  }
 0x528   : > { %5511 = vmatprep.subr.bf16.mxu0 (%p4975_p8), %v8047_v37  ;;  %v8127_v37 = vld [vmem:[#allocation19 + $0x124] ss:$12 sps:$4 sm:$0xff] (%p4975_p8)  }
 0x57f   : > { %v4920_v44 = vpop.f32.mrf.mxu1 }
 0x581   : > { %v4922_v9 = vpop.f32.mrf.mxu1 }
 0x582   : > { %v4969_v12 = vcombine.low %v4920_v44, %v4922_v9  ;;  %v8051_v44 = vld [vmem:[#allocation17 + $0x120] ss:$12 sps:$4 sm:$0xff] (%p4975_p8)  }
 0x583   : > { %v4924_v33 = vpop.f32.mrf.mxu1  ;;  %5512 = vmatpush2.bf16.msra.mxu0 (%p4975_p8), %v8051_v44  ;;  %v8139_v44 = vld [vmem:[#allocation19 + $0x22c] ss:$12 sps:$4 sm:$0xff] (%p4975_p8)  }
 0x584   : > { %v4971_v5 = vadd.f32 %v4969_v12, %v4824_v40  ;;  %v8053_v40 = vld [vmem:[#allocation17 + $0x10c] ss:$12 sps:$4 sm:$0xff] (%p4975_p8)  }
 0x585   : > { %v4925_v27 = vpop.f32.mrf.mxu1  ;;  %v8068_v12 = vld [vmem:[#allocation17 + $0x98] ss:$12 sps:$4 sm:$0xff] (%p4975_p8)   ;;  %v8071_v33 = vld [vmem:[#allocation17 + $0x140] ss:$12 sps:$4 sm:$0xff] (%p4975_p8)   ;;  %5513 = vmatprep.subr.bf16.mxu0 (%p4975_p8), %v8053_v40  ;;  %v8137_v40 = vld [vmem:[#allocation19 + $0x228] ss:$12 sps:$4 sm:$0xff] (%p4975_p8)  }
 0x586   : > { %4973 = vst [vmem:[#allocation20] sm:$0xff] %v4971_v5  ;;  %v8057_v27 = vld [vmem:[#allocation17 + $0x108] ss:$12 sps:$4 sm:$0xff] (%p4975_p8)  }
 0x587   : > { %5514 = vmatpush2.bf16.msra.mxu0 (%p4975_p8), %v8057_v27  ;;  %v8147_v27 = vld [vmem:[#allocation19 + $0x1f8] ss:$12 sps:$4 sm:$0xff] (%p4975_p8)  }
 0x58d   : > { %v4980_v47 = vld [vmem:[#allocation20] sm:$0xff] (%p4975_p8) }
 0x58e   : > { %v4984_v43 = vmul.f32 (%p4975_p8), %v4982_v48, %v4980_v47  ;;  %v8133_v47 = vld [vmem:[#allocation19 + $0xf4] ss:$12 sps:$4 sm:$0xff] (%p4975_p8)   ;;  %v8131_v48 = vld [vmem:[#allocation19 + $0xf0] ss:$12 sps:$4 sm:$0xff] (%p4975_p8)  }
 0x590   : > { %v4987_v9 = vcombine.high (%p4975_p8), %v4984_v43, %v4984_v43  ;;  %v4989_v45 = vpack.c.bf16 (%p4975_p8), %v4984_v43, %v4984_v43  ;;  %v8134_v43 = vld [vmem:[#allocation19 + $0xd8] ss:$12 sps:$4 sm:$0xff] (%p4975_p8)  }
 0x592   : > { %v4990_v5 = vpack.c.bf16 (%p4975_p8), %v4987_v9, %v4987_v9  ;;  %v8142_v9 = vld [vmem:[#allocation19 + $0xc4] ss:$12 sps:$4 sm:$0xff] (%p4975_p8)  }
 0x594   : > { %5521 = vmatprep.mubr.bf16.mxu0 (%p4975_p8), %v4990_v5 }
 0x5bd   : > { %v7314_v61 = vpop.f32.mrf.mxu0 }
 0x5bf   : > { %v7315_v13 = vpop.f32.mrf.mxu0 }
 0x5c0   : > { %v7316_v53 = vadd.f32 %v7315_v13, %v7314_v61  ;;  %4979 = sbr.rel (!%p4975_p8) target bundleno = 1959 (0x7a7), region = 124  ;;  %v8059_v61 = vld [vmem:[#allocation17 + $0xf4] ss:$12 sps:$4 sm:$0xff] (%p4975_p8)  }
 0x5c1   : > { %v7317_v52 = vpop.f32.mrf.mxu0  ;;  %v8074_v13 = vld [vmem:[#allocation17 + $0x128] ss:$12 sps:$4 sm:$0xff] (%p4975_p8)   ;;  %5515 = vmatprep.subr.bf16.mxu0 (%p4975_p8), %v8059_v61 }
 0x5c2   : > { %v4972_v11 = vadd.f32 %v7316_v53, %v4825_v24  ;;  %v8073_v24 = vld [vmem:[#allocation17 + $0x80] ss:$12 sps:$4 sm:$0xff] (%p4975_p8)   ;;  %v8062_v53 = vld [vmem:[#allocation17 + $0xf0] ss:$12 sps:$4 sm:$0xff] (%p4975_p8)  }
 0x5c3   : > { %v7318_v30 = vpop.f32.mrf.mxu0  ;;  %v8064_v52 = vld [vmem:[#allocation17 + $0xdc] ss:$12 sps:$4 sm:$0xff] (%p4975_p8)   ;;  %5516 = vmatpush2.bf16.msra.mxu0 (%p4975_p8), %v8062_v53 }
 0x5c4   : > { %4974 = vst [vmem:[#allocation20 + $0x8] sm:$0xf] %v4972_v11  ;;  %v8075_v11 = vld [vmem:[#allocation17 + $0x68] ss:$12 sps:$4 sm:$0xff] (%p4975_p8)   ;;  %v8077_v30 = vld [vmem:[#allocation17 + $0x110] ss:$12 sps:$4 sm:$0xff] (%p4975_p8)   ;;  %5517 = vmatprep.subr.bf16.mxu0 (%p4975_p8), %v8064_v52 }
 0x5c5   : > { %v8149_v61 = vld [vmem:[#allocation19 + $0x1fc] ss:$12 sps:$4 sm:$0xff]   ;;  %v8157_v52 = vld [vmem:[#allocation19 + $0x1cc] ss:$12 sps:$4 sm:$0xff]  }
 0x5c6   : > { %v8155_v53 = vld [vmem:[#allocation19 + $0x1c8] ss:$12 sps:$4 sm:$0xff]  }
 0x5c7   : > { %5518 = vmatpush2.bf16.msra.mxu0 %v8067_v59  ;;  %v8163_v59 = vld [vmem:[#allocation19 + $0x198] ss:$12 sps:$4 sm:$0xff]  }
 0x5c8   : > { %5519 = vmatprep.subr.bf16.mxu0 %v8069_v28  ;;  %v8165_v28 = vld [vmem:[#allocation19 + $0x19c] ss:$12 sps:$4 sm:$0xff]  }
 0x5cb   : > { %v4981_v62 = vld [vmem:[#allocation20 + $0x8] sm:$0xf]  ;;  %5520 = vmatpush2.bf16.msra.mxu0 %v8072_v63  ;;  %v8171_v63 = vld [vmem:[#allocation19 + $0x170] ss:$12 sps:$4 sm:$0xff]  }
 0x5cc   : > { %v4985_v38 = vmul.f32 %v4983_v31, %v4981_v62  ;;  %7478 = vmatprep.subr.bf16.mxu0 %v8587_v42  ;;  %v8110_v62 = vld [vmem:[#allocation19 + $0x18] ss:$12 sps:$4 sm:$0xff]  }
 0x5cd   : > { %v8115_v31 = vld [vmem:[#allocation19 + $0x4] ss:$12 sps:$4 sm:$0xff]  }
 0x5ce   : > { %v10742_v46 = vpack.c.bf16 %v4985_v38, %v4985_v38  ;;  %5522 = vmatmul.mubr.bf16.vlgmr.msra.gmra.mxu0 %v4989_v45  ;;  %v8121_v38 = vld [vmem:[#allocation19 + $0x154] ss:$12 sps:$4 sm:$0xff]  }
 0x5cf   : > { %7479 = vmatpush3.bf16.msra.mxu0 %v8076_v4  ;;  %7494 = vmatprep.mubr.msk.bf16.mxu0 %vm8588_vm0, %v8587_v42 }
 0x5d0   : > { %5563 = vmatmul.mubr.bf16.vlgmr.msra.gmra.mxu1 %v10742_v46  ;;  %7480 = vmatprep.subr.bf16.mxu0 %v8587_v42 }
 0x5d1   : > { %7321 = vmatpush3.bf16.msra.mxu1 %v8063_v50  ;;  %5603 = vmatprep.mubr.bf16.mxu1 %v4990_v5  ;;  %v8130_v50 = vld [vmem:[#allocation19 + $0x10c] ss:$12 sps:$4 sm:$0xff]   ;;  %v8143_v5 = vld [vmem:[#allocation19 + $0x210] ss:$12 sps:$4 sm:$0xff]  }
 0x5d2   : > { %7322 = vmatprep.subr.bf16.mxu1 %v8066_v34  ;;  %v8136_v34 = vld [vmem:[#allocation19 + $0xdc] ss:$12 sps:$4 sm:$0xff]  }
 0x5d3   : > { %7481 = vmatpush3.bf16.msra.mxu0 %v8079_v1 }
 0x5d4   : > { %7482 = vmatprep.subr.bf16.mxu0 %v8587_v42 }
 0x5d5   : > { %7323 = vmatpush3.bf16.msra.mxu1 %v8068_v12  ;;  %v8140_v12 = vld [vmem:[#allocation19 + $0xc0] ss:$12 sps:$4 sm:$0xff]  }
 0x5d6   : > { %7324 = vmatprep.subr.bf16.mxu1 %v8071_v33  ;;  %v8145_v33 = vld [vmem:[#allocation19 + $0x214] ss:$12 sps:$4 sm:$0xff]  }
 0x5d7   : > { %7483 = vmatpush3.bf16.msra.mxu0 %v8082_v2 }
 0x5d8   : > { %7484 = vmatprep.subr.bf16.mxu0 %v8587_v42 }
 0x5d9   : > { %7325 = vmatpush3.bf16.msra.mxu1 %v8073_v24  ;;  %v8151_v24 = vld [vmem:[#allocation19 + $0x1e0] ss:$12 sps:$4 sm:$0xff]  }
 0x5da   : > { %7326 = vmatprep.subr.bf16.mxu1 %v8074_v13  ;;  %v8153_v13 = vld [vmem:[#allocation19 + $0x1e4] ss:$12 sps:$4 sm:$0xff]  }
 0x5db   : > { %7485 = vmatpush3.bf16.msra.mxu0 %v8085_v22 }
 0x5dc   : > { %7486 = vmatprep.subr.bf16.mxu0 %v8587_v42 }
 0x5dd   : > { %7327 = vmatpush3.bf16.msra.mxu1 %v8075_v11  ;;  %v8159_v11 = vld [vmem:[#allocation19 + $0x1b0] ss:$12 sps:$4 sm:$0xff]  }
 0x5de   : > { %7328 = vmatprep.subr.bf16.mxu1 %v8077_v30  ;;  %v8161_v30 = vld [vmem:[#allocation19 + $0x1b4] ss:$12 sps:$4 sm:$0xff]  }
 0x5df   : > { %7487 = vmatpush3.bf16.msra.mxu0 %v8088_v18 }
 0x5e0   : > { %7488 = vmatprep.subr.bf16.mxu0 %v8587_v42 }
 0x5e1   : > { %7329 = vmatpush3.bf16.msra.mxu1 %v8078_v49  ;;  %v8169_v49 = vld [vmem:[#allocation19 + $0x184] ss:$12 sps:$4 sm:$0xff]  }
 0x5e2   : > { %7330 = vmatprep.subr.bf16.mxu1 %v8080_v55  ;;  %v8167_v55 = vld [vmem:[#allocation19 + $0x180] ss:$12 sps:$4 sm:$0xff]  }
 0x5e3   : > { %7489 = vmatpush3.bf16.msra.mxu0 %v8089_v19 }
 0x5e4   : > { %7490 = vmatprep.subr.bf16.mxu0 %v8587_v42 }
 0x5e5   : > { %7331 = vmatpush3.bf16.msra.mxu1 %v8081_v7 }
 0x5e6   : > { %7332 = vmatprep.subr.bf16.mxu1 %v8083_v10 }
 0x5e7   : > { %7491 = vmatpush3.bf16.msra.mxu0 %v8090_v17  ;;  %v8146_v17 = vld [vmem:[#allocation19 + $0x230] ss:$12 sps:$4 sm:$0xff]  }
 0x5e8   : > { %7492 = vmatprep.subr.bf16.mxu0 %v8587_v42 }
 0x5e9   : > { %7333 = vmatpush3.bf16.msra.mxu1 %v8084_v21  ;;  %v5088_v21 = vld [vmem:[%s11048_s2] sm:$0x7] }
 0x5ea   : > { %7334 = vmatprep.subr.bf16.mxu1 %v8086_v0  ;;  %v11049_v0 = vld [vmem:[#allocation37_spill] sm:$0xff] }
 0x5eb   : > { %7493 = vmatpush3.bf16.msra.mxu0 %v8091_v35  ;;  %v5093_v1 = vrot.slane %v5088_v21, %v11049_v0 }
 0x5ec   : > { %6195 = vmatprep.subr.bf16.mxu0 %v8139_v44  ;;  %v8174_v44 = vld [vmem:[#allocation19 + $0x158] ss:$12 sps:$4 sm:$0xff]  }
 0x5ed   : > { %7335 = vmatpush3.bf16.msra.mxu1 %v8087_v32  ;;  %v11050_v32 = vld [vmem:[#allocation36_spill] sm:$0xff] }
 0x5ee   : > { %6154 = vmatprep.subr.bf16.mxu1 %v8094_v36  ;;  %7495 = vmatmul.mubr.bf16.vlgmr.msra.gmra.mxu0 %v10742_v46  ;;  %v8125_v46 = vld [vmem:[#allocation19 + $0x120] ss:$12 sps:$4 sm:$0xff]   ;;  %v5097_v36 = vrot.slane %v5088_v21, %v11050_v32 }
 0x5ef   : > { %6227 = vmatprep.mubr.bf16.mxu0 %v8586_v16  ;;  %v8128_v16 = vld [vmem:[#allocation19 + $0x108] ss:$12 sps:$4 sm:$0xff]   ;;  %6196 = vmatpush1.bf16.msra.mxu0 %v8137_v40 }
 0x5f0   : > { %5604 = vmatmul.mubr.bf16.vlgmr.msra.gmra.mxu1 %v4989_v45  ;;  %6197 = vmatprep.subr.bf16.mxu0 %v8145_v33  ;;  %v8177_v33 = vld [vmem:[#allocation19 + $0x80] ss:$12 sps:$4 sm:$0xff]  }
 0x5f1   : > { %6155 = vmatpush1.bf16.msra.mxu1 %v8092_v60 }
 0x5f2   : > { %6156 = vmatprep.subr.bf16.mxu1 %v8097_v54 }
 0x5f3   : > { %6198 = vmatpush1.bf16.msra.mxu0 %v8143_v5  ;;  %v8178_v5 = vld [vmem:[#allocation19 + $0x128] ss:$12 sps:$4 sm:$0xff]  }
 0x5f4   : > { %6199 = vmatprep.subr.bf16.mxu0 %v8149_v61  ;;  %v8180_v61 = vld [vmem:[#allocation19 + $0x110] ss:$12 sps:$4 sm:$0xff]  }
 0x5f5   : > { %6157 = vmatpush1.bf16.msra.mxu1 %v8095_v14 }
 0x5f6   : > { %6158 = vmatprep.subr.bf16.mxu1 %v8100_v51 }
 0x5f7   : > { %6200 = vmatpush1.bf16.msra.mxu0 %v8147_v27  ;;  %v8179_v27 = vld [vmem:[#allocation19 + $0x68] ss:$12 sps:$4 sm:$0xff]  }
 0x5f8   : > { %6201 = vmatprep.subr.bf16.mxu0 %v8153_v13  ;;  %v8183_v13 = vld [vmem:[#allocation19 + $0x38] ss:$12 sps:$4 sm:$0xff]  }
 0x5f9   : > { %6159 = vmatpush1.bf16.msra.mxu1 %v8098_v56 }
 0x5fa   : > { %6160 = vmatprep.subr.bf16.mxu1 %v8103_v8 }
 0x5fb   : > { %6202 = vmatpush1.bf16.msra.mxu0 %v8151_v24  ;;  %v8181_v24 = vld [vmem:[#allocation19 + $0x50] ss:$12 sps:$4 sm:$0xff]  }
 0x5fc   : > { %6203 = vmatprep.subr.bf16.mxu0 %v8157_v52  ;;  %v8185_v52 = vld [vmem:[#allocation19 + $0x20] ss:$12 sps:$4 sm:$0xff]  }
 0x5fd   : > { %6161 = vmatpush1.bf16.msra.mxu1 %v8101_v20 }
 0x5fe   : > { %6162 = vmatprep.subr.bf16.mxu1 %v8106_v57 }
 0x5ff   : > { %6204 = vmatpush1.bf16.msra.mxu0 %v8155_v53  ;;  %v8184_v53 = vld [vmem:[#allocation19 + $0xe0] ss:$12 sps:$4 sm:$0xff]  }
 0x600   : > { %6205 = vmatprep.subr.bf16.mxu0 %v8161_v30  ;;  %v8187_v30 = vld [vmem:[#allocation19 + $0x8] ss:$12 sps:$4 sm:$0xff]  }
 0x601   : > { %6163 = vmatpush1.bf16.msra.mxu1 %v8104_v25 }
 0x602   : > { %6164 = vmatprep.subr.bf16.mxu1 %v8109_v3 }
 0x603   : > { %6206 = vmatpush1.bf16.msra.mxu0 %v8159_v11  ;;  %v8186_v11 = vld [vmem:[#allocation19 + $0xc8] ss:$12 sps:$4 sm:$0xff]  }
 0x604   : > { %6207 = vmatprep.subr.bf16.mxu0 %v8165_v28 }
 0x605   : > { %6165 = vmatpush1.bf16.msra.mxu1 %v8107_v41  ;;  %v8150_v41 = vld [vmem:[#allocation19 + $0x218] ss:$12 sps:$4 sm:$0xff]  }
 0x606   : > { %6166 = vmatprep.subr.bf16.mxu1 %v8112_v15 }
 0x607   : > { %6208 = vmatpush1.bf16.msra.mxu0 %v8163_v59 }
 0x608   : > { %6209 = vmatprep.subr.bf16.mxu0 %v8169_v49 }
 0x609   : > { %6167 = vmatpush1.bf16.msra.mxu1 %v8110_v62  ;;  %v8154_v62 = vld [vmem:[#allocation19 + $0x200] ss:$12 sps:$4 sm:$0xff]  }
 0x60a   : > { %6168 = vmatprep.subr.bf16.mxu1 %v8115_v31  ;;  %v8158_v31 = vld [vmem:[#allocation19 + $0x1e8] ss:$12 sps:$4 sm:$0xff]  }
 0x60b   : > { %6210 = vmatpush1.bf16.msra.mxu0 %v8167_v55 }
 0x60c   : > { %7351 = vmatprep.subr.bf16.mxu0 %v8171_v63  ;;  %v5753_v63 = vld [vmem:[%s11052_s25] sm:$0x7] }
 0x60d   : > { %6169 = vmatpush1.bf16.msra.mxu1 %v8113_v29  ;;  %v8162_v29 = vld [vmem:[#allocation19 + $0x1d0] ss:$12 sps:$4 sm:$0xff]  }
 0x60e   : > { %6170 = vmatprep.subr.bf16.mxu1 %v8118_v23 }
 0x611   : > { %6171 = vmatpush2.bf16.msra.mxu1 %v8116_v39  ;;  %v11051_v39 = vld [vmem:[#allocation40_spill] sm:$0xff] }
 0x612   : > { %6172 = vmatprep.subr.bf16.mxu1 %v8121_v38  ;;  %v5101_v38 = vrot.slane %v5088_v21, %v11051_v39 }
 0x615   : > { %6173 = vmatpush2.bf16.msra.mxu1 %v8119_v26  ;;  %v8166_v26 = vld [vmem:[#allocation19 + $0x1b8] ss:$12 sps:$4 sm:$0xff]  }
 0x616   : > { %6174 = vmatprep.subr.bf16.mxu1 %v8124_v6 }
 0x619   : > { %6175 = vmatpush2.bf16.msra.mxu1 %v8122_v58 }
 0x61a   : > { %6176 = vmatprep.subr.bf16.mxu1 %v8127_v37 }
 0x61d   : > { %6177 = vmatpush2.bf16.msra.mxu1 %v8125_v46  ;;  %v8170_v46 = vld [vmem:[#allocation19 + $0x1a0] ss:$12 sps:$4 sm:$0xff]  }
 0x61e   : > { %6178 = vmatprep.subr.bf16.mxu1 %v8130_v50 }
 0x621   : > { %6179 = vmatpush2.bf16.msra.mxu1 %v8128_v16 }
 0x622   : > { %6180 = vmatprep.subr.bf16.mxu1 %v8133_v47 }
 0x625   : > { %6181 = vmatpush2.bf16.msra.mxu1 %v8131_v48  ;;  %v8172_v48 = vld [vmem:[#allocation19 + $0xb0] ss:$12 sps:$4 sm:$0xff]  }
 0x626   : > { %6182 = vmatprep.subr.bf16.mxu1 %v8136_v34 }
 0x629   : > { %6183 = vmatpush2.bf16.msra.mxu1 %v8134_v43  ;;  %v8173_v43 = vld [vmem:[#allocation19 + $0x188] ss:$12 sps:$4 sm:$0xff]  }
 0x62a   : > { %6184 = vmatprep.subr.bf16.mxu1 %v8142_v9  ;;  %v8175_v9 = vld [vmem:[#allocation19 + $0x98] ss:$12 sps:$4 sm:$0xff]  }
 0x62d   : > { %6185 = vmatpush2.bf16.msra.mxu1 %v8140_v12  ;;  %v8176_v12 = vld [vmem:[#allocation19 + $0x140] ss:$12 sps:$4 sm:$0xff]  }
 0x62e   : > { %7498 = vmatprep.subr.bf16.mxu1 %v8587_v42 }
 0x68e   : > { %v5523_v2 = vpop.f32.mrf.mxu0 }
 0x68f   : > { %v5524_v60 = vadd.f32 %v5523_v2, %v5093_v1 }
 0x690   : > { %v5564_v7 = vpop.f32.mrf.mxu1  ;;  %v5525_v54 = vpop.f32.mrf.mxu0 }
 0x691   : > { %v5565_v22 = vadd.f32 %v5564_v7, %v5524_v60  ;;  %v5526_v14 = vadd.f32 %v5525_v54, %v5097_v36  ;;  %v5758_v7 = vrot.slane %v5753_v63, %v11049_v0 }
 0x692   : > { %v5566_v10 = vpop.f32.mrf.mxu1  ;;  %v5527_v51 = vpop.f32.mrf.mxu0 }
 0x693   : > { %v5567_v18 = vadd.f32 %v5566_v10, %v5526_v14  ;;  %v5651_v56 = vmax.f32 %v5565_v22, 0.0  ;;  %v5762_v10 = vrot.slane %v5753_v63, %v11050_v32 }
 0x694   : > { %v5568_v45 = vpop.f32.mrf.mxu1  ;;  %v5528_v8 = vpop.f32.mrf.mxu0 }
 0x695   : > { %v5652_v19 = vmax.f32 %v5567_v18, 0.0  ;;  %v10763_v25 = vpack.c.bf16 %v5651_v56, %v5651_v56 }
 0x696   : > { %v5569_v4 = vpop.f32.mrf.mxu1 }
 0x697   : > { %v5655_v57 = vpack.c.bf16 %v5652_v19, %v5652_v19  ;;  %v5766_v19 = vrot.slane %v5753_v63, %v11051_v39 }
 0x699   : > { %6186 = vmatprep.mubr.bf16.mxu1 %v5655_v57 }
 0x69a   : > { %6187 = vmatmul.mubr.bf16.vlgmr.msra.gmra.mxu1 %v10763_v25 }
 0x69b   : > { %7499 = vmatpush3.bf16.msra.mxu1 %v8146_v17  ;;  %7514 = vmatprep.mubr.msk.bf16.mxu1 %vm8588_vm0, %v8587_v42 }
 0x69c   : > { %7500 = vmatprep.subr.bf16.mxu1 %v8587_v42 }
 0x69f   : > { %7501 = vmatpush3.bf16.msra.mxu1 %v8150_v41 }
 0x6a0   : > { %7502 = vmatprep.subr.bf16.mxu1 %v8587_v42 }
 0x6a3   : > { %7503 = vmatpush3.bf16.msra.mxu1 %v8154_v62 }
 0x6a4   : > { %7504 = vmatprep.subr.bf16.mxu1 %v8587_v42 }
 0x6a7   : > { %7505 = vmatpush3.bf16.msra.mxu1 %v8158_v31 }
 0x6a8   : > { %7506 = vmatprep.subr.bf16.mxu1 %v8587_v42 }
 0x6ab   : > { %7507 = vmatpush3.bf16.msra.mxu1 %v8162_v29 }
 0x6ac   : > { %7508 = vmatprep.subr.bf16.mxu1 %v8587_v42 }
 0x6ae   : > { %v5645_v58 = vpop.f32.mrf.mxu0 }
 0x6af   : > { %7509 = vmatpush3.bf16.msra.mxu1 %v8166_v26 }
 0x6b0   : > { %v7336_v20 = vpop.f32.mrf.mxu1  ;;  %v7496_v50 = vpop.f32.mrf.mxu0  ;;  %7510 = vmatprep.subr.bf16.mxu1 %v8587_v42 }
 0x6b2   : > { %v7337_v3 = vpop.f32.mrf.mxu1  ;;  %v5648_v47 = vpop.f32.mrf.mxu0 }
 0x6b3   : > { %v7338_v23 = vadd.f32 %v7337_v3, %v7336_v20  ;;  %7511 = vmatpush3.bf16.msra.mxu1 %v8170_v46 }
 0x6b4   : > { %v7339_v35 = vpop.f32.mrf.mxu1  ;;  %v7497_v40 = vpop.f32.mrf.mxu0  ;;  %7512 = vmatprep.subr.bf16.mxu1 %v8587_v42  ;;  %v8182_v42 = vld [vmem:[#allocation19 + $0xf8] ss:$12 sps:$4 sm:$0xff]  }
 0x6b5   : > { %v5606_v6 = vadd.f32 %v7338_v23, %v5101_v38 }
 0x6b6   : > { %v7340_v15 = vpop.f32.mrf.mxu1 }
 0x6b7   : > { %v5646_v37 = vadd.f32 %v5645_v58, %v5606_v6  ;;  %7513 = vmatpush3.bf16.msra.mxu1 %v8173_v43 }
 0x6b9   : > { %v5653_v16 = vmax.f32 %v5646_v37, 0.0 }
 0x6bb   : > { %v5656_v34 = vpack.c.bf16 %v5653_v16, %v5653_v16 }
 0x6bd   : > { %6228 = vmatmul.mubr.bf16.vlgmr.msra.gmra.mxu0 %v5656_v34  ;;  %7515 = vmatmul.mubr.bf16.vlgmr.msra.gmra.mxu1 %v5656_v34 }
 0x6be   : > { %7352 = vmatpush3.bf16.msra.mxu0 %v8172_v48  ;;  %6268 = vmatprep.mubr.bf16.mxu0 %v5655_v57 }
 0x6bf   : > { %7353 = vmatprep.subr.bf16.mxu0 %v8174_v44 }
 0x6c2   : > { %7354 = vmatpush3.bf16.msra.mxu0 %v8175_v9 }
 0x6c3   : > { %7355 = vmatprep.subr.bf16.mxu0 %v8176_v12 }
 0x6c6   : > { %7356 = vmatpush3.bf16.msra.mxu0 %v8177_v33 }
 0x6c7   : > { %7357 = vmatprep.subr.bf16.mxu0 %v8178_v5 }
 0x6ca   : > { %7358 = vmatpush3.bf16.msra.mxu0 %v8179_v27 }
 0x6cb   : > { %7359 = vmatprep.subr.bf16.mxu0 %v8180_v61 }
 0x6ce   : > { %7360 = vmatpush3.bf16.msra.mxu0 %v8181_v24 }
 0x6cf   : > { %7361 = vmatprep.subr.bf16.mxu0 %v8182_v42 }
 0x6d2   : > { %7362 = vmatpush3.bf16.msra.mxu0 %v8183_v13 }
 0x6d3   : > { %7363 = vmatprep.subr.bf16.mxu0 %v8184_v53 }
 0x6d6   : > { %7364 = vmatpush3.bf16.msra.mxu0 %v8185_v52 }
 0x6d7   : > { %7365 = vmatprep.subr.bf16.mxu0 %v8186_v11 }
 0x6da   : > { %7366 = vmatpush3.bf16.msra.mxu0 %v8187_v30 }
 0x6dd   : > { %6269 = vmatmul.mubr.bf16.vlgmr.msra.gmra.mxu0 %v10763_v25 }
 0x75a   : > { %v6188_v59 = vpop.f32.mrf.mxu1 }
 0x75b   : > { %v6189_v4 = vadd.f32 %v6188_v59, %v5758_v7 }
 0x75c   : > { %v6190_v28 = vpop.f32.mrf.mxu1 }
 0x75d   : > { %v6191_v21 = vadd.f32 %v6190_v28, %v5762_v10 }
 0x75e   : > { %v6192_v49 = vpop.f32.mrf.mxu1 }
 0x760   : > { %v6193_v55 = vpop.f32.mrf.mxu1 }
 0x77d   : > { %v6229_v45 = vpop.f32.mrf.mxu0  ;;  %v6310_v22 = vpop.f32.mrf.mxu1 }
 0x77e   : > { %v6230_v36 = vadd.f32 %v6229_v45, %v6189_v4 }
 0x77f   : > { %v6231_v1 = vpop.f32.mrf.mxu0  ;;  %v7516_v51 = vpop.f32.mrf.mxu1 }
 0x780   : > { %v6232_v2 = vadd.f32 %v6231_v1, %v6191_v21 }
 0x781   : > { %v6233_v60 = vpop.f32.mrf.mxu0  ;;  %v6313_v18 = vpop.f32.mrf.mxu1 }
 0x782   : > { %v6318_v54 = vcombine.low %v6230_v36, %v6232_v2 }
 0x783   : > { %v6234_v14 = vpop.f32.mrf.mxu0  ;;  %v7517_v56 = vpop.f32.mrf.mxu1 }
 0x784   : > { %6320 = vst [vmem:[#allocation20] sm:$0xff] %v6318_v54 }
 0x79d   : > { %v7367_v8 = vpop.f32.mrf.mxu0 }
 0x79f   : > { %v7368_v0 = vpop.f32.mrf.mxu0 }
 0x7a0   : > { %v7369_v20 = vadd.f32 %v7368_v0, %v7367_v8 }
 0x7a1   : > { %v7370_v32 = vpop.f32.mrf.mxu0 }
 0x7a2   : > { %v6271_v57 = vadd.f32 %v7369_v20, %v5766_v19 }
 0x7a3   : > { %v7371_v17 = vpop.f32.mrf.mxu0 }
 0x7a4   : > { %v6311_v25 = vadd.f32 %v6310_v22, %v6271_v57 }
 0x7a6   : > { %6321 = vst [vmem:[#allocation20 + $0x8] sm:$0xf] %v6311_v25 }
 0x7a7 PF: > { %p7600_p1 = scmp.eq.s32.totalorder %s8714_s24, 1  ;;  %s8589_s13 = smov [#allocation20]  }
 0x7a8   : > { %s6329_s21 = sshll.u32 %s8589_s13, 4  ;;  %s6330_s21 = int_to_ptr.vmem [resolvable:$true] %s6329_s21 }
 0x7a9   : > { %s8438_s7 = scalar_lea.vmem %s6330_s21, 192  ;;  %p8445_p11 = scmp.lt.s32.totalorder %s6330_s21, %s6330_s21 }
 0x7aa   : > { %p8439_p9 = scmp.ne.s32.totalorder %s6330_s21, %s8438_s7  ;;  %p8446_p0 = scmp.lt.s32.totalorder %s8438_s7, %s8438_s7 }
 0x7ac   : > { %p8440_p12 = pnand %p8439_p9, %p7600_p1  ;;  %p8447_p4 = por %p8446_p0, %p8445_p11 }
 0x7ae   : > { %p8441_p5 = pneg %p8440_p12 }
 0x7b0   : > { %p8448_p7 = pnand %p8447_p4, %p8441_p5 }
 0x7b2   : > { %8451 = shalt.err (!%p8448_p7)
}
 0x7b3   : > { %s11053_s15 = sld [smem:[#allocation91_spill]] }
 0x7b9   : > { %7555 = dma.vmem_to_hbm [thread:$0]  (%p7600_p1), %s6330_s21, 192, %s11053_s15, [#allocation7]  }
 0x7ba   : > { %8529 = dma.done.wait (%p7600_p1), [#allocation7], 192  }
 0x7bb   : > { %8531 = vsyncadd (%p7600_p1), [#allocation7], 4294967104 }
 0x7bc PF: > { %s40_s23 = sadd.s32 1, %s8566_s23   ;;  %s11054_s16 = sld [smem:[#allocation32_spill]] }
 0x7bd   : > { %p37_p10 = scmp.ge.s32.totalorder %s40_s23, 4   ;;  %s11055_s6 = smov %s8877_s17 }
 0x7be   : > { %s11056_s17 = smov %s8542_s18  ;;  %s11057_s18 = smov %s8806_s11 }
 0x7bf   : > { %s11058_s19 = smov %s8550_s0  ;;  %s11059_s0 = smov %s8554_s20 }
 0x7c0   : > { %s11060_s20 = smov %s11055_s6  ;;  %s11061_s21 = smov %s8562_s22 }
 0x7c1   : > { %s11062_s22 = smov %s11064_s29  ;;  %39 = sbr.rel (!%p37_p10) target bundleno = 31 (0x1f), region = 182 }
 0x7c6   :  { %6342 = vsyncpa [#allocation6], 1 }
 0x7c7   :  { %6344 = vsyncpa [#allocation6 + $0x1], 1 }
 0x7c8   :  { %6345 = vsyncpa [#allocation9], 1 }
 0x7c9   :  { %6347 = vsyncpa [#allocation9 + $0x1], 1 }
 0x7ca   :  { %6348 = vsyncpa [#allocation12], 1 }
 0x7cb   :  { %6350 = vsyncpa [#allocation12 + $0x1], 1 }
 0x7cc   :  { %6351 = vsyncpa [#allocation15], 1 }
 0x7cd   :  { %6352 = vsyncpa [#allocation18], 1 }
 0x7ce   :  { %6353 = vsyncpa [#allocation7], 1 }
 0x7cf   :  { %6355 = vsyncpa [#allocation7 + $0x1], 1 }

</bundles_post_ra>
